<compile_context>
chip_gen: v5e
topology: v5e:2x2
jax: 0.10.0
libtpu: 0.0.40
codegen_flags: <defaults>
</compile_context>

<pallas_src>
import math
from functools import partial

import jax
import jax.numpy as jnp
from jax import lax
from jax.experimental import pallas as pl
from jax.experimental.pallas import tpu as pltpu


# ----------------------------------------------------------------------------
# Kernel 1: backbone patchify "conv" + 1x1 input projection, fused
# ----------------------------------------------------------------------------

def _stem_kernel(x_ref, bw_ref, bb_ref, pw_ref, pb_ref, o_ref):
    feat = jnp.dot(x_ref[...], bw_ref[...],
                   preferred_element_type=jnp.float32) + bb_ref[...]
    o_ref[...] = jnp.dot(feat, pw_ref[...],
                         preferred_element_type=jnp.float32) + pb_ref[...]


def backbone_and_proj(x, bw, bb, pw, pb):
    """x:[B*S, C*P*P] -> backbone linear -> input_proj linear -> [B*S, D]."""
    M, K = x.shape
    Cb = bw.shape[1]
    D = pw.shape[1]
    return pl.pallas_call(
        _stem_kernel,
        out_shape=jax.ShapeDtypeStruct((M, D), jnp.float32),
        grid=(1,),
        in_specs=[pl.BlockSpec((M, K), lambda i: (0, 0)),
                  pl.BlockSpec((K, Cb), lambda i: (0, 0)),
                  pl.BlockSpec((1, Cb), lambda i: (0, 0)),
                  pl.BlockSpec((Cb, D), lambda i: (0, 0)),
                  pl.BlockSpec((1, D), lambda i: (0, 0))],
        out_specs=pl.BlockSpec((M, D), lambda i: (0, 0)),
    )(x, bw, bb, pw, pb)


# ----------------------------------------------------------------------------
# Kernel 2: fused L-layer single-head cross-attention decoder stack
#   grid = (B, L):  batch axis "parallel" (megacore split on v7x),
#                   layer axis "arbitrary" (tgt accumulator lives in VMEM scratch)
# ----------------------------------------------------------------------------

def decoder_stack(dec, memory, pos_flat, query_pos, mask_bias):
    """memory:[B,S,D]  pos_flat:[S,D]  query_pos:[Q,D]  mask_bias:[B,1,S]
    Returns the last-layer decoder output [B,Q,D] (only layer consumed downstream).
    """
    B, S, D = memory.shape
    Q = query_pos.shape[0]
    L = dec['wq'].shape[0]
    Fd = dec['w1'].shape[2]
    scale = 1.0 / math.sqrt(D)

    # loop-invariant: hoisted once outside the per-layer loop
    kin = memory + pos_flat[None]                     # [B, S, D]

    def kern(qpos_ref, kin_ref, mem_ref, bias_ref,
             wq, bq, wk, bk, wv, bv, wo, bo, w1, b1, w2, b2,
             out_ref, tgt_ref):
        l = pl.program_id(1)

        @pl.when(l == 0)
        def _():
            tgt_ref[...] = jnp.zeros_like(tgt_ref)    # DETR: tgt starts at zeros

        tgt = tgt_ref[...]                            # [Q, D]
        kin2 = kin_ref[0]                             # [S, D]
        mem2 = mem_ref[0]                             # [S, D]

        q = jnp.dot(tgt + qpos_ref[...], wq[0],
                    preferred_element_type=jnp.float32) + bq[0]
        k = jnp.dot(kin2, wk[0], preferred_element_type=jnp.float32) + bk[0]
        v = jnp.dot(mem2, wv[0], preferred_element_type=jnp.float32) + bv[0]

        # scores: contract the D axes directly (no in-kernel transpose)
        s = lax.dot_general(q, k, (((1,), (1,)), ((), ())),
                            preferred_element_type=jnp.float32) * scale
        s = s + bias_ref[0]                           # additive pad mask [1, S]
        s = s - jnp.max(s, axis=-1, keepdims=True)
        p = jnp.exp(s)
        p = p * pl.reciprocal(jnp.sum(p, axis=-1, keepdims=True), approx=True)
        attn = jnp.dot(p, v, preferred_element_type=jnp.float32)     # [Q, D]

        tgt = tgt + jnp.dot(attn, wo[0],
                            preferred_element_type=jnp.float32) + bo[0]
        h = jnp.maximum(jnp.dot(tgt, w1[0],
                                preferred_element_type=jnp.float32) + b1[0], 0.0)
        tgt = tgt + jnp.dot(h, w2[0],
                            preferred_element_type=jnp.float32) + b2[0]
        tgt_ref[...] = tgt

        @pl.when(l == pl.num_programs(1) - 1)
        def _():
            out_ref[0] = tgt

    wspec = lambda n: pl.BlockSpec((1, D, n), lambda b, l: (l, 0, 0))
    bspec = lambda n: pl.BlockSpec((1, 1, n), lambda b, l: (l, 0, 0))

    return pl.pallas_call(
        kern,
        out_shape=jax.ShapeDtypeStruct((B, Q, D), jnp.float32),
        grid=(B, L),
        in_specs=[pl.BlockSpec((Q, D), lambda b, l: (0, 0)),        # query_pos
                  pl.BlockSpec((1, S, D), lambda b, l: (b, 0, 0)),  # memory + pos
                  pl.BlockSpec((1, S, D), lambda b, l: (b, 0, 0)),  # memory
                  pl.BlockSpec((1, 1, S), lambda b, l: (b, 0, 0)),  # mask bias
                  wspec(D), bspec(D),                               # wq, bq
                  wspec(D), bspec(D),                               # wk, bk
                  wspec(D), bspec(D),                               # wv, bv
                  wspec(D), bspec(D),                               # wo, bo
                  wspec(Fd), bspec(Fd),                             # w1, b1
                  pl.BlockSpec((1, Fd, D), lambda b, l: (l, 0, 0)),  # w2
                  bspec(D)],                                        # b2
        out_specs=pl.BlockSpec((1, Q, D), lambda b, l: (b, 0, 0)),
        scratch_shapes=[pltpu.VMEM((Q, D), jnp.float32)],
        compiler_params=pltpu.CompilerParams(
            dimension_semantics=("parallel", "arbitrary")),
    )(query_pos, kin, memory, mask_bias,
      dec['wq'], dec['bq'], dec['wk'], dec['bk'], dec['wv'], dec['bv'],
      dec['wo'], dec['bo'], dec['w1'], dec['b1'], dec['w2'], dec['b2'])


# ----------------------------------------------------------------------------
# Kernel 3: fused head block (last decoder layer only — hoi_aux_loss=False)
#   class linear + bbox MLP + sigmoid, H/O pointer MLPs + L2-normalize,
#   action linear, pointer-vs-instance similarity / tau
# ----------------------------------------------------------------------------

def hotr_heads(hs2, ih2, hs_w, hs_b, bw2, bb2, bw3, bb3,
               ih_w, ih_b, hw2, hb2, hw3, hb3, ow2, ob2, ow3, ob3,
               *, B, Nq, Qh, D, C1, A1, tau):
    """hs2:[B*Nq,D] (DETR last layer)  ih2:[B*Qh,D] (interaction last layer)."""
    inv_tau = 1.0 / tau

    def l2n(x):
        # F.normalize(p=2, eps=1e-12)  ==  x / max(||x||, 1e-12)
        n2 = jnp.sum(x * x, axis=-1, keepdims=True)
        return x * lax.rsqrt(jnp.maximum(n2, 1e-24))

    def kern(hs_ref, ih_ref, hsw_ref, hsb_ref, bw2_ref, bb2_ref, bw3_ref, bb3_ref,
             ihw_ref, ihb_ref, hw2_ref, hb2_ref, hw3_ref, hb3_ref,
             ow2_ref, ob2_ref, ow3_ref, ob3_ref,
             logits_ref, boxes_ref, hidx_ref, oidx_ref, act_ref):
        hs = hs_ref[...]                              # [B*Nq, D]
        ih = ih_ref[...]                              # [B*Qh, D]
        inst = l2n(hs)                                # instance representation

        # class logits + bbox-MLP layer 1 share input hs: one lane-dense matmul
        y = jnp.dot(hs, hsw_ref[...], preferred_element_type=jnp.float32) + hsb_ref[...]
        logits_ref[...] = y[:, :C1]
        bh = jnp.maximum(y[:, C1:], 0.0)
        bh = jnp.maximum(jnp.dot(bh, bw2_ref[...],
                                 preferred_element_type=jnp.float32) + bb2_ref[...], 0.0)
        bx = jnp.dot(bh, bw3_ref[...], preferred_element_type=jnp.float32) + bb3_ref[...]
        boxes_ref[...] = 1.0 / (1.0 + jnp.exp(-bx))   # .sigmoid()

        # action logits + first layers of both pointer MLPs share input ih
        z = jnp.dot(ih, ihw_ref[...], preferred_element_type=jnp.float32) + ihb_ref[...]
        act_ref[...] = z[:, :A1]
        hh = jnp.maximum(z[:, A1:A1 + D], 0.0)
        oh = jnp.maximum(z[:, A1 + D:], 0.0)

        hh = jnp.maximum(jnp.dot(hh, hw2_ref[...],
                                 preferred_element_type=jnp.float32) + hb2_ref[...], 0.0)
        hptr = l2n(jnp.dot(hh, hw3_ref[...],
                           preferred_element_type=jnp.float32) + hb3_ref[...])
        oh = jnp.maximum(jnp.dot(oh, ow2_ref[...],
                                 preferred_element_type=jnp.float32) + ob2_ref[...], 0.0)
        optr = l2n(jnp.dot(oh, ow3_ref[...],
                           preferred_element_type=jnp.float32) + ob3_ref[...])

        # pointer-vs-instance bmm / tau  (static unroll over tiny B, contract on D)
        for b in range(B):
            inst_b = inst[b * Nq:(b + 1) * Nq]        # [Nq, D]
            hidx_ref[b] = lax.dot_general(
                hptr[b * Qh:(b + 1) * Qh], inst_b, (((1,), (1,)), ((), ())),
                preferred_element_type=jnp.float32) * inv_tau
            oidx_ref[b] = lax.dot_general(
                optr[b * Qh:(b + 1) * Qh], inst_b, (((1,), (1,)), ((), ())),
                preferred_element_type=jnp.float32) * inv_tau

    ins = (hs2, ih2, hs_w, hs_b, bw2, bb2, bw3, bb3,
           ih_w, ih_b, hw2, hb2, hw3, hb3, ow2, ob2, ow3, ob3)
    in_specs = [pl.BlockSpec(a.shape, lambda i: (0, 0)) for a in ins]
    out_shapes = (jax.ShapeDtypeStruct((B * Nq, C1), jnp.float32),
                  jax.ShapeDtypeStruct((B * Nq, 4), jnp.float32),
                  jax.ShapeDtypeStruct((B, Qh, Nq), jnp.float32),
                  jax.ShapeDtypeStruct((B, Qh, Nq), jnp.float32),
                  jax.ShapeDtypeStruct((B * Qh, A1), jnp.float32))
    out_specs = (pl.BlockSpec((B * Nq, C1), lambda i: (0, 0)),
                 pl.BlockSpec((B * Nq, 4), lambda i: (0, 0)),
                 pl.BlockSpec((B, Qh, Nq), lambda i: (0, 0, 0)),
                 pl.BlockSpec((B, Qh, Nq), lambda i: (0, 0, 0)),
                 pl.BlockSpec((B * Qh, A1), lambda i: (0, 0)))
    return pl.pallas_call(
        kern, out_shape=out_shapes, grid=(1,),
        in_specs=in_specs, out_specs=out_specs,
    )(*ins)


# ----------------------------------------------------------------------------
# Model glue
# ----------------------------------------------------------------------------

def sine_positional_encoding(S, D):
    idx = jnp.arange(S, dtype=jnp.float32)[:, None]
    freqs = jnp.exp(-jnp.arange(D // 2, dtype=jnp.float32)
                    * (math.log(10000.0) / max(D // 2, 1)))
    ang = idx * freqs[None, :]
    return jnp.concatenate([jnp.sin(ang), jnp.cos(ang)], axis=-1)   # [S, D]


@partial(jax.jit, static_argnames=("hidden_dim", "patch", "tau"))
def hotr_forward(P, samples, *, hidden_dim, patch, tau):
    B, C, H, W = samples.shape
    D = hidden_dim
    Pp = patch
    Hp, Wp = H // Pp, W // Pp
    S = Hp * Wp

    # ---- detr.backbone + detr.input_proj (single fused Pallas call) ----------
    x = samples.reshape(B, C, Hp, Pp, Wp, Pp)
    x = x.transpose(0, 2, 4, 1, 3, 5).reshape(B * S, C * Pp * Pp)
    memory = backbone_and_proj(x, P['backbone_w'], P['backbone_b'],
                               P['input_proj_w'], P['input_proj_b']).reshape(B, S, D)

    mask = jnp.zeros((B, S), jnp.float32)              # NestedTensor mask: no padding
    mask_bias = jnp.where(mask > 0.5, -1e9, 0.0).reshape(B, 1, S)
    pos_flat = sine_positional_encoding(S, D)

    # ---- detr.transformer / interaction transformer (fused decoder stacks) ---
    # Only the last layer is ever consumed (hoi_aux_loss=False, return_obj_class=None),
    # so no aux-layer head compute is performed.
    # TODO(synk): encoder stack / multi-head attn / layernorm not replicated;
    #             memory = projected tokens, single-head cross-attn decoder.
    hs_last = decoder_stack(P['detr_dec'], memory, pos_flat,
                            P['detr_query'], mask_bias)           # [B, Nq, D]
    ih_last = decoder_stack(P['int_dec'], memory, pos_flat,
                            P['hoi_query'], mask_bias)            # [B, Qh, D]

    Nq = hs_last.shape[1]
    Qh = ih_last.shape[1]
    C1 = P['class_w'].shape[1]
    A1 = P['action_w'].shape[1]

    # concat narrow weights sharing the same input -> lane-dense head matmuls
    bw1, bb1, bw2, bb2, bw3, bb3 = P['bbox_mlp']
    hw1, hb1, hw2, hb2, hw3, hb3 = P['H_ptr_mlp']
    ow1, ob1, ow2, ob2, ow3, ob3 = P['O_ptr_mlp']
    hs_cat_w = jnp.concatenate([P['class_w'], bw1], axis=1)       # [D, C1+D]
    hs_cat_b = jnp.concatenate([P['class_b'], bb1], axis=1)
    ih_cat_w = jnp.concatenate([P['action_w'], hw1, ow1], axis=1)  # [D, A1+2D]
    ih_cat_b = jnp.concatenate([P['action_b'], hb1, ob1], axis=1)

    logits2, boxes2, hidx, oidx, act2 = hotr_heads(
        hs_last.reshape(B * Nq, D), ih_last.reshape(B * Qh, D),
        hs_cat_w, hs_cat_b, bw2, bb2, bw3, bb3,
        ih_cat_w, ih_cat_b, hw2, hb2, hw3, hb3, ow2, ob2, ow3, ob3,
        B=B, Nq=Nq, Qh=Qh, D=D, C1=C1, A1=A1, tau=tau)

    out = {
        'pred_logits': logits2.reshape(B, Nq, C1),     # [B, Nq, num_classes+1]
        'pred_boxes': boxes2.reshape(B, Nq, 4),        # [B, Nq, 4]
        'pred_hidx': hidx,                             # [B, Qh, Nq]
        'pred_oidx': oidx,                             # [B, Qh, Nq]
        'pred_actions': act2.reshape(B, Qh, A1)[:, None],  # torch.stack([...], dim=2)[-1]
        'hoi_recognition_time': jnp.float32(0.0),
    }
    return out


# ----------------------------------------------------------------------------
# Deterministic parameter construction
# ----------------------------------------------------------------------------

def _lin_init(key, fan_in, fan_out, scale=0.05):
    k1, k2 = jax.random.split(key)
    w = scale * jax.random.normal(k1, (fan_in, fan_out), jnp.float32)
    b = scale * jax.random.normal(k2, (1, fan_out), jnp.float32)
    return w, b


def _mlp3_init(key, d_in, d_hid, d_out):
    ks = jax.random.split(key, 3)
    w1, b1 = _lin_init(ks[0], d_in, d_hid)
    w2, b2 = _lin_init(ks[1], d_hid, d_hid)
    w3, b3 = _lin_init(ks[2], d_hid, d_out)
    return (w1, b1, w2, b2, w3, b3)


def _decoder_init(key, d_model, d_ff, n_layers):
    per_layer = []
    for l in range(n_layers):
        ks = jax.random.split(jax.random.fold_in(key, l), 6)
        layer = {}
        layer['wq'], layer['bq'] = _lin_init(ks[0], d_model, d_model)
        layer['wk'], layer['bk'] = _lin_init(ks[1], d_model, d_model)
        layer['wv'], layer['bv'] = _lin_init(ks[2], d_model, d_model)
        layer['wo'], layer['bo'] = _lin_init(ks[3], d_model, d_model)
        layer['w1'], layer['b1'] = _lin_init(ks[4], d_model, d_ff)
        layer['w2'], layer['b2'] = _lin_init(ks[5], d_ff, d_model)
        per_layer.append(layer)
    # stack per-layer weights -> [L, ...] so the whole stack runs in ONE pallas_call
    return {k: jnp.stack([p[k] for p in per_layer], axis=0) for k in per_layer[0]}


def build_params(key, *, hidden_dim=32, patch=8, in_chans=3, backbone_chans=16,
                 num_detr_queries=10, num_hoi_queries=8, num_classes=10,
                 num_actions=6, num_dec_layers=2, ff_dim=64, tau=0.05):
    keys = jax.random.split(key, 12)
    P = {}
    P['backbone_w'], P['backbone_b'] = _lin_init(
        keys[0], in_chans * patch * patch, backbone_chans)
    P['input_proj_w'], P['input_proj_b'] = _lin_init(
        keys[1], backbone_chans, hidden_dim)
    P['detr_query'] = 0.05 * jax.random.normal(
        keys[2], (num_detr_queries, hidden_dim), jnp.float32)
    P['hoi_query'] = 0.05 * jax.random.normal(
        keys[3], (num_hoi_queries, hidden_dim), jnp.float32)
    P['detr_dec'] = _decoder_init(keys[4], hidden_dim, ff_dim, num_dec_layers)
    P['int_dec'] = _decoder_init(keys[5], hidden_dim, ff_dim, num_dec_layers)
    P['class_w'], P['class_b'] = _lin_init(keys[6], hidden_dim, num_classes + 1)
    P['bbox_mlp'] = _mlp3_init(keys[7], hidden_dim, hidden_dim, 4)
    P['H_ptr_mlp'] = _mlp3_init(keys[8], hidden_dim, hidden_dim, hidden_dim)
    P['O_ptr_mlp'] = _mlp3_init(keys[9], hidden_dim, hidden_dim, hidden_dim)
    P['action_w'], P['action_b'] = _lin_init(keys[10], hidden_dim, num_actions + 1)
    cfg = dict(hidden_dim=hidden_dim, patch=patch, tau=tau)
    return P, cfg


if __name__ == "__main__":
    key = jax.random.PRNGKey(0)
    k_param, k_data = jax.random.split(key)
    params, cfg = build_params(k_param)
    # samples: NCHW image batch, B=2, 3 channels, 32x32
    samples = jax.random.normal(k_data, (2, 3, 32, 32), jnp.float32)

    out = hotr_forward(params, samples, **cfg)
    out = jax.block_until_ready(out)

    # light sanity checks
    assert out['pred_logits'].shape == (2, 10, 11)
    assert out['pred_boxes'].shape == (2, 10, 4)
    assert out['pred_hidx'].shape == (2, 8, 10)
    assert out['pred_oidx'].shape == (2, 8, 10)
    assert out['pred_actions'].shape == (2, 1, 8, 7)
    assert bool(jnp.all(jnp.isfinite(out['pred_hidx'])))
    assert bool(jnp.all(jnp.isfinite(out['pred_boxes'])))
    print("KERNEL_OK")
</pallas_src>

<mosaic_0001>
module attributes {stable_mosaic.version = 11 : i64} {
  func.func @_stem_kernel(%arg0: i32, %arg1: memref<32x192xf32, #tpu.memory_space<vmem>>, %arg2: memref<192x16xf32, #tpu.memory_space<vmem>>, %arg3: memref<1x16xf32, #tpu.memory_space<vmem>>, %arg4: memref<16x32xf32, #tpu.memory_space<vmem>>, %arg5: memref<1x32xf32, #tpu.memory_space<vmem>>, %arg6: memref<32x32xf32, #tpu.memory_space<vmem>>) attributes {dimension_semantics = [#tpu.dimension_semantics<arbitrary>], iteration_bounds = array<i64: 1>, scalar_prefetch = 0 : i64, scratch_operands = 0 : i64, tpu.core_type = #tpu.core_type<tc>, window_params = [{pipeline_mode = #tpu.pipeline_mode<synchronous>, transform_indices = @transform_0, window_bounds = array<i64: 32, 192>}, {pipeline_mode = #tpu.pipeline_mode<synchronous>, transform_indices = @transform_1, window_bounds = array<i64: 192, 16>}, {pipeline_mode = #tpu.pipeline_mode<synchronous>, transform_indices = @transform_2, window_bounds = array<i64: 1, 16>}, {pipeline_mode = #tpu.pipeline_mode<synchronous>, transform_indices = @transform_3, window_bounds = array<i64: 16, 32>}, {pipeline_mode = #tpu.pipeline_mode<synchronous>, transform_indices = @transform_4, window_bounds = array<i64: 1, 32>}, {pipeline_mode = #tpu.pipeline_mode<synchronous>, transform_indices = @transform_5, window_bounds = array<i64: 32, 32>}]} {
    %c0 = arith.constant 0 : index
    %c0_0 = arith.constant 0 : index
    %0 = vector.load %arg1[%c0, %c0_0] : memref<32x192xf32, #tpu.memory_space<vmem>>, vector<32x192xf32>
    %c0_1 = arith.constant 0 : index
    %c0_2 = arith.constant 0 : index
    %1 = vector.load %arg2[%c0_1, %c0_2] : memref<192x16xf32, #tpu.memory_space<vmem>>, vector<192x16xf32>
    %cst = arith.constant dense<0.000000e+00> : vector<32x16xf32>
    %2 = tpu.matmul %0, %1, %cst {dimension_numbers = #tpu.dot_dimension_numbers<[1], [0], [0], [1], [0, 0, 1, 1], [], []>} : vector<32x192xf32>, vector<192x16xf32>, vector<32x16xf32> -> vector<32x16xf32>
    %c0_3 = arith.constant 0 : index
    %c0_4 = arith.constant 0 : index
    %3 = vector.load %arg3[%c0_3, %c0_4] : memref<1x16xf32, #tpu.memory_space<vmem>>, vector<1x16xf32>
    %4 = vector.broadcast %3 : vector<1x16xf32> to vector<32x16xf32>
    %5 = arith.addf %2, %4 : vector<32x16xf32>
    %c0_5 = arith.constant 0 : index
    %c0_6 = arith.constant 0 : index
    %6 = vector.load %arg4[%c0_5, %c0_6] : memref<16x32xf32, #tpu.memory_space<vmem>>, vector<16x32xf32>
    %cst_7 = arith.constant dense<0.000000e+00> : vector<32x32xf32>
    %7 = tpu.matmul %5, %6, %cst_7 {dimension_numbers = #tpu.dot_dimension_numbers<[1], [0], [0], [1], [0, 0, 1, 1], [], []>} : vector<32x16xf32>, vector<16x32xf32>, vector<32x32xf32> -> vector<32x32xf32>
    %c0_8 = arith.constant 0 : index
    %c0_9 = arith.constant 0 : index
    %8 = vector.load %arg5[%c0_8, %c0_9] : memref<1x32xf32, #tpu.memory_space<vmem>>, vector<1x32xf32>
    %9 = vector.broadcast %8 : vector<1x32xf32> to vector<32x32xf32>
    %10 = arith.addf %7, %9 : vector<32x32xf32>
    %c0_10 = arith.constant 0 : index
    %c0_11 = arith.constant 0 : index
    %11 = vector.load %arg6[%c0_10, %c0_11] : memref<32x32xf32, #tpu.memory_space<vmem>>, vector<32x32xf32>
    tpu.vector_store %arg6[%c0_10, %c0_11], %10 {strides = array<i32>} : memref<32x32xf32, #tpu.memory_space<vmem>>, vector<32x32xf32>,
    return
  }
  func.func @transform_0(%arg0: i32) -> (i32, i32) {
    %c0_i32 = arith.constant 0 : i32
    %c0_i32_0 = arith.constant 0 : i32
    %c0_i32_1 = arith.constant 0 : i32
    return %c0_i32, %c0_i32_0 : i32, i32
  }
  func.func @transform_1(%arg0: i32) -> (i32, i32) {
    %c0_i32 = arith.constant 0 : i32
    %c0_i32_0 = arith.constant 0 : i32
    %c0_i32_1 = arith.constant 0 : i32
    return %c0_i32, %c0_i32_0 : i32, i32
  }
  func.func @transform_2(%arg0: i32) -> (i32, i32) {
    %c0_i32 = arith.constant 0 : i32
    %c0_i32_0 = arith.constant 0 : i32
    %c0_i32_1 = arith.constant 0 : i32
    return %c0_i32, %c0_i32_0 : i32, i32
  }
  func.func @transform_3(%arg0: i32) -> (i32, i32) {
    %c0_i32 = arith.constant 0 : i32
    %c0_i32_0 = arith.constant 0 : i32
    %c0_i32_1 = arith.constant 0 : i32
    return %c0_i32, %c0_i32_0 : i32, i32
  }
  func.func @transform_4(%arg0: i32) -> (i32, i32) {
    %c0_i32 = arith.constant 0 : i32
    %c0_i32_0 = arith.constant 0 : i32
    %c0_i32_1 = arith.constant 0 : i32
    return %c0_i32, %c0_i32_0 : i32, i32
  }
  func.func @transform_5(%arg0: i32) -> (i32, i32) {
    %c0_i32 = arith.constant 0 : i32
    %c0_i32_0 = arith.constant 0 : i32
    %c0_i32_1 = arith.constant 0 : i32
    return %c0_i32, %c0_i32_0 : i32, i32
  }
}

module attributes {stable_mosaic.version = 11 : i64} {
  func.func @kern(%arg0: i32, %arg1: i32, %arg2: memref<10x32xf32, #tpu.memory_space<vmem>>, %arg3: memref<1x16x32xf32, #tpu.memory_space<vmem>>, %arg4: memref<1x16x32xf32, #tpu.memory_space<vmem>>, %arg5: memref<1x1x16xf32, #tpu.memory_space<vmem>>, %arg6: memref<1x32x32xf32, #tpu.memory_space<vmem>>, %arg7: memref<1x1x32xf32, #tpu.memory_space<vmem>>, %arg8: memref<1x32x32xf32, #tpu.memory_space<vmem>>, %arg9: memref<1x1x32xf32, #tpu.memory_space<vmem>>, %arg10: memref<1x32x32xf32, #tpu.memory_space<vmem>>, %arg11: memref<1x1x32xf32, #tpu.memory_space<vmem>>, %arg12: memref<1x32x32xf32, #tpu.memory_space<vmem>>, %arg13: memref<1x1x32xf32, #tpu.memory_space<vmem>>, %arg14: memref<1x32x64xf32, #tpu.memory_space<vmem>>, %arg15: memref<1x1x64xf32, #tpu.memory_space<vmem>>, %arg16: memref<1x64x32xf32, #tpu.memory_space<vmem>>, %arg17: memref<1x1x32xf32, #tpu.memory_space<vmem>>, %arg18: memref<1x10x32xf32, #tpu.memory_space<vmem>>, %arg19: memref<10x32xf32, #tpu.memory_space<vmem>>) attributes {dimension_semantics = [#tpu.dimension_semantics<parallel>, #tpu.dimension_semantics<arbitrary>], iteration_bounds = array<i64: 2, 2>, scalar_prefetch = 0 : i64, scratch_operands = 1 : i64, tpu.core_type = #tpu.core_type<tc>, window_params = [{pipeline_mode = #tpu.pipeline_mode<synchronous>, transform_indices = @transform_0, window_bounds = array<i64: 10, 32>}, {transform_indices = @transform_1, window_bounds = array<i64: 1, 16, 32>}, {transform_indices = @transform_2, window_bounds = array<i64: 1, 16, 32>}, {transform_indices = @transform_3, window_bounds = array<i64: 1, 1, 16>}, {transform_indices = @transform_4, window_bounds = array<i64: 1, 32, 32>}, {transform_indices = @transform_5, window_bounds = array<i64: 1, 1, 32>}, {transform_indices = @transform_6, window_bounds = array<i64: 1, 32, 32>}, {transform_indices = @transform_7, window_bounds = array<i64: 1, 1, 32>}, {transform_indices = @transform_8, window_bounds = array<i64: 1, 32, 32>}, {transform_indices = @transform_9, window_bounds = array<i64: 1, 1, 32>}, {transform_indices = @transform_10, window_bounds = array<i64: 1, 32, 32>}, {transform_indices = @transform_11, window_bounds = array<i64: 1, 1, 32>}, {transform_indices = @transform_12, window_bounds = array<i64: 1, 32, 64>}, {transform_indices = @transform_13, window_bounds = array<i64: 1, 1, 64>}, {transform_indices = @transform_14, window_bounds = array<i64: 1, 64, 32>}, {transform_indices = @transform_15, window_bounds = array<i64: 1, 1, 32>}, {transform_indices = @transform_16, window_bounds = array<i64: 1, 10, 32>}]} {
    %c0_i32 = arith.constant 0 : i32
    %0 = arith.cmpi eq, %arg1, %c0_i32 : i32
    %1 = arith.extui %0 : i1 to i32
    %c0_i32_0 = arith.constant 0 : i32
    %2 = arith.cmpi ne, %1, %c0_i32_0 : i32
    scf.if %2 {
      %cst_63 = arith.constant 0.000000e+00 : f32
      %78 = vector.broadcast %cst_63 : f32 to vector<10x32xf32>
      %c0_64 = arith.constant 0 : index
      %c0_65 = arith.constant 0 : index
      %79 = vector.load %arg19[%c0_64, %c0_65] : memref<10x32xf32, #tpu.memory_space<vmem>>, vector<10x32xf32>
      tpu.vector_store %arg19[%c0_64, %c0_65], %78 {strides = array<i32>} : memref<10x32xf32, #tpu.memory_space<vmem>>, vector<10x32xf32>,
    } else {
    }
    %c0 = arith.constant 0 : index
    %c0_1 = arith.constant 0 : index
    %3 = vector.load %arg19[%c0, %c0_1] : memref<10x32xf32, #tpu.memory_space<vmem>>, vector<10x32xf32>
    %c0_2 = arith.constant 0 : index
    %c0_3 = arith.constant 0 : index
    %c0_4 = arith.constant 0 : index
    %4 = vector.load %arg3[%c0_2, %c0_3, %c0_4] : memref<1x16x32xf32, #tpu.memory_space<vmem>>, vector<1x16x32xf32>
    %5 = vector.shape_cast %4 : vector<1x16x32xf32> to vector<16x32xf32>
    %c0_5 = arith.constant 0 : index
    %c0_6 = arith.constant 0 : index
    %c0_7 = arith.constant 0 : index
    %6 = vector.load %arg4[%c0_5, %c0_6, %c0_7] : memref<1x16x32xf32, #tpu.memory_space<vmem>>, vector<1x16x32xf32>
    %7 = vector.shape_cast %6 : vector<1x16x32xf32> to vector<16x32xf32>
    %c0_8 = arith.constant 0 : index
    %c0_9 = arith.constant 0 : index
    %8 = vector.load %arg2[%c0_8, %c0_9] : memref<10x32xf32, #tpu.memory_space<vmem>>, vector<10x32xf32>
    %9 = arith.addf %3, %8 : vector<10x32xf32>
    %c0_10 = arith.constant 0 : index
    %c0_11 = arith.constant 0 : index
    %c0_12 = arith.constant 0 : index
    %10 = vector.load %arg6[%c0_10, %c0_11, %c0_12] : memref<1x32x32xf32, #tpu.memory_space<vmem>>, vector<1x32x32xf32>
    %11 = vector.shape_cast %10 : vector<1x32x32xf32> to vector<32x32xf32>
    %cst = arith.constant dense<0.000000e+00> : vector<10x32xf32>
    %12 = tpu.matmul %9, %11, %cst {dimension_numbers = #tpu.dot_dimension_numbers<[1], [0], [0], [1], [0, 0, 1, 1], [], []>} : vector<10x32xf32>, vector<32x32xf32>, vector<10x32xf32> -> vector<10x32xf32>
    %c0_13 = arith.constant 0 : index
    %c0_14 = arith.constant 0 : index
    %c0_15 = arith.constant 0 : index
    %13 = vector.load %arg7[%c0_13, %c0_14, %c0_15] : memref<1x1x32xf32, #tpu.memory_space<vmem>>, vector<1x1x32xf32>
    %14 = vector.shape_cast %13 : vector<1x1x32xf32> to vector<1x32xf32>
    %15 = vector.broadcast %14 : vector<1x32xf32> to vector<10x32xf32>
    %16 = arith.addf %12, %15 : vector<10x32xf32>
    %c0_16 = arith.constant 0 : index
    %c0_17 = arith.constant 0 : index
    %c0_18 = arith.constant 0 : index
    %17 = vector.load %arg8[%c0_16, %c0_17, %c0_18] : memref<1x32x32xf32, #tpu.memory_space<vmem>>, vector<1x32x32xf32>
    %18 = vector.shape_cast %17 : vector<1x32x32xf32> to vector<32x32xf32>
    %cst_19 = arith.constant dense<0.000000e+00> : vector<16x32xf32>
    %19 = tpu.matmul %5, %18, %cst_19 {dimension_numbers = #tpu.dot_dimension_numbers<[1], [0], [0], [1], [0, 0, 1, 1], [], []>} : vector<16x32xf32>, vector<32x32xf32>, vector<16x32xf32> -> vector<16x32xf32>
    %c0_20 = arith.constant 0 : index
    %c0_21 = arith.constant 0 : index
    %c0_22 = arith.constant 0 : index
    %20 = vector.load %arg9[%c0_20, %c0_21, %c0_22] : memref<1x1x32xf32, #tpu.memory_space<vmem>>, vector<1x1x32xf32>
    %21 = vector.shape_cast %20 : vector<1x1x32xf32> to vector<1x32xf32>
    %22 = vector.broadcast %21 : vector<1x32xf32> to vector<16x32xf32>
    %23 = arith.addf %19, %22 : vector<16x32xf32>
    %c0_23 = arith.constant 0 : index
    %c0_24 = arith.constant 0 : index
    %c0_25 = arith.constant 0 : index
    %24 = vector.load %arg10[%c0_23, %c0_24, %c0_25] : memref<1x32x32xf32, #tpu.memory_space<vmem>>, vector<1x32x32xf32>
    %25 = vector.shape_cast %24 : vector<1x32x32xf32> to vector<32x32xf32>
    %cst_26 = arith.constant dense<0.000000e+00> : vector<16x32xf32>
    %26 = tpu.matmul %7, %25, %cst_26 {dimension_numbers = #tpu.dot_dimension_numbers<[1], [0], [0], [1], [0, 0, 1, 1], [], []>} : vector<16x32xf32>, vector<32x32xf32>, vector<16x32xf32> -> vector<16x32xf32>
    %c0_27 = arith.constant 0 : index
    %c0_28 = arith.constant 0 : index
    %c0_29 = arith.constant 0 : index
    %27 = vector.load %arg11[%c0_27, %c0_28, %c0_29] : memref<1x1x32xf32, #tpu.memory_space<vmem>>, vector<1x1x32xf32>
    %28 = vector.shape_cast %27 : vector<1x1x32xf32> to vector<1x32xf32>
    %29 = vector.broadcast %28 : vector<1x32xf32> to vector<16x32xf32>
    %30 = arith.addf %26, %29 : vector<16x32xf32>
    %cst_30 = arith.constant dense<0.000000e+00> : vector<10x16xf32>
    %31 = tpu.matmul %16, %23, %cst_30 {dimension_numbers = #tpu.dot_dimension_numbers<[1], [1], [0], [0], [0, 0, 1, 0], [], []>} : vector<10x32xf32>, vector<16x32xf32>, vector<10x16xf32> -> vector<10x16xf32>
    %cst_31 = arith.constant 0.176776692 : f32
    %32 = vector.broadcast %cst_31 : f32 to vector<10x16xf32>
    %33 = arith.mulf %31, %32 : vector<10x16xf32>
    %c0_32 = arith.constant 0 : index
    %c0_33 = arith.constant 0 : index
    %c0_34 = arith.constant 0 : index
    %34 = vector.load %arg5[%c0_32, %c0_33, %c0_34] : memref<1x1x16xf32, #tpu.memory_space<vmem>>, vector<1x1x16xf32>
    %35 = vector.shape_cast %34 : vector<1x1x16xf32> to vector<1x16xf32>
    %36 = vector.broadcast %35 : vector<1x16xf32> to vector<10x16xf32>
    %37 = arith.addf %33, %36 : vector<10x16xf32>
    %cst_35 = arith.constant dense<0xFF800000> : vector<10xf32>
    %38 = vector.multi_reduction <maximumf>, %37, %cst_35 [1] : vector<10x16xf32> to vector<10xf32>
    %39 = vector.shape_cast %38 : vector<10xf32> to vector<10x1xf32>
    %40 = vector.broadcast %39 : vector<10x1xf32> to vector<10x16xf32>
    %41 = arith.subf %37, %40 : vector<10x16xf32>
    %42 = math.exp %41 : vector<10x16xf32>
    %cst_36 = arith.constant dense<0.000000e+00> : vector<10xf32>
    %43 = vector.multi_reduction <add>, %42, %cst_36 [1] : vector<10x16xf32> to vector<10xf32>
    %44 = vector.shape_cast %43 : vector<10xf32> to vector<10x1xf32>
    %45 = tpu.reciprocal %44 {approx = true} : vector<10x1xf32> -> vector<10x1xf32>
    %46 = vector.broadcast %45 : vector<10x1xf32> to vector<10x16xf32>
    %47 = arith.mulf %42, %46 : vector<10x16xf32>
    %cst_37 = arith.constant dense<0.000000e+00> : vector<10x32xf32>
    %48 = tpu.matmul %47, %30, %cst_37 {dimension_numbers = #tpu.dot_dimension_numbers<[1], [0], [0], [1], [0, 0, 1, 1], [], []>} : vector<10x16xf32>, vector<16x32xf32>, vector<10x32xf32> -> vector<10x32xf32>
    %c0_38 = arith.constant 0 : index
    %c0_39 = arith.constant 0 : index
    %c0_40 = arith.constant 0 : index
    %49 = vector.load %arg12[%c0_38, %c0_39, %c0_40] : memref<1x32x32xf32, #tpu.memory_space<vmem>>, vector<1x32x32xf32>
    %50 = vector.shape_cast %49 : vector<1x32x32xf32> to vector<32x32xf32>
    %cst_41 = arith.constant dense<0.000000e+00> : vector<10x32xf32>
    %51 = tpu.matmul %48, %50, %cst_41 {dimension_numbers = #tpu.dot_dimension_numbers<[1], [0], [0], [1], [0, 0, 1, 1], [], []>} : vector<10x32xf32>, vector<32x32xf32>, vector<10x32xf32> -> vector<10x32xf32>
    %52 = arith.addf %3, %51 : vector<10x32xf32>
    %c0_42 = arith.constant 0 : index
    %c0_43 = arith.constant 0 : index
    %c0_44 = arith.constant 0 : index
    %53 = vector.load %arg13[%c0_42, %c0_43, %c0_44] : memref<1x1x32xf32, #tpu.memory_space<vmem>>, vector<1x1x32xf32>
    %54 = vector.shape_cast %53 : vector<1x1x32xf32> to vector<1x32xf32>
    %55 = vector.broadcast %54 : vector<1x32xf32> to vector<10x32xf32>
    %56 = arith.addf %52, %55 : vector<10x32xf32>
    %c0_45 = arith.constant 0 : index
    %c0_46 = arith.constant 0 : index
    %c0_47 = arith.constant 0 : index
    %57 = vector.load %arg14[%c0_45, %c0_46, %c0_47] : memref<1x32x64xf32, #tpu.memory_space<vmem>>, vector<1x32x64xf32>
    %58 = vector.shape_cast %57 : vector<1x32x64xf32> to vector<32x64xf32>
    %cst_48 = arith.constant dense<0.000000e+00> : vector<10x64xf32>
    %59 = tpu.matmul %56, %58, %cst_48 {dimension_numbers = #tpu.dot_dimension_numbers<[1], [0], [0], [1], [0, 0, 1, 1], [], []>} : vector<10x32xf32>, vector<32x64xf32>, vector<10x64xf32> -> vector<10x64xf32>
    %c0_49 = arith.constant 0 : index
    %c0_50 = arith.constant 0 : index
    %c0_51 = arith.constant 0 : index
    %60 = vector.load %arg15[%c0_49, %c0_50, %c0_51] : memref<1x1x64xf32, #tpu.memory_space<vmem>>, vector<1x1x64xf32>
    %61 = vector.shape_cast %60 : vector<1x1x64xf32> to vector<1x64xf32>
    %62 = vector.broadcast %61 : vector<1x64xf32> to vector<10x64xf32>
    %63 = arith.addf %59, %62 : vector<10x64xf32>
    %cst_52 = arith.constant 0.000000e+00 : f32
    %64 = vector.broadcast %cst_52 : f32 to vector<10x64xf32>
    %65 = arith.maximumf %63, %64 : vector<10x64xf32>
    %c0_53 = arith.constant 0 : index
    %c0_54 = arith.constant 0 : index
    %c0_55 = arith.constant 0 : index
    %66 = vector.load %arg16[%c0_53, %c0_54, %c0_55] : memref<1x64x32xf32, #tpu.memory_space<vmem>>, vector<1x64x32xf32>
    %67 = vector.shape_cast %66 : vector<1x64x32xf32> to vector<64x32xf32>
    %cst_56 = arith.constant dense<0.000000e+00> : vector<10x32xf32>
    %68 = tpu.matmul %65, %67, %cst_56 {dimension_numbers = #tpu.dot_dimension_numbers<[1], [0], [0], [1], [0, 0, 1, 1], [], []>} : vector<10x64xf32>, vector<64x32xf32>, vector<10x32xf32> -> vector<10x32xf32>
    %69 = arith.addf %56, %68 : vector<10x32xf32>
    %c0_57 = arith.constant 0 : index
    %c0_58 = arith.constant 0 : index
    %c0_59 = arith.constant 0 : index
    %70 = vector.load %arg17[%c0_57, %c0_58, %c0_59] : memref<1x1x32xf32, #tpu.memory_space<vmem>>, vector<1x1x32xf32>
    %71 = vector.shape_cast %70 : vector<1x1x32xf32> to vector<1x32xf32>
    %72 = vector.broadcast %71 : vector<1x32xf32> to vector<10x32xf32>
    %73 = arith.addf %69, %72 : vector<10x32xf32>
    %c0_60 = arith.constant 0 : index
    %c0_61 = arith.constant 0 : index
    %74 = vector.load %arg19[%c0_60, %c0_61] : memref<10x32xf32, #tpu.memory_space<vmem>>, vector<10x32xf32>
    tpu.vector_store %arg19[%c0_60, %c0_61], %73 {strides = array<i32>} : memref<10x32xf32, #tpu.memory_space<vmem>>, vector<10x32xf32>,
    %c1_i32 = arith.constant 1 : i32
    %75 = arith.cmpi eq, %arg1, %c1_i32 : i32
    %76 = arith.extui %75 : i1 to i32
    %c0_i32_62 = arith.constant 0 : i32
    %77 = arith.cmpi ne, %76, %c0_i32_62 : i32
    scf.if %77 {
      %c0_63 = arith.constant 0 : index
      %c0_64 = arith.constant 0 : index
      %c0_65 = arith.constant 0 : index
      %78 = vector.load %arg18[%c0_63, %c0_64, %c0_65] : memref<1x10x32xf32, #tpu.memory_space<vmem>>, vector<1x10x32xf32>
      %79 = vector.shape_cast %78 : vector<1x10x32xf32> to vector<10x32xf32>
      %80 = vector.shape_cast %73 : vector<10x32xf32> to vector<1x10x32xf32>
      tpu.vector_store %arg18[%c0_63, %c0_64, %c0_65], %80 {strides = array<i32>} : memref<1x10x32xf32, #tpu.memory_space<vmem>>, vector<1x10x32xf32>,
    } else {
    }
    return
  }
  func.func @transform_0(%arg0: i32, %arg1: i32) -> (i32, i32) {
    %c0_i32 = arith.constant 0 : i32
    %c0_i32_0 = arith.constant 0 : i32
    %c0_i32_1 = arith.constant 0 : i32
    return %c0_i32, %c0_i32_0 : i32, i32
  }
  func.func @transform_1(%arg0: i32, %arg1: i32) -> (i32, i32, i32) {
    %c0_i32 = arith.constant 0 : i32
    %c0_i32_0 = arith.constant 0 : i32
    %c0_i32_1 = arith.constant 0 : i32
    return %arg0, %c0_i32, %c0_i32_0 : i32, i32, i32
  }
  func.func @transform_2(%arg0: i32, %arg1: i32) -> (i32, i32, i32) {
    %c0_i32 = arith.constant 0 : i32
    %c0_i32_0 = arith.constant 0 : i32
    %c0_i32_1 = arith.constant 0 : i32
    return %arg0, %c0_i32, %c0_i32_0 : i32, i32, i32
  }
  func.func @transform_3(%arg0: i32, %arg1: i32) -> (i32, i32, i32) {
    %c0_i32 = arith.constant 0 : i32
    %c0_i32_0 = arith.constant 0 : i32
    %c0_i32_1 = arith.constant 0 : i32
    return %arg0, %c0_i32, %c0_i32_0 : i32, i32, i32
  }
  func.func @transform_4(%arg0: i32, %arg1: i32) -> (i32, i32, i32) {
    %c0_i32 = arith.constant 0 : i32
    %c0_i32_0 = arith.constant 0 : i32
    %c0_i32_1 = arith.constant 0 : i32
    return %arg1, %c0_i32, %c0_i32_0 : i32, i32, i32
  }
  func.func @transform_5(%arg0: i32, %arg1: i32) -> (i32, i32, i32) {
    %c0_i32 = arith.constant 0 : i32
    %c0_i32_0 = arith.constant 0 : i32
    %c0_i32_1 = arith.constant 0 : i32
    return %arg1, %c0_i32, %c0_i32_0 : i32, i32, i32
  }
  func.func @transform_6(%arg0: i32, %arg1: i32) -> (i32, i32, i32) {
    %c0_i32 = arith.constant 0 : i32
    %c0_i32_0 = arith.constant 0 : i32
    %c0_i32_1 = arith.constant 0 : i32
    return %arg1, %c0_i32, %c0_i32_0 : i32, i32, i32
  }
  func.func @transform_7(%arg0: i32, %arg1: i32) -> (i32, i32, i32) {
    %c0_i32 = arith.constant 0 : i32
    %c0_i32_0 = arith.constant 0 : i32
    %c0_i32_1 = arith.constant 0 : i32
    return %arg1, %c0_i32, %c0_i32_0 : i32, i32, i32
  }
  func.func @transform_8(%arg0: i32, %arg1: i32) -> (i32, i32, i32) {
    %c0_i32 = arith.constant 0 : i32
    %c0_i32_0 = arith.constant 0 : i32
    %c0_i32_1 = arith.constant 0 : i32
    return %arg1, %c0_i32, %c0_i32_0 : i32, i32, i32
  }
  func.func @transform_9(%arg0: i32, %arg1: i32) -> (i32, i32, i32) {
    %c0_i32 = arith.constant 0 : i32
    %c0_i32_0 = arith.constant 0 : i32
    %c0_i32_1 = arith.constant 0 : i32
    return %arg1, %c0_i32, %c0_i32_0 : i32, i32, i32
  }
  func.func @transform_10(%arg0: i32, %arg1: i32) -> (i32, i32, i32) {
    %c0_i32 = arith.constant 0 : i32
    %c0_i32_0 = arith.constant 0 : i32
    %c0_i32_1 = arith.constant 0 : i32
    return %arg1, %c0_i32, %c0_i32_0 : i32, i32, i32
  }
  func.func @transform_11(%arg0: i32, %arg1: i32) -> (i32, i32, i32) {
    %c0_i32 = arith.constant 0 : i32
    %c0_i32_0 = arith.constant 0 : i32
    %c0_i32_1 = arith.constant 0 : i32
    return %arg1, %c0_i32, %c0_i32_0 : i32, i32, i32
  }
  func.func @transform_12(%arg0: i32, %arg1: i32) -> (i32, i32, i32) {
    %c0_i32 = arith.constant 0 : i32
    %c0_i32_0 = arith.constant 0 : i32
    %c0_i32_1 = arith.constant 0 : i32
    return %arg1, %c0_i32, %c0_i32_0 : i32, i32, i32
  }
  func.func @transform_13(%arg0: i32, %arg1: i32) -> (i32, i32, i32) {
    %c0_i32 = arith.constant 0 : i32
    %c0_i32_0 = arith.constant 0 : i32
    %c0_i32_1 = arith.constant 0 : i32
    return %arg1, %c0_i32, %c0_i32_0 : i32, i32, i32
  }
  func.func @transform_14(%arg0: i32, %arg1: i32) -> (i32, i32, i32) {
    %c0_i32 = arith.constant 0 : i32
    %c0_i32_0 = arith.constant 0 : i32
    %c0_i32_1 = arith.constant 0 : i32
    return %arg1, %c0_i32, %c0_i32_0 : i32, i32, i32
  }
  func.func @transform_15(%arg0: i32, %arg1: i32) -> (i32, i32, i32) {
    %c0_i32 = arith.constant 0 : i32
    %c0_i32_0 = arith.constant 0 : i32
    %c0_i32_1 = arith.constant 0 : i32
    return %arg1, %c0_i32, %c0_i32_0 : i32, i32, i32
  }
  func.func @transform_16(%arg0: i32, %arg1: i32) -> (i32, i32, i32) {
    %c0_i32 = arith.constant 0 : i32
    %c0_i32_0 = arith.constant 0 : i32
    %c0_i32_1 = arith.constant 0 : i32
    return %arg0, %c0_i32, %c0_i32_0 : i32, i32, i32
  }
}

module attributes {stable_mosaic.version = 11 : i64} {
  func.func @kern(%arg0: i32, %arg1: i32, %arg2: memref<8x32xf32, #tpu.memory_space<vmem>>, %arg3: memref<1x16x32xf32, #tpu.memory_space<vmem>>, %arg4: memref<1x16x32xf32, #tpu.memory_space<vmem>>, %arg5: memref<1x1x16xf32, #tpu.memory_space<vmem>>, %arg6: memref<1x32x32xf32, #tpu.memory_space<vmem>>, %arg7: memref<1x1x32xf32, #tpu.memory_space<vmem>>, %arg8: memref<1x32x32xf32, #tpu.memory_space<vmem>>, %arg9: memref<1x1x32xf32, #tpu.memory_space<vmem>>, %arg10: memref<1x32x32xf32, #tpu.memory_space<vmem>>, %arg11: memref<1x1x32xf32, #tpu.memory_space<vmem>>, %arg12: memref<1x32x32xf32, #tpu.memory_space<vmem>>, %arg13: memref<1x1x32xf32, #tpu.memory_space<vmem>>, %arg14: memref<1x32x64xf32, #tpu.memory_space<vmem>>, %arg15: memref<1x1x64xf32, #tpu.memory_space<vmem>>, %arg16: memref<1x64x32xf32, #tpu.memory_space<vmem>>, %arg17: memref<1x1x32xf32, #tpu.memory_space<vmem>>, %arg18: memref<1x8x32xf32, #tpu.memory_space<vmem>>, %arg19: memref<8x32xf32, #tpu.memory_space<vmem>>) attributes {dimension_semantics = [#tpu.dimension_semantics<parallel>, #tpu.dimension_semantics<arbitrary>], iteration_bounds = array<i64: 2, 2>, scalar_prefetch = 0 : i64, scratch_operands = 1 : i64, tpu.core_type = #tpu.core_type<tc>, window_params = [{pipeline_mode = #tpu.pipeline_mode<synchronous>, transform_indices = @transform_0, window_bounds = array<i64: 8, 32>}, {transform_indices = @transform_1, window_bounds = array<i64: 1, 16, 32>}, {transform_indices = @transform_2, window_bounds = array<i64: 1, 16, 32>}, {transform_indices = @transform_3, window_bounds = array<i64: 1, 1, 16>}, {transform_indices = @transform_4, window_bounds = array<i64: 1, 32, 32>}, {transform_indices = @transform_5, window_bounds = array<i64: 1, 1, 32>}, {transform_indices = @transform_6, window_bounds = array<i64: 1, 32, 32>}, {transform_indices = @transform_7, window_bounds = array<i64: 1, 1, 32>}, {transform_indices = @transform_8, window_bounds = array<i64: 1, 32, 32>}, {transform_indices = @transform_9, window_bounds = array<i64: 1, 1, 32>}, {transform_indices = @transform_10, window_bounds = array<i64: 1, 32, 32>}, {transform_indices = @transform_11, window_bounds = array<i64: 1, 1, 32>}, {transform_indices = @transform_12, window_bounds = array<i64: 1, 32, 64>}, {transform_indices = @transform_13, window_bounds = array<i64: 1, 1, 64>}, {transform_indices = @transform_14, window_bounds = array<i64: 1, 64, 32>}, {transform_indices = @transform_15, window_bounds = array<i64: 1, 1, 32>}, {transform_indices = @transform_16, window_bounds = array<i64: 1, 8, 32>}]} {
    %c0_i32 = arith.constant 0 : i32
    %0 = arith.cmpi eq, %arg1, %c0_i32 : i32
    %1 = arith.extui %0 : i1 to i32
    %c0_i32_0 = arith.constant 0 : i32
    %2 = arith.cmpi ne, %1, %c0_i32_0 : i32
    scf.if %2 {
      %cst_63 = arith.constant 0.000000e+00 : f32
      %78 = vector.broadcast %cst_63 : f32 to vector<8x32xf32>
      %c0_64 = arith.constant 0 : index
      %c0_65 = arith.constant 0 : index
      %79 = vector.load %arg19[%c0_64, %c0_65] : memref<8x32xf32, #tpu.memory_space<vmem>>, vector<8x32xf32>
      tpu.vector_store %arg19[%c0_64, %c0_65], %78 {strides = array<i32>} : memref<8x32xf32, #tpu.memory_space<vmem>>, vector<8x32xf32>,
    } else {
    }
    %c0 = arith.constant 0 : index
    %c0_1 = arith.constant 0 : index
    %3 = vector.load %arg19[%c0, %c0_1] : memref<8x32xf32, #tpu.memory_space<vmem>>, vector<8x32xf32>
    %c0_2 = arith.constant 0 : index
    %c0_3 = arith.constant 0 : index
    %c0_4 = arith.constant 0 : index
    %4 = vector.load %arg3[%c0_2, %c0_3, %c0_4] : memref<1x16x32xf32, #tpu.memory_space<vmem>>, vector<1x16x32xf32>
    %5 = vector.shape_cast %4 : vector<1x16x32xf32> to vector<16x32xf32>
    %c0_5 = arith.constant 0 : index
    %c0_6 = arith.constant 0 : index
    %c0_7 = arith.constant 0 : index
    %6 = vector.load %arg4[%c0_5, %c0_6, %c0_7] : memref<1x16x32xf32, #tpu.memory_space<vmem>>, vector<1x16x32xf32>
    %7 = vector.shape_cast %6 : vector<1x16x32xf32> to vector<16x32xf32>
    %c0_8 = arith.constant 0 : index
    %c0_9 = arith.constant 0 : index
    %8 = vector.load %arg2[%c0_8, %c0_9] : memref<8x32xf32, #tpu.memory_space<vmem>>, vector<8x32xf32>
    %9 = arith.addf %3, %8 : vector<8x32xf32>
    %c0_10 = arith.constant 0 : index
    %c0_11 = arith.constant 0 : index
    %c0_12 = arith.constant 0 : index
    %10 = vector.load %arg6[%c0_10, %c0_11, %c0_12] : memref<1x32x32xf32, #tpu.memory_space<vmem>>, vector<1x32x32xf32>
    %11 = vector.shape_cast %10 : vector<1x32x32xf32> to vector<32x32xf32>
    %cst = arith.constant dense<0.000000e+00> : vector<8x32xf32>
    %12 = tpu.matmul %9, %11, %cst {dimension_numbers = #tpu.dot_dimension_numbers<[1], [0], [0], [1], [0, 0, 1, 1], [], []>} : vector<8x32xf32>, vector<32x32xf32>, vector<8x32xf32> -> vector<8x32xf32>
    %c0_13 = arith.constant 0 : index
    %c0_14 = arith.constant 0 : index
    %c0_15 = arith.constant 0 : index
    %13 = vector.load %arg7[%c0_13, %c0_14, %c0_15] : memref<1x1x32xf32, #tpu.memory_space<vmem>>, vector<1x1x32xf32>
    %14 = vector.shape_cast %13 : vector<1x1x32xf32> to vector<1x32xf32>
    %15 = vector.broadcast %14 : vector<1x32xf32> to vector<8x32xf32>
    %16 = arith.addf %12, %15 : vector<8x32xf32>
    %c0_16 = arith.constant 0 : index
    %c0_17 = arith.constant 0 : index
    %c0_18 = arith.constant 0 : index
    %17 = vector.load %arg8[%c0_16, %c0_17, %c0_18] : memref<1x32x32xf32, #tpu.memory_space<vmem>>, vector<1x32x32xf32>
    %18 = vector.shape_cast %17 : vector<1x32x32xf32> to vector<32x32xf32>
    %cst_19 = arith.constant dense<0.000000e+00> : vector<16x32xf32>
    %19 = tpu.matmul %5, %18, %cst_19 {dimension_numbers = #tpu.dot_dimension_numbers<[1], [0], [0], [1], [0, 0, 1, 1], [], []>} : vector<16x32xf32>, vector<32x32xf32>, vector<16x32xf32> -> vector<16x32xf32>
    %c0_20 = arith.constant 0 : index
    %c0_21 = arith.constant 0 : index
    %c0_22 = arith.constant 0 : index
    %20 = vector.load %arg9[%c0_20, %c0_21, %c0_22] : memref<1x1x32xf32, #tpu.memory_space<vmem>>, vector<1x1x32xf32>
    %21 = vector.shape_cast %20 : vector<1x1x32xf32> to vector<1x32xf32>
    %22 = vector.broadcast %21 : vector<1x32xf32> to vector<16x32xf32>
    %23 = arith.addf %19, %22 : vector<16x32xf32>
    %c0_23 = arith.constant 0 : index
    %c0_24 = arith.constant 0 : index
    %c0_25 = arith.constant 0 : index
    %24 = vector.load %arg10[%c0_23, %c0_24, %c0_25] : memref<1x32x32xf32, #tpu.memory_space<vmem>>, vector<1x32x32xf32>
    %25 = vector.shape_cast %24 : vector<1x32x32xf32> to vector<32x32xf32>
    %cst_26 = arith.constant dense<0.000000e+00> : vector<16x32xf32>
    %26 = tpu.matmul %7, %25, %cst_26 {dimension_numbers = #tpu.dot_dimension_numbers<[1], [0], [0], [1], [0, 0, 1, 1], [], []>} : vector<16x32xf32>, vector<32x32xf32>, vector<16x32xf32> -> vector<16x32xf32>
    %c0_27 = arith.constant 0 : index
    %c0_28 = arith.constant 0 : index
    %c0_29 = arith.constant 0 : index
    %27 = vector.load %arg11[%c0_27, %c0_28, %c0_29] : memref<1x1x32xf32, #tpu.memory_space<vmem>>, vector<1x1x32xf32>
    %28 = vector.shape_cast %27 : vector<1x1x32xf32> to vector<1x32xf32>
    %29 = vector.broadcast %28 : vector<1x32xf32> to vector<16x32xf32>
    %30 = arith.addf %26, %29 : vector<16x32xf32>
    %cst_30 = arith.constant dense<0.000000e+00> : vector<8x16xf32>
    %31 = tpu.matmul %16, %23, %cst_30 {dimension_numbers = #tpu.dot_dimension_numbers<[1], [1], [0], [0], [0, 0, 1, 0], [], []>} : vector<8x32xf32>, vector<16x32xf32>, vector<8x16xf32> -> vector<8x16xf32>
    %cst_31 = arith.constant 0.176776692 : f32
    %32 = vector.broadcast %cst_31 : f32 to vector<8x16xf32>
    %33 = arith.mulf %31, %32 : vector<8x16xf32>
    %c0_32 = arith.constant 0 : index
    %c0_33 = arith.constant 0 : index
    %c0_34 = arith.constant 0 : index
    %34 = vector.load %arg5[%c0_32, %c0_33, %c0_34] : memref<1x1x16xf32, #tpu.memory_space<vmem>>, vector<1x1x16xf32>
    %35 = vector.shape_cast %34 : vector<1x1x16xf32> to vector<1x16xf32>
    %36 = vector.broadcast %35 : vector<1x16xf32> to vector<8x16xf32>
    %37 = arith.addf %33, %36 : vector<8x16xf32>
    %cst_35 = arith.constant dense<0xFF800000> : vector<8xf32>
    %38 = vector.multi_reduction <maximumf>, %37, %cst_35 [1] : vector<8x16xf32> to vector<8xf32>
    %39 = vector.shape_cast %38 : vector<8xf32> to vector<8x1xf32>
    %40 = vector.broadcast %39 : vector<8x1xf32> to vector<8x16xf32>
    %41 = arith.subf %37, %40 : vector<8x16xf32>
    %42 = math.exp %41 : vector<8x16xf32>
    %cst_36 = arith.constant dense<0.000000e+00> : vector<8xf32>
    %43 = vector.multi_reduction <add>, %42, %cst_36 [1] : vector<8x16xf32> to vector<8xf32>
    %44 = vector.shape_cast %43 : vector<8xf32> to vector<8x1xf32>
    %45 = tpu.reciprocal %44 {approx = true} : vector<8x1xf32> -> vector<8x1xf32>
    %46 = vector.broadcast %45 : vector<8x1xf32> to vector<8x16xf32>
    %47 = arith.mulf %42, %46 : vector<8x16xf32>
    %cst_37 = arith.constant dense<0.000000e+00> : vector<8x32xf32>
    %48 = tpu.matmul %47, %30, %cst_37 {dimension_numbers = #tpu.dot_dimension_numbers<[1], [0], [0], [1], [0, 0, 1, 1], [], []>} : vector<8x16xf32>, vector<16x32xf32>, vector<8x32xf32> -> vector<8x32xf32>
    %c0_38 = arith.constant 0 : index
    %c0_39 = arith.constant 0 : index
    %c0_40 = arith.constant 0 : index
    %49 = vector.load %arg12[%c0_38, %c0_39, %c0_40] : memref<1x32x32xf32, #tpu.memory_space<vmem>>, vector<1x32x32xf32>
    %50 = vector.shape_cast %49 : vector<1x32x32xf32> to vector<32x32xf32>
    %cst_41 = arith.constant dense<0.000000e+00> : vector<8x32xf32>
    %51 = tpu.matmul %48, %50, %cst_41 {dimension_numbers = #tpu.dot_dimension_numbers<[1], [0], [0], [1], [0, 0, 1, 1], [], []>} : vector<8x32xf32>, vector<32x32xf32>, vector<8x32xf32> -> vector<8x32xf32>
    %52 = arith.addf %3, %51 : vector<8x32xf32>
    %c0_42 = arith.constant 0 : index
    %c0_43 = arith.constant 0 : index
    %c0_44 = arith.constant 0 : index
    %53 = vector.load %arg13[%c0_42, %c0_43, %c0_44] : memref<1x1x32xf32, #tpu.memory_space<vmem>>, vector<1x1x32xf32>
    %54 = vector.shape_cast %53 : vector<1x1x32xf32> to vector<1x32xf32>
    %55 = vector.broadcast %54 : vector<1x32xf32> to vector<8x32xf32>
    %56 = arith.addf %52, %55 : vector<8x32xf32>
    %c0_45 = arith.constant 0 : index
    %c0_46 = arith.constant 0 : index
    %c0_47 = arith.constant 0 : index
    %57 = vector.load %arg14[%c0_45, %c0_46, %c0_47] : memref<1x32x64xf32, #tpu.memory_space<vmem>>, vector<1x32x64xf32>
    %58 = vector.shape_cast %57 : vector<1x32x64xf32> to vector<32x64xf32>
    %cst_48 = arith.constant dense<0.000000e+00> : vector<8x64xf32>
    %59 = tpu.matmul %56, %58, %cst_48 {dimension_numbers = #tpu.dot_dimension_numbers<[1], [0], [0], [1], [0, 0, 1, 1], [], []>} : vector<8x32xf32>, vector<32x64xf32>, vector<8x64xf32> -> vector<8x64xf32>
    %c0_49 = arith.constant 0 : index
    %c0_50 = arith.constant 0 : index
    %c0_51 = arith.constant 0 : index
    %60 = vector.load %arg15[%c0_49, %c0_50, %c0_51] : memref<1x1x64xf32, #tpu.memory_space<vmem>>, vector<1x1x64xf32>
    %61 = vector.shape_cast %60 : vector<1x1x64xf32> to vector<1x64xf32>
    %62 = vector.broadcast %61 : vector<1x64xf32> to vector<8x64xf32>
    %63 = arith.addf %59, %62 : vector<8x64xf32>
    %cst_52 = arith.constant 0.000000e+00 : f32
    %64 = vector.broadcast %cst_52 : f32 to vector<8x64xf32>
    %65 = arith.maximumf %63, %64 : vector<8x64xf32>
    %c0_53 = arith.constant 0 : index
    %c0_54 = arith.constant 0 : index
    %c0_55 = arith.constant 0 : index
    %66 = vector.load %arg16[%c0_53, %c0_54, %c0_55] : memref<1x64x32xf32, #tpu.memory_space<vmem>>, vector<1x64x32xf32>
    %67 = vector.shape_cast %66 : vector<1x64x32xf32> to vector<64x32xf32>
    %cst_56 = arith.constant dense<0.000000e+00> : vector<8x32xf32>
    %68 = tpu.matmul %65, %67, %cst_56 {dimension_numbers = #tpu.dot_dimension_numbers<[1], [0], [0], [1], [0, 0, 1, 1], [], []>} : vector<8x64xf32>, vector<64x32xf32>, vector<8x32xf32> -> vector<8x32xf32>
    %69 = arith.addf %56, %68 : vector<8x32xf32>
    %c0_57 = arith.constant 0 : index
    %c0_58 = arith.constant 0 : index
    %c0_59 = arith.constant 0 : index
    %70 = vector.load %arg17[%c0_57, %c0_58, %c0_59] : memref<1x1x32xf32, #tpu.memory_space<vmem>>, vector<1x1x32xf32>
    %71 = vector.shape_cast %70 : vector<1x1x32xf32> to vector<1x32xf32>
    %72 = vector.broadcast %71 : vector<1x32xf32> to vector<8x32xf32>
    %73 = arith.addf %69, %72 : vector<8x32xf32>
    %c0_60 = arith.constant 0 : index
    %c0_61 = arith.constant 0 : index
    %74 = vector.load %arg19[%c0_60, %c0_61] : memref<8x32xf32, #tpu.memory_space<vmem>>, vector<8x32xf32>
    tpu.vector_store %arg19[%c0_60, %c0_61], %73 {strides = array<i32>} : memref<8x32xf32, #tpu.memory_space<vmem>>, vector<8x32xf32>,
    %c1_i32 = arith.constant 1 : i32
    %75 = arith.cmpi eq, %arg1, %c1_i32 : i32
    %76 = arith.extui %75 : i1 to i32
    %c0_i32_62 = arith.constant 0 : i32
    %77 = arith.cmpi ne, %76, %c0_i32_62 : i32
    scf.if %77 {
      %c0_63 = arith.constant 0 : index
      %c0_64 = arith.constant 0 : index
      %c0_65 = arith.constant 0 : index
      %78 = vector.load %arg18[%c0_63, %c0_64, %c0_65] : memref<1x8x32xf32, #tpu.memory_space<vmem>>, vector<1x8x32xf32>
      %79 = vector.shape_cast %78 : vector<1x8x32xf32> to vector<8x32xf32>
      %80 = vector.shape_cast %73 : vector<8x32xf32> to vector<1x8x32xf32>
      tpu.vector_store %arg18[%c0_63, %c0_64, %c0_65], %80 {strides = array<i32>} : memref<1x8x32xf32, #tpu.memory_space<vmem>>, vector<1x8x32xf32>,
    } else {
    }
    return
  }
  func.func @transform_0(%arg0: i32, %arg1: i32) -> (i32, i32) {
    %c0_i32 = arith.constant 0 : i32
    %c0_i32_0 = arith.constant 0 : i32
    %c0_i32_1 = arith.constant 0 : i32
    return %c0_i32, %c0_i32_0 : i32, i32
  }
  func.func @transform_1(%arg0: i32, %arg1: i32) -> (i32, i32, i32) {
    %c0_i32 = arith.constant 0 : i32
    %c0_i32_0 = arith.constant 0 : i32
    %c0_i32_1 = arith.constant 0 : i32
    return %arg0, %c0_i32, %c0_i32_0 : i32, i32, i32
  }
  func.func @transform_2(%arg0: i32, %arg1: i32) -> (i32, i32, i32) {
    %c0_i32 = arith.constant 0 : i32
    %c0_i32_0 = arith.constant 0 : i32
    %c0_i32_1 = arith.constant 0 : i32
    return %arg0, %c0_i32, %c0_i32_0 : i32, i32, i32
  }
  func.func @transform_3(%arg0: i32, %arg1: i32) -> (i32, i32, i32) {
    %c0_i32 = arith.constant 0 : i32
    %c0_i32_0 = arith.constant 0 : i32
    %c0_i32_1 = arith.constant 0 : i32
    return %arg0, %c0_i32, %c0_i32_0 : i32, i32, i32
  }
  func.func @transform_4(%arg0: i32, %arg1: i32) -> (i32, i32, i32) {
    %c0_i32 = arith.constant 0 : i32
    %c0_i32_0 = arith.constant 0 : i32
    %c0_i32_1 = arith.constant 0 : i32
    return %arg1, %c0_i32, %c0_i32_0 : i32, i32, i32
  }
  func.func @transform_5(%arg0: i32, %arg1: i32) -> (i32, i32, i32) {
    %c0_i32 = arith.constant 0 : i32
    %c0_i32_0 = arith.constant 0 : i32
    %c0_i32_1 = arith.constant 0 : i32
    return %arg1, %c0_i32, %c0_i32_0 : i32, i32, i32
  }
  func.func @transform_6(%arg0: i32, %arg1: i32) -> (i32, i32, i32) {
    %c0_i32 = arith.constant 0 : i32
    %c0_i32_0 = arith.constant 0 : i32
    %c0_i32_1 = arith.constant 0 : i32
    return %arg1, %c0_i32, %c0_i32_0 : i32, i32, i32
  }
  func.func @transform_7(%arg0: i32, %arg1: i32) -> (i32, i32, i32) {
    %c0_i32 = arith.constant 0 : i32
    %c0_i32_0 = arith.constant 0 : i32
    %c0_i32_1 = arith.constant 0 : i32
    return %arg1, %c0_i32, %c0_i32_0 : i32, i32, i32
  }
  func.func @transform_8(%arg0: i32, %arg1: i32) -> (i32, i32, i32) {
    %c0_i32 = arith.constant 0 : i32
    %c0_i32_0 = arith.constant 0 : i32
    %c0_i32_1 = arith.constant 0 : i32
    return %arg1, %c0_i32, %c0_i32_0 : i32, i32, i32
  }
  func.func @transform_9(%arg0: i32, %arg1: i32) -> (i32, i32, i32) {
    %c0_i32 = arith.constant 0 : i32
    %c0_i32_0 = arith.constant 0 : i32
    %c0_i32_1 = arith.constant 0 : i32
    return %arg1, %c0_i32, %c0_i32_0 : i32, i32, i32
  }
  func.func @transform_10(%arg0: i32, %arg1: i32) -> (i32, i32, i32) {
    %c0_i32 = arith.constant 0 : i32
    %c0_i32_0 = arith.constant 0 : i32
    %c0_i32_1 = arith.constant 0 : i32
    return %arg1, %c0_i32, %c0_i32_0 : i32, i32, i32
  }
  func.func @transform_11(%arg0: i32, %arg1: i32) -> (i32, i32, i32) {
    %c0_i32 = arith.constant 0 : i32
    %c0_i32_0 = arith.constant 0 : i32
    %c0_i32_1 = arith.constant 0 : i32
    return %arg1, %c0_i32, %c0_i32_0 : i32, i32, i32
  }
  func.func @transform_12(%arg0: i32, %arg1: i32) -> (i32, i32, i32) {
    %c0_i32 = arith.constant 0 : i32
    %c0_i32_0 = arith.constant 0 : i32
    %c0_i32_1 = arith.constant 0 : i32
    return %arg1, %c0_i32, %c0_i32_0 : i32, i32, i32
  }
  func.func @transform_13(%arg0: i32, %arg1: i32) -> (i32, i32, i32) {
    %c0_i32 = arith.constant 0 : i32
    %c0_i32_0 = arith.constant 0 : i32
    %c0_i32_1 = arith.constant 0 : i32
    return %arg1, %c0_i32, %c0_i32_0 : i32, i32, i32
  }
  func.func @transform_14(%arg0: i32, %arg1: i32) -> (i32, i32, i32) {
    %c0_i32 = arith.constant 0 : i32
    %c0_i32_0 = arith.constant 0 : i32
    %c0_i32_1 = arith.constant 0 : i32
    return %arg1, %c0_i32, %c0_i32_0 : i32, i32, i32
  }
  func.func @transform_15(%arg0: i32, %arg1: i32) -> (i32, i32, i32) {
    %c0_i32 = arith.constant 0 : i32
    %c0_i32_0 = arith.constant 0 : i32
    %c0_i32_1 = arith.constant 0 : i32
    return %arg1, %c0_i32, %c0_i32_0 : i32, i32, i32
  }
  func.func @transform_16(%arg0: i32, %arg1: i32) -> (i32, i32, i32) {
    %c0_i32 = arith.constant 0 : i32
    %c0_i32_0 = arith.constant 0 : i32
    %c0_i32_1 = arith.constant 0 : i32
    return %arg0, %c0_i32, %c0_i32_0 : i32, i32, i32
  }
}

module attributes {stable_mosaic.version = 11 : i64} {
  func.func @kern(%arg0: i32, %arg1: memref<20x32xf32, #tpu.memory_space<vmem>>, %arg2: memref<16x32xf32, #tpu.memory_space<vmem>>, %arg3: memref<32x43xf32, #tpu.memory_space<vmem>>, %arg4: memref<1x43xf32, #tpu.memory_space<vmem>>, %arg5: memref<32x32xf32, #tpu.memory_space<vmem>>, %arg6: memref<1x32xf32, #tpu.memory_space<vmem>>, %arg7: memref<32x4xf32, #tpu.memory_space<vmem>>, %arg8: memref<1x4xf32, #tpu.memory_space<vmem>>, %arg9: memref<32x71xf32, #tpu.memory_space<vmem>>, %arg10: memref<1x71xf32, #tpu.memory_space<vmem>>, %arg11: memref<32x32xf32, #tpu.memory_space<vmem>>, %arg12: memref<1x32xf32, #tpu.memory_space<vmem>>, %arg13: memref<32x32xf32, #tpu.memory_space<vmem>>, %arg14: memref<1x32xf32, #tpu.memory_space<vmem>>, %arg15: memref<32x32xf32, #tpu.memory_space<vmem>>, %arg16: memref<1x32xf32, #tpu.memory_space<vmem>>, %arg17: memref<32x32xf32, #tpu.memory_space<vmem>>, %arg18: memref<1x32xf32, #tpu.memory_space<vmem>>, %arg19: memref<20x11xf32, #tpu.memory_space<vmem>>, %arg20: memref<20x4xf32, #tpu.memory_space<vmem>>, %arg21: memref<2x8x10xf32, #tpu.memory_space<vmem>>, %arg22: memref<2x8x10xf32, #tpu.memory_space<vmem>>, %arg23: memref<16x7xf32, #tpu.memory_space<vmem>>) attributes {dimension_semantics = [#tpu.dimension_semantics<arbitrary>], iteration_bounds = array<i64: 1>, scalar_prefetch = 0 : i64, scratch_operands = 0 : i64, tpu.core_type = #tpu.core_type<tc>, window_params = [{pipeline_mode = #tpu.pipeline_mode<synchronous>, transform_indices = @transform_0, window_bounds = array<i64: 20, 32>}, {pipeline_mode = #tpu.pipeline_mode<synchronous>, transform_indices = @transform_1, window_bounds = array<i64: 16, 32>}, {pipeline_mode = #tpu.pipeline_mode<synchronous>, transform_indices = @transform_2, window_bounds = array<i64: 32, 43>}, {pipeline_mode = #tpu.pipeline_mode<synchronous>, transform_indices = @transform_3, window_bounds = array<i64: 1, 43>}, {pipeline_mode = #tpu.pipeline_mode<synchronous>, transform_indices = @transform_4, window_bounds = array<i64: 32, 32>}, {pipeline_mode = #tpu.pipeline_mode<synchronous>, transform_indices = @transform_5, window_bounds = array<i64: 1, 32>}, {pipeline_mode = #tpu.pipeline_mode<synchronous>, transform_indices = @transform_6, window_bounds = array<i64: 32, 4>}, {pipeline_mode = #tpu.pipeline_mode<synchronous>, transform_indices = @transform_7, window_bounds = array<i64: 1, 4>}, {pipeline_mode = #tpu.pipeline_mode<synchronous>, transform_indices = @transform_8, window_bounds = array<i64: 32, 71>}, {pipeline_mode = #tpu.pipeline_mode<synchronous>, transform_indices = @transform_9, window_bounds = array<i64: 1, 71>}, {pipeline_mode = #tpu.pipeline_mode<synchronous>, transform_indices = @transform_10, window_bounds = array<i64: 32, 32>}, {pipeline_mode = #tpu.pipeline_mode<synchronous>, transform_indices = @transform_11, window_bounds = array<i64: 1, 32>}, {pipeline_mode = #tpu.pipeline_mode<synchronous>, transform_indices = @transform_12, window_bounds = array<i64: 32, 32>}, {pipeline_mode = #tpu.pipeline_mode<synchronous>, transform_indices = @transform_13, window_bounds = array<i64: 1, 32>}, {pipeline_mode = #tpu.pipeline_mode<synchronous>, transform_indices = @transform_14, window_bounds = array<i64: 32, 32>}, {pipeline_mode = #tpu.pipeline_mode<synchronous>, transform_indices = @transform_15, window_bounds = array<i64: 1, 32>}, {pipeline_mode = #tpu.pipeline_mode<synchronous>, transform_indices = @transform_16, window_bounds = array<i64: 32, 32>}, {pipeline_mode = #tpu.pipeline_mode<synchronous>, transform_indices = @transform_17, window_bounds = array<i64: 1, 32>}, {pipeline_mode = #tpu.pipeline_mode<synchronous>, transform_indices = @transform_18, window_bounds = array<i64: 20, 11>}, {pipeline_mode = #tpu.pipeline_mode<synchronous>, transform_indices = @transform_19, window_bounds = array<i64: 20, 4>}, {pipeline_mode = #tpu.pipeline_mode<synchronous>, transform_indices = @transform_20, window_bounds = array<i64: 2, 8, 10>}, {pipeline_mode = #tpu.pipeline_mode<synchronous>, transform_indices = @transform_21, window_bounds = array<i64: 2, 8, 10>}, {pipeline_mode = #tpu.pipeline_mode<synchronous>, transform_indices = @transform_22, window_bounds = array<i64: 16, 7>}]} {
    %c0 = arith.constant 0 : index
    %c0_0 = arith.constant 0 : index
    %0 = vector.load %arg1[%c0, %c0_0] : memref<20x32xf32, #tpu.memory_space<vmem>>, vector<20x32xf32>
    %c0_1 = arith.constant 0 : index
    %c0_2 = arith.constant 0 : index
    %1 = vector.load %arg2[%c0_1, %c0_2] : memref<16x32xf32, #tpu.memory_space<vmem>>, vector<16x32xf32>
    %2 = arith.mulf %0, %0 : vector<20x32xf32>
    %cst = arith.constant dense<0.000000e+00> : vector<20xf32>
    %3 = vector.multi_reduction <add>, %2, %cst [1] : vector<20x32xf32> to vector<20xf32>
    %4 = vector.shape_cast %3 : vector<20xf32> to vector<20x1xf32>
    %cst_3 = arith.constant 1.000000e-24 : f32
    %5 = vector.broadcast %cst_3 : f32 to vector<20x1xf32>
    %6 = arith.maximumf %4, %5 : vector<20x1xf32>
    %7 = math.rsqrt %6 : vector<20x1xf32>
    %8 = vector.broadcast %7 : vector<20x1xf32> to vector<20x32xf32>
    %9 = arith.mulf %0, %8 : vector<20x32xf32>
    %c0_4 = arith.constant 0 : index
    %c0_5 = arith.constant 0 : index
    %10 = vector.load %arg3[%c0_4, %c0_5] : memref<32x43xf32, #tpu.memory_space<vmem>>, vector<32x43xf32>
    %cst_6 = arith.constant dense<0.000000e+00> : vector<20x43xf32>
    %11 = tpu.matmul %0, %10, %cst_6 {dimension_numbers = #tpu.dot_dimension_numbers<[1], [0], [0], [1], [0, 0, 1, 1], [], []>} : vector<20x32xf32>, vector<32x43xf32>, vector<20x43xf32> -> vector<20x43xf32>
    %c0_7 = arith.constant 0 : index
    %c0_8 = arith.constant 0 : index
    %12 = vector.load %arg4[%c0_7, %c0_8] : memref<1x43xf32, #tpu.memory_space<vmem>>, vector<1x43xf32>
    %13 = vector.broadcast %12 : vector<1x43xf32> to vector<20x43xf32>
    %14 = arith.addf %11, %13 : vector<20x43xf32>
    %15 = vector.extract_strided_slice %14 {offsets = [0, 0], sizes = [20, 11], strides = [1, 1]} : vector<20x43xf32> to vector<20x11xf32>
    %c0_9 = arith.constant 0 : index
    %c0_10 = arith.constant 0 : index
    %16 = vector.load %arg19[%c0_9, %c0_10] : memref<20x11xf32, #tpu.memory_space<vmem>>, vector<20x11xf32>
    tpu.vector_store %arg19[%c0_9, %c0_10], %15 {strides = array<i32>} : memref<20x11xf32, #tpu.memory_space<vmem>>, vector<20x11xf32>,
    %17 = vector.extract_strided_slice %14 {offsets = [0, 11], sizes = [20, 32], strides = [1, 1]} : vector<20x43xf32> to vector<20x32xf32>
    %cst_11 = arith.constant 0.000000e+00 : f32
    %18 = vector.broadcast %cst_11 : f32 to vector<20x32xf32>
    %19 = arith.maximumf %17, %18 : vector<20x32xf32>
    %c0_12 = arith.constant 0 : index
    %c0_13 = arith.constant 0 : index
    %20 = vector.load %arg5[%c0_12, %c0_13] : memref<32x32xf32, #tpu.memory_space<vmem>>, vector<32x32xf32>
    %cst_14 = arith.constant dense<0.000000e+00> : vector<20x32xf32>
    %21 = tpu.matmul %19, %20, %cst_14 {dimension_numbers = #tpu.dot_dimension_numbers<[1], [0], [0], [1], [0, 0, 1, 1], [], []>} : vector<20x32xf32>, vector<32x32xf32>, vector<20x32xf32> -> vector<20x32xf32>
    %c0_15 = arith.constant 0 : index
    %c0_16 = arith.constant 0 : index
    %22 = vector.load %arg6[%c0_15, %c0_16] : memref<1x32xf32, #tpu.memory_space<vmem>>, vector<1x32xf32>
    %23 = vector.broadcast %22 : vector<1x32xf32> to vector<20x32xf32>
    %24 = arith.addf %21, %23 : vector<20x32xf32>
    %cst_17 = arith.constant 0.000000e+00 : f32
    %25 = vector.broadcast %cst_17 : f32 to vector<20x32xf32>
    %26 = arith.maximumf %24, %25 : vector<20x32xf32>
    %c0_18 = arith.constant 0 : index
    %c0_19 = arith.constant 0 : index
    %27 = vector.load %arg7[%c0_18, %c0_19] : memref<32x4xf32, #tpu.memory_space<vmem>>, vector<32x4xf32>
    %cst_20 = arith.constant dense<0.000000e+00> : vector<20x4xf32>
    %28 = tpu.matmul %26, %27, %cst_20 {dimension_numbers = #tpu.dot_dimension_numbers<[1], [0], [0], [1], [0, 0, 1, 1], [], []>} : vector<20x32xf32>, vector<32x4xf32>, vector<20x4xf32> -> vector<20x4xf32>
    %c0_21 = arith.constant 0 : index
    %c0_22 = arith.constant 0 : index
    %29 = vector.load %arg8[%c0_21, %c0_22] : memref<1x4xf32, #tpu.memory_space<vmem>>, vector<1x4xf32>
    %30 = vector.broadcast %29 : vector<1x4xf32> to vector<20x4xf32>
    %31 = arith.addf %28, %30 : vector<20x4xf32>
    %cst_23 = arith.constant 0.000000e+00 : f32
    %32 = vector.broadcast %cst_23 : f32 to vector<20x4xf32>
    %33 = arith.subf %32, %31 : vector<20x4xf32>
    %34 = math.exp %33 : vector<20x4xf32>
    %cst_24 = arith.constant 1.000000e+00 : f32
    %35 = vector.broadcast %cst_24 : f32 to vector<20x4xf32>
    %36 = arith.addf %35, %34 : vector<20x4xf32>
    %cst_25 = arith.constant 1.000000e+00 : f32
    %37 = vector.broadcast %cst_25 : f32 to vector<20x4xf32>
    %38 = arith.divf %37, %36 : vector<20x4xf32>
    %c0_26 = arith.constant 0 : index
    %c0_27 = arith.constant 0 : index
    %39 = vector.load %arg20[%c0_26, %c0_27] : memref<20x4xf32, #tpu.memory_space<vmem>>, vector<20x4xf32>
    tpu.vector_store %arg20[%c0_26, %c0_27], %38 {strides = array<i32>} : memref<20x4xf32, #tpu.memory_space<vmem>>, vector<20x4xf32>,
    %c0_28 = arith.constant 0 : index
    %c0_29 = arith.constant 0 : index
    %40 = vector.load %arg9[%c0_28, %c0_29] : memref<32x71xf32, #tpu.memory_space<vmem>>, vector<32x71xf32>
    %cst_30 = arith.constant dense<0.000000e+00> : vector<16x71xf32>
    %41 = tpu.matmul %1, %40, %cst_30 {dimension_numbers = #tpu.dot_dimension_numbers<[1], [0], [0], [1], [0, 0, 1, 1], [], []>} : vector<16x32xf32>, vector<32x71xf32>, vector<16x71xf32> -> vector<16x71xf32>
    %c0_31 = arith.constant 0 : index
    %c0_32 = arith.constant 0 : index
    %42 = vector.load %arg10[%c0_31, %c0_32] : memref<1x71xf32, #tpu.memory_space<vmem>>, vector<1x71xf32>
    %43 = vector.broadcast %42 : vector<1x71xf32> to vector<16x71xf32>
    %44 = arith.addf %41, %43 : vector<16x71xf32>
    %45 = vector.extract_strided_slice %44 {offsets = [0, 0], sizes = [16, 7], strides = [1, 1]} : vector<16x71xf32> to vector<16x7xf32>
    %c0_33 = arith.constant 0 : index
    %c0_34 = arith.constant 0 : index
    %46 = vector.load %arg23[%c0_33, %c0_34] : memref<16x7xf32, #tpu.memory_space<vmem>>, vector<16x7xf32>
    tpu.vector_store %arg23[%c0_33, %c0_34], %45 {strides = array<i32>} : memref<16x7xf32, #tpu.memory_space<vmem>>, vector<16x7xf32>,
    %47 = vector.extract_strided_slice %44 {offsets = [0, 7], sizes = [16, 32], strides = [1, 1]} : vector<16x71xf32> to vector<16x32xf32>
    %cst_35 = arith.constant 0.000000e+00 : f32
    %48 = vector.broadcast %cst_35 : f32 to vector<16x32xf32>
    %49 = arith.maximumf %47, %48 : vector<16x32xf32>
    %50 = vector.extract_strided_slice %44 {offsets = [0, 39], sizes = [16, 32], strides = [1, 1]} : vector<16x71xf32> to vector<16x32xf32>
    %cst_36 = arith.constant 0.000000e+00 : f32
    %51 = vector.broadcast %cst_36 : f32 to vector<16x32xf32>
    %52 = arith.maximumf %50, %51 : vector<16x32xf32>
    %c0_37 = arith.constant 0 : index
    %c0_38 = arith.constant 0 : index
    %53 = vector.load %arg11[%c0_37, %c0_38] : memref<32x32xf32, #tpu.memory_space<vmem>>, vector<32x32xf32>
    %cst_39 = arith.constant dense<0.000000e+00> : vector<16x32xf32>
    %54 = tpu.matmul %49, %53, %cst_39 {dimension_numbers = #tpu.dot_dimension_numbers<[1], [0], [0], [1], [0, 0, 1, 1], [], []>} : vector<16x32xf32>, vector<32x32xf32>, vector<16x32xf32> -> vector<16x32xf32>
    %c0_40 = arith.constant 0 : index
    %c0_41 = arith.constant 0 : index
    %55 = vector.load %arg12[%c0_40, %c0_41] : memref<1x32xf32, #tpu.memory_space<vmem>>, vector<1x32xf32>
    %56 = vector.broadcast %55 : vector<1x32xf32> to vector<16x32xf32>
    %57 = arith.addf %54, %56 : vector<16x32xf32>
    %cst_42 = arith.constant 0.000000e+00 : f32
    %58 = vector.broadcast %cst_42 : f32 to vector<16x32xf32>
    %59 = arith.maximumf %57, %58 : vector<16x32xf32>
    %c0_43 = arith.constant 0 : index
    %c0_44 = arith.constant 0 : index
    %60 = vector.load %arg13[%c0_43, %c0_44] : memref<32x32xf32, #tpu.memory_space<vmem>>, vector<32x32xf32>
    %cst_45 = arith.constant dense<0.000000e+00> : vector<16x32xf32>
    %61 = tpu.matmul %59, %60, %cst_45 {dimension_numbers = #tpu.dot_dimension_numbers<[1], [0], [0], [1], [0, 0, 1, 1], [], []>} : vector<16x32xf32>, vector<32x32xf32>, vector<16x32xf32> -> vector<16x32xf32>
    %c0_46 = arith.constant 0 : index
    %c0_47 = arith.constant 0 : index
    %62 = vector.load %arg14[%c0_46, %c0_47] : memref<1x32xf32, #tpu.memory_space<vmem>>, vector<1x32xf32>
    %63 = vector.broadcast %62 : vector<1x32xf32> to vector<16x32xf32>
    %64 = arith.addf %61, %63 : vector<16x32xf32>
    %65 = arith.mulf %64, %64 : vector<16x32xf32>
    %cst_48 = arith.constant dense<0.000000e+00> : vector<16xf32>
    %66 = vector.multi_reduction <add>, %65, %cst_48 [1] : vector<16x32xf32> to vector<16xf32>
    %67 = vector.shape_cast %66 : vector<16xf32> to vector<16x1xf32>
    %cst_49 = arith.constant 1.000000e-24 : f32
    %68 = vector.broadcast %cst_49 : f32 to vector<16x1xf32>
    %69 = arith.maximumf %67, %68 : vector<16x1xf32>
    %70 = math.rsqrt %69 : vector<16x1xf32>
    %71 = vector.broadcast %70 : vector<16x1xf32> to vector<16x32xf32>
    %72 = arith.mulf %64, %71 : vector<16x32xf32>
    %c0_50 = arith.constant 0 : index
    %c0_51 = arith.constant 0 : index
    %73 = vector.load %arg15[%c0_50, %c0_51] : memref<32x32xf32, #tpu.memory_space<vmem>>, vector<32x32xf32>
    %cst_52 = arith.constant dense<0.000000e+00> : vector<16x32xf32>
    %74 = tpu.matmul %52, %73, %cst_52 {dimension_numbers = #tpu.dot_dimension_numbers<[1], [0], [0], [1], [0, 0, 1, 1], [], []>} : vector<16x32xf32>, vector<32x32xf32>, vector<16x32xf32> -> vector<16x32xf32>
    %c0_53 = arith.constant 0 : index
    %c0_54 = arith.constant 0 : index
    %75 = vector.load %arg16[%c0_53, %c0_54] : memref<1x32xf32, #tpu.memory_space<vmem>>, vector<1x32xf32>
    %76 = vector.broadcast %75 : vector<1x32xf32> to vector<16x32xf32>
    %77 = arith.addf %74, %76 : vector<16x32xf32>
    %cst_55 = arith.constant 0.000000e+00 : f32
    %78 = vector.broadcast %cst_55 : f32 to vector<16x32xf32>
    %79 = arith.maximumf %77, %78 : vector<16x32xf32>
    %c0_56 = arith.constant 0 : index
    %c0_57 = arith.constant 0 : index
    %80 = vector.load %arg17[%c0_56, %c0_57] : memref<32x32xf32, #tpu.memory_space<vmem>>, vector<32x32xf32>
    %cst_58 = arith.constant dense<0.000000e+00> : vector<16x32xf32>
    %81 = tpu.matmul %79, %80, %cst_58 {dimension_numbers = #tpu.dot_dimension_numbers<[1], [0], [0], [1], [0, 0, 1, 1], [], []>} : vector<16x32xf32>, vector<32x32xf32>, vector<16x32xf32> -> vector<16x32xf32>
    %c0_59 = arith.constant 0 : index
    %c0_60 = arith.constant 0 : index
    %82 = vector.load %arg18[%c0_59, %c0_60] : memref<1x32xf32, #tpu.memory_space<vmem>>, vector<1x32xf32>
    %83 = vector.broadcast %82 : vector<1x32xf32> to vector<16x32xf32>
    %84 = arith.addf %81, %83 : vector<16x32xf32>
    %85 = arith.mulf %84, %84 : vector<16x32xf32>
    %cst_61 = arith.constant dense<0.000000e+00> : vector<16xf32>
    %86 = vector.multi_reduction <add>, %85, %cst_61 [1] : vector<16x32xf32> to vector<16xf32>
    %87 = vector.shape_cast %86 : vector<16xf32> to vector<16x1xf32>
    %cst_62 = arith.constant 1.000000e-24 : f32
    %88 = vector.broadcast %cst_62 : f32 to vector<16x1xf32>
    %89 = arith.maximumf %87, %88 : vector<16x1xf32>
    %90 = math.rsqrt %89 : vector<16x1xf32>
    %91 = vector.broadcast %90 : vector<16x1xf32> to vector<16x32xf32>
    %92 = arith.mulf %84, %91 : vector<16x32xf32>
    %93 = vector.extract_strided_slice %9 {offsets = [0, 0], sizes = [10, 32], strides = [1, 1]} : vector<20x32xf32> to vector<10x32xf32>
    %94 = vector.extract_strided_slice %72 {offsets = [0, 0], sizes = [8, 32], strides = [1, 1]} : vector<16x32xf32> to vector<8x32xf32>
    %cst_63 = arith.constant dense<0.000000e+00> : vector<8x10xf32>
    %95 = tpu.matmul %94, %93, %cst_63 {dimension_numbers = #tpu.dot_dimension_numbers<[1], [1], [0], [0], [0, 0, 1, 0], [], []>} : vector<8x32xf32>, vector<10x32xf32>, vector<8x10xf32> -> vector<8x10xf32>
    %cst_64 = arith.constant 2.000000e+01 : f32
    %96 = vector.broadcast %cst_64 : f32 to vector<8x10xf32>
    %97 = arith.mulf %95, %96 : vector<8x10xf32>
    %c0_65 = arith.constant 0 : index
    %c0_66 = arith.constant 0 : index
    %c0_67 = arith.constant 0 : index
    %98 = vector.load %arg21[%c0_65, %c0_66, %c0_67] : memref<2x8x10xf32, #tpu.memory_space<vmem>>, vector<1x8x10xf32>
    %99 = vector.shape_cast %98 : vector<1x8x10xf32> to vector<8x10xf32>
    %100 = vector.shape_cast %97 : vector<8x10xf32> to vector<1x8x10xf32>
    tpu.vector_store %arg21[%c0_65, %c0_66, %c0_67], %100 {strides = array<i32>} : memref<2x8x10xf32, #tpu.memory_space<vmem>>, vector<1x8x10xf32>,
    %101 = vector.extract_strided_slice %92 {offsets = [0, 0], sizes = [8, 32], strides = [1, 1]} : vector<16x32xf32> to vector<8x32xf32>
    %cst_68 = arith.constant dense<0.000000e+00> : vector<8x10xf32>
    %102 = tpu.matmul %101, %93, %cst_68 {dimension_numbers = #tpu.dot_dimension_numbers<[1], [1], [0], [0], [0, 0, 1, 0], [], []>} : vector<8x32xf32>, vector<10x32xf32>, vector<8x10xf32> -> vector<8x10xf32>
    %cst_69 = arith.constant 2.000000e+01 : f32
    %103 = vector.broadcast %cst_69 : f32 to vector<8x10xf32>
    %104 = arith.mulf %102, %103 : vector<8x10xf32>
    %c0_70 = arith.constant 0 : index
    %c0_71 = arith.constant 0 : index
    %c0_72 = arith.constant 0 : index
    %105 = vector.load %arg22[%c0_70, %c0_71, %c0_72] : memref<2x8x10xf32, #tpu.memory_space<vmem>>, vector<1x8x10xf32>
    %106 = vector.shape_cast %105 : vector<1x8x10xf32> to vector<8x10xf32>
    %107 = vector.shape_cast %104 : vector<8x10xf32> to vector<1x8x10xf32>
    tpu.vector_store %arg22[%c0_70, %c0_71, %c0_72], %107 {strides = array<i32>} : memref<2x8x10xf32, #tpu.memory_space<vmem>>, vector<1x8x10xf32>,
    %108 = vector.extract_strided_slice %9 {offsets = [10, 0], sizes = [10, 32], strides = [1, 1]} : vector<20x32xf32> to vector<10x32xf32>
    %109 = vector.extract_strided_slice %72 {offsets = [8, 0], sizes = [8, 32], strides = [1, 1]} : vector<16x32xf32> to vector<8x32xf32>
    %cst_73 = arith.constant dense<0.000000e+00> : vector<8x10xf32>
    %110 = tpu.matmul %109, %108, %cst_73 {dimension_numbers = #tpu.dot_dimension_numbers<[1], [1], [0], [0], [0, 0, 1, 0], [], []>} : vector<8x32xf32>, vector<10x32xf32>, vector<8x10xf32> -> vector<8x10xf32>
    %cst_74 = arith.constant 2.000000e+01 : f32
    %111 = vector.broadcast %cst_74 : f32 to vector<8x10xf32>
    %112 = arith.mulf %110, %111 : vector<8x10xf32>
    %c1 = arith.constant 1 : index
    %c0_75 = arith.constant 0 : index
    %c0_76 = arith.constant 0 : index
    %113 = vector.load %arg21[%c1, %c0_75, %c0_76] : memref<2x8x10xf32, #tpu.memory_space<vmem>>, vector<1x8x10xf32>
    %114 = vector.shape_cast %113 : vector<1x8x10xf32> to vector<8x10xf32>
    %115 = vector.shape_cast %112 : vector<8x10xf32> to vector<1x8x10xf32>
    tpu.vector_store %arg21[%c1, %c0_75, %c0_76], %115 {strides = array<i32>} : memref<2x8x10xf32, #tpu.memory_space<vmem>>, vector<1x8x10xf32>,
    %116 = vector.extract_strided_slice %92 {offsets = [8, 0], sizes = [8, 32], strides = [1, 1]} : vector<16x32xf32> to vector<8x32xf32>
    %cst_77 = arith.constant dense<0.000000e+00> : vector<8x10xf32>
    %117 = tpu.matmul %116, %108, %cst_77 {dimension_numbers = #tpu.dot_dimension_numbers<[1], [1], [0], [0], [0, 0, 1, 0], [], []>} : vector<8x32xf32>, vector<10x32xf32>, vector<8x10xf32> -> vector<8x10xf32>
    %cst_78 = arith.constant 2.000000e+01 : f32
    %118 = vector.broadcast %cst_78 : f32 to vector<8x10xf32>
    %119 = arith.mulf %117, %118 : vector<8x10xf32>
    %c1_79 = arith.constant 1 : index
    %c0_80 = arith.constant 0 : index
    %c0_81 = arith.constant 0 : index
    %120 = vector.load %arg22[%c1_79, %c0_80, %c0_81] : memref<2x8x10xf32, #tpu.memory_space<vmem>>, vector<1x8x10xf32>
    %121 = vector.shape_cast %120 : vector<1x8x10xf32> to vector<8x10xf32>
    %122 = vector.shape_cast %119 : vector<8x10xf32> to vector<1x8x10xf32>
    tpu.vector_store %arg22[%c1_79, %c0_80, %c0_81], %122 {strides = array<i32>} : memref<2x8x10xf32, #tpu.memory_space<vmem>>, vector<1x8x10xf32>,
    return
  }
  func.func @transform_0(%arg0: i32) -> (i32, i32) {
    %c0_i32 = arith.constant 0 : i32
    %c0_i32_0 = arith.constant 0 : i32
    %c0_i32_1 = arith.constant 0 : i32
    return %c0_i32, %c0_i32_0 : i32, i32
  }
  func.func @transform_1(%arg0: i32) -> (i32, i32) {
    %c0_i32 = arith.constant 0 : i32
    %c0_i32_0 = arith.constant 0 : i32
    %c0_i32_1 = arith.constant 0 : i32
    return %c0_i32, %c0_i32_0 : i32, i32
  }
  func.func @transform_2(%arg0: i32) -> (i32, i32) {
    %c0_i32 = arith.constant 0 : i32
    %c0_i32_0 = arith.constant 0 : i32
    %c0_i32_1 = arith.constant 0 : i32
    return %c0_i32, %c0_i32_0 : i32, i32
  }
  func.func @transform_3(%arg0: i32) -> (i32, i32) {
    %c0_i32 = arith.constant 0 : i32
    %c0_i32_0 = arith.constant 0 : i32
    %c0_i32_1 = arith.constant 0 : i32
    return %c0_i32, %c0_i32_0 : i32, i32
  }
  func.func @transform_4(%arg0: i32) -> (i32, i32) {
    %c0_i32 = arith.constant 0 : i32
    %c0_i32_0 = arith.constant 0 : i32
    %c0_i32_1 = arith.constant 0 : i32
    return %c0_i32, %c0_i32_0 : i32, i32
  }
  func.func @transform_5(%arg0: i32) -> (i32, i32) {
    %c0_i32 = arith.constant 0 : i32
    %c0_i32_0 = arith.constant 0 : i32
    %c0_i32_1 = arith.constant 0 : i32
    return %c0_i32, %c0_i32_0 : i32, i32
  }
  func.func @transform_6(%arg0: i32) -> (i32, i32) {
    %c0_i32 = arith.constant 0 : i32
    %c0_i32_0 = arith.constant 0 : i32
    %c0_i32_1 = arith.constant 0 : i32
    return %c0_i32, %c0_i32_0 : i32, i32
  }
  func.func @transform_7(%arg0: i32) -> (i32, i32) {
    %c0_i32 = arith.constant 0 : i32
    %c0_i32_0 = arith.constant 0 : i32
    %c0_i32_1 = arith.constant 0 : i32
    return %c0_i32, %c0_i32_0 : i32, i32
  }
  func.func @transform_8(%arg0: i32) -> (i32, i32) {
    %c0_i32 = arith.constant 0 : i32
    %c0_i32_0 = arith.constant 0 : i32
    %c0_i32_1 = arith.constant 0 : i32
    return %c0_i32, %c0_i32_0 : i32, i32
  }
  func.func @transform_9(%arg0: i32) -> (i32, i32) {
    %c0_i32 = arith.constant 0 : i32
    %c0_i32_0 = arith.constant 0 : i32
    %c0_i32_1 = arith.constant 0 : i32
    return %c0_i32, %c0_i32_0 : i32, i32
  }
  func.func @transform_10(%arg0: i32) -> (i32, i32) {
    %c0_i32 = arith.constant 0 : i32
    %c0_i32_0 = arith.constant 0 : i32
    %c0_i32_1 = arith.constant 0 : i32
    return %c0_i32, %c0_i32_0 : i32, i32
  }
  func.func @transform_11(%arg0: i32) -> (i32, i32) {
    %c0_i32 = arith.constant 0 : i32
    %c0_i32_0 = arith.constant 0 : i32
    %c0_i32_1 = arith.constant 0 : i32
    return %c0_i32, %c0_i32_0 : i32, i32
  }
  func.func @transform_12(%arg0: i32) -> (i32, i32) {
    %c0_i32 = arith.constant 0 : i32
    %c0_i32_0 = arith.constant 0 : i32
    %c0_i32_1 = arith.constant 0 : i32
    return %c0_i32, %c0_i32_0 : i32, i32
  }
  func.func @transform_13(%arg0: i32) -> (i32, i32) {
    %c0_i32 = arith.constant 0 : i32
    %c0_i32_0 = arith.constant 0 : i32
    %c0_i32_1 = arith.constant 0 : i32
    return %c0_i32, %c0_i32_0 : i32, i32
  }
  func.func @transform_14(%arg0: i32) -> (i32, i32) {
    %c0_i32 = arith.constant 0 : i32
    %c0_i32_0 = arith.constant 0 : i32
    %c0_i32_1 = arith.constant 0 : i32
    return %c0_i32, %c0_i32_0 : i32, i32
  }
  func.func @transform_15(%arg0: i32) -> (i32, i32) {
    %c0_i32 = arith.constant 0 : i32
    %c0_i32_0 = arith.constant 0 : i32
    %c0_i32_1 = arith.constant 0 : i32
    return %c0_i32, %c0_i32_0 : i32, i32
  }
  func.func @transform_16(%arg0: i32) -> (i32, i32) {
    %c0_i32 = arith.constant 0 : i32
    %c0_i32_0 = arith.constant 0 : i32
    %c0_i32_1 = arith.constant 0 : i32
    return %c0_i32, %c0_i32_0 : i32, i32
  }
  func.func @transform_17(%arg0: i32) -> (i32, i32) {
    %c0_i32 = arith.constant 0 : i32
    %c0_i32_0 = arith.constant 0 : i32
    %c0_i32_1 = arith.constant 0 : i32
    return %c0_i32, %c0_i32_0 : i32, i32
  }
  func.func @transform_18(%arg0: i32) -> (i32, i32) {
    %c0_i32 = arith.constant 0 : i32
    %c0_i32_0 = arith.constant 0 : i32
    %c0_i32_1 = arith.constant 0 : i32
    return %c0_i32, %c0_i32_0 : i32, i32
  }
  func.func @transform_19(%arg0: i32) -> (i32, i32) {
    %c0_i32 = arith.constant 0 : i32
    %c0_i32_0 = arith.constant 0 : i32
    %c0_i32_1 = arith.constant 0 : i32
    return %c0_i32, %c0_i32_0 : i32, i32
  }
  func.func @transform_20(%arg0: i32) -> (i32, i32, i32) {
    %c0_i32 = arith.constant 0 : i32
    %c0_i32_0 = arith.constant 0 : i32
    %c0_i32_1 = arith.constant 0 : i32
    %c0_i32_2 = arith.constant 0 : i32
    return %c0_i32, %c0_i32_0, %c0_i32_1 : i32, i32, i32
  }
  func.func @transform_21(%arg0: i32) -> (i32, i32, i32) {
    %c0_i32 = arith.constant 0 : i32
    %c0_i32_0 = arith.constant 0 : i32
    %c0_i32_1 = arith.constant 0 : i32
    %c0_i32_2 = arith.constant 0 : i32
    return %c0_i32, %c0_i32_0, %c0_i32_1 : i32, i32, i32
  }
  func.func @transform_22(%arg0: i32) -> (i32, i32) {
    %c0_i32 = arith.constant 0 : i32
    %c0_i32_0 = arith.constant 0 : i32
    %c0_i32_1 = arith.constant 0 : i32
    return %c0_i32, %c0_i32_0 : i32, i32
  }
}

</mosaic_0001>

<bundles_post_ra>
// kernel: hotr_forward.4
= control target key start
LH: loop header
LB: loop body
LE: loop exit
PB: predicated region body
PF: predicated region fallthrough
CT: control target
= control target key end

     0   :  { %vm56_vm0 = vcmask 523264   ;;  %vm133_vm1 = vcmask 130048   ;;  %vm175_vm2 = vcmask 261120   ;;  %s368_s1 = inlined_call_operand.vmem [shape: f32[192,16], index: 1, kind: input, shape index: {}]   ;;  %s369_s2 = inlined_call_operand.vmem [shape: f32[1,16], index: 2, kind: input, shape index: {}]   ;;  %s370_s0 = inlined_call_operand.vmem [shape: f32[32,192], index: 0, kind: input, shape index: {}]   ;;  %s371_s4 = inlined_call_operand.vmem [shape: f32[1,32], index: 4, kind: input, shape index: {}]   ;;  %s372_s3 = inlined_call_operand.vmem [shape: f32[16,32], index: 3, kind: input, shape index: {}]   ;;  %s373_s5 = inlined_call_operand.vmem [shape: f32[32,32], index: 5, kind: output, shape index: {}]  }
   0x1   :  { %v43_v0 = vld [vmem:[%s368_s1 + $0x78] sm:$0xff]  ;;  %v42_v1 = vld [vmem:[%s368_s1 + $0x70] sm:$0xff]  ;;  %v41_v2 = vld [vmem:[%s368_s1 + $0x68] sm:$0xff] }
   0x2   :  { %69 = vmatpush.msra.mxu0 %v43_v0  ;;  %192 = vmatpush.msra.mxu3 %v43_v0  ;;  %v51_v3 = vld [vmem:[%s368_s1 + $0xb8] sm:$0xff]  ;;  %v40_v4 = vld [vmem:[%s368_s1 + $0x60] sm:$0xff]  ;;  %v50_v5 = vld [vmem:[%s368_s1 + $0xb0] sm:$0xff] }
   0x3   :  { %106 = vmatpush.msra.mxu1 %v51_v3  ;;  %v49_v6 = vld [vmem:[%s368_s1 + $0xa8] sm:$0xff]  ;;  %v39_v7 = vld [vmem:[%s368_s1 + $0x58] sm:$0xff]  ;;  %v48_v8 = vld [vmem:[%s368_s1 + $0xa0] sm:$0xff] }
   0x4   :  { %70 = vmatpush.msra.mxu0 %v42_v1  ;;  %193 = vmatpush.msra.mxu3 %v42_v1  ;;  %v38_v9 = vld [vmem:[%s368_s1 + $0x50] sm:$0xff]  ;;  %v47_v10 = vld [vmem:[%s368_s1 + $0x98] sm:$0xff]  ;;  %v37_v11 = vld [vmem:[%s368_s1 + $0x48] sm:$0xff] }
   0x5   :  { %107 = vmatpush.msra.mxu1 %v50_v5  ;;  %v46_v12 = vld [vmem:[%s368_s1 + $0x90] sm:$0xff]  ;;  %v36_v13 = vld [vmem:[%s368_s1 + $0x40] sm:$0xff]  ;;  %v45_v14 = vld [vmem:[%s368_s1 + $0x88] sm:$0xff] }
   0x6   :  { %71 = vmatpush.msra.mxu0 %v41_v2  ;;  %194 = vmatpush.msra.mxu3 %v41_v2  ;;  %v35_v15 = vld [vmem:[%s368_s1 + $0x38] sm:$0xff]  ;;  %v44_v16 = vld [vmem:[%s368_s1 + $0x80] sm:$0xff]  ;;  %v34_v17 = vld [vmem:[%s368_s1 + $0x30] sm:$0xff] }
   0x7   :  { %108 = vmatpush.msra.mxu1 %v49_v6  ;;  %v21_v18 = vld [vmem:[%s370_s0 + $0x8] sm:$0xff]  ;;  %v32_v20 = vld [vmem:[%s368_s1 + $0x20] sm:$0xff]  ;;  %v31_v21 = vld [vmem:[%s368_s1 + $0x18] sm:$0xff] }
   0x8   :  { %72 = vmatpush.msra.mxu0 %v40_v4  ;;  %195 = vmatpush.msra.mxu3 %v40_v4  ;;  %v33_v19 = vld [vmem:[%s368_s1 + $0x28] sm:$0xff]  ;;  %v30_v22 = vld [vmem:[%s368_s1 + $0x10] sm:$0xff]  ;;  %v23_v23 = vld [vmem:[%s370_s0 + $0x18] sm:$0xff] }
   0x9   :  { %109 = vmatpush.msra.mxu1 %v48_v8  ;;  %v29_v24 = vld [vmem:[%s368_s1 + $0x8] sm:$0xff]  ;;  %v28_v25 = vld [vmem:[%s368_s1] sm:$0xff]  ;;  %v22_v29 = vld [vmem:[%s370_s0 + $0x10] sm:$0xff] }
   0xa   :  { %73 = vmatpush.msra.mxu0 %v39_v7  ;;  %196 = vmatpush.msra.mxu3 %v39_v7  ;;  %v20_v26 = vld [vmem:[%s370_s0] sm:$0xff]  ;;  %v25_v28 = vld [vmem:[%s370_s0 + $0x28] sm:$0xff]  ;;  %v26_v30 = vld [vmem:[%s370_s0 + $0x30] sm:$0xff] }
   0xb   :  { %110 = vmatpush.msra.mxu1 %v47_v10  ;;  %v24_v27 = vld [vmem:[%s370_s0 + $0x20] sm:$0xff]  ;;  %v27_v31 = vld [vmem:[%s370_s0 + $0x38] sm:$0xff]  ;;  %v128_v32 = vld [vmem:[%s372_s3 + $0x8] sm:$0xff] }
   0xc   :  { %74 = vmatpush.msra.mxu0 %v38_v9  ;;  %197 = vmatpush.msra.mxu3 %v38_v9  ;;  %v127_v33 = vld [vmem:[%s372_s3] sm:$0xff] }
   0xd   :  { %111 = vmatpush.msra.mxu1 %v46_v12  ;;  %160 = vmatpush.msra.mxu2 %v128_v32  ;;  %v208_v35 = vld [vmem:[%s369_s2] ss:$0 sm:$0xff] }
   0xe   :  { %75 = vmatpush.msra.mxu0 %v37_v11  ;;  %198 = vmatpush.msra.mxu3 %v37_v11  ;;  %v209_v51 = vld [vmem:[%s371_s4] ss:$0 sm:$0xff] }
   0xf   :  { %112 = vmatpush.msra.mxu1 %v45_v14  ;;  %161 = vmatpush.msra.mxu2 %v127_v33 }
  0x10   :  { %76 = vmatpush.msra.mxu0 %v36_v13  ;;  %199 = vmatpush.msra.mxu3 %v36_v13 }
  0x11   :  { %113 = vmatpush.msra.mxu1 %v44_v16 }
  0x12   :  { %77 = vmatpush.msra.mxu0 %v35_v15  ;;  %200 = vmatpush.msra.mxu3 %v35_v15 }
  0x13   :  { %184 = vmatmul.msk.f32.vlgmr.msra.gmra.mxu1 %vm56_vm0, %v21_v18 }
  0x14   :  { %78 = vmatpush.msra.mxu0 %v34_v17  ;;  %201 = vmatpush.msra.mxu3 %v34_v17 }
  0x16   :  { %79 = vmatpush.msra.mxu0 %v33_v19  ;;  %202 = vmatpush.msra.mxu3 %v33_v19 }
  0x18   :  { %80 = vmatpush.msra.mxu0 %v32_v20  ;;  %203 = vmatpush.msra.mxu3 %v32_v20 }
  0x1a   :  { %81 = vmatpush.msra.mxu0 %v31_v21  ;;  %204 = vmatpush.msra.mxu3 %v31_v21 }
  0x1b   :  { %185 = vmatmul.msk.f32.gmra.mxu1 %vm56_vm0, %v23_v23 }
  0x1c   :  { %82 = vmatpush.msra.mxu0 %v30_v22  ;;  %205 = vmatpush.msra.mxu3 %v30_v22 }
  0x1e   :  { %83 = vmatpush.msra.mxu0 %v29_v24  ;;  %206 = vmatpush.msra.mxu3 %v29_v24 }
  0x20   :  { %84 = vmatpush.msra.mxu0 %v28_v25  ;;  %207 = vmatpush.msra.mxu3 %v28_v25 }
  0x21   :  { %85 = vmatmul.f32.vlgmr.msra.gmra.mxu0 %v20_v26  ;;  %91 = vmatmul.f32.vlgmr.msra.gmra.mxu3 %v24_v27 }
  0x23   :  { %186 = vmatmul.msk.f32.gmra.mxu1 %vm56_vm0, %v25_v28 }
  0x29   :  { %88 = vmatmul.f32.gmra.mxu0 %v22_v29  ;;  %94 = vmatmul.f32.gmra.mxu3 %v26_v30 }
  0x2b   :  { %187 = vmatmul.msk.f32.gmra.mxu1 %vm56_vm0, %v27_v31 }
  0x90   :  { %v115_v34 = vpop.f32.mrf.mxu1 }
  0x98   :  { %v118_v38 = vpop.f32.mrf.mxu1 }
  0x9e   :  { %v86_v36 = vpop.f32.mrf.mxu0 }
  0x9f   :  { %v87_v37 = vadd.f32 %v208_v35, %v86_v36 }
  0xa0   :  { %v121_v44 = vpop.f32.mrf.mxu1 }
  0xa1   :  { %v116_v39 = vadd.f32 %v115_v34, %v87_v37 }
  0xa3   :  { %188 = vmatmul.msk.f32.vlgmr.msra.gmra.mxu2 %vm133_vm1, %v116_v39 }
  0xa4   :  { %v92_v41 = vpop.f32.mrf.mxu3 }
  0xa5   :  { %v93_v45 = vadd.f32 %v208_v35, %v92_v41 }
  0xa6   :  { %v89_v40 = vpop.f32.mrf.mxu0 }
  0xa7   :  { %v90_v42 = vadd.f32 %v208_v35, %v89_v40  ;;  %v122_v46 = vadd.f32 %v121_v44, %v93_v45 }
  0xa8   :  { %v124_v49 = vpop.f32.mrf.mxu1 }
  0xa9   :  { %v119_v43 = vadd.f32 %v118_v38, %v90_v42 }
  0xab   :  { %189 = vmatmul.msk.f32.gmra.mxu2 %vm133_vm1, %v119_v43 }
  0xac   :  { %v95_v47 = vpop.f32.mrf.mxu3 }
  0xad   :  { %v96_v48 = vadd.f32 %v208_v35, %v95_v47 }
  0xaf   :  { %v125_v50 = vadd.f32 %v124_v49, %v96_v48 }
  0xb3   :  { %190 = vmatmul.msk.f32.gmra.mxu2 %vm133_vm1, %v122_v46 }
  0xbb   :  { %191 = vmatmul.msk.f32.gmra.mxu2 %vm133_vm1, %v125_v50 }
 0x126   :  { %v163_v52 = vpop.f32.mrf.mxu2 }
 0x127   :  { %v164_v53 = vadd.f32 %v209_v51, %v163_v52 }
 0x129   :  { %176 = vst.msk [vmem:[%s373_s5] sm:$0xff] %vm175_vm2, %v164_v53 }
 0x12e   :  { %v166_v54 = vpop.f32.mrf.mxu2 }
 0x12f   :  { %v167_v55 = vadd.f32 %v209_v51, %v166_v54 }
 0x131   :  { %177 = vst.msk [vmem:[%s373_s5 + $0x8] sm:$0xff] %vm175_vm2, %v167_v55 }
 0x136   :  { %v169_v56 = vpop.f32.mrf.mxu2 }
 0x137   :  { %v170_v57 = vadd.f32 %v209_v51, %v169_v56 }
 0x139   :  { %178 = vst.msk [vmem:[%s373_s5 + $0x10] sm:$0xff] %vm175_vm2, %v170_v57 }
 0x13e   :  { %v172_v58 = vpop.f32.mrf.mxu2 }
 0x13f   :  { %v173_v59 = vadd.f32 %v209_v51, %v172_v58 }
 0x141   :  { %179 = vst.msk [vmem:[%s373_s5 + $0x18] sm:$0xff] %vm175_vm2, %v173_v59 }

// kernel: hotr_forward.5
= control target key start
LH: loop header
LB: loop body
LE: loop exit
PB: predicated region body
PF: predicated region fallthrough
CT: control target
= control target key end

     0   :  { %s1582_s21 = smov 0   ;;  %s1584_s22 = smov 0   ;;  %s1818_s0 = inlined_call_operand.vmem [shape: f32[10,32], index: 0, kind: input, shape index: {}]   ;;  %s1819_s1 = inlined_call_operand.vmem [shape: f32[2,16,32], index: 1, kind: input, shape index: {}]   ;;  %s1820_s2 = inlined_call_operand.vmem [shape: f32[2,16,32], index: 2, kind: input, shape index: {}]   ;;  %s1821_s3 = inlined_call_operand.vmem [shape: f32[2,1,16], index: 3, kind: input, shape index: {}]   ;;  %s1822_s4 = inlined_call_operand.vmem [shape: f32[2,32,32], index: 4, kind: input, shape index: {}]   ;;  %s1823_s5 = inlined_call_operand.vmem [shape: f32[2,1,32], index: 5, kind: input, shape index: {}]   ;;  %s1824_s6 = inlined_call_operand.vmem [shape: f32[2,32,32], index: 6, kind: input, shape index: {}]   ;;  %s1825_s7 = inlined_call_operand.vmem [shape: f32[2,1,32], index: 7, kind: input, shape index: {}]   ;;  %s1826_s8 = inlined_call_operand.vmem [shape: f32[2,32,32], index: 8, kind: input, shape index: {}]   ;;  %s1827_s9 = inlined_call_operand.vmem [shape: f32[2,1,32], index: 9, kind: input, shape index: {}]   ;;  %s1828_s10 = inlined_call_operand.vmem [shape: f32[2,32,32], index: 10, kind: input, shape index: {}]   ;;  %s1829_s11 = inlined_call_operand.vmem [shape: f32[2,1,32], index: 11, kind: input, shape index: {}]   ;;  %s1830_s12 = inlined_call_operand.vmem [shape: f32[2,32,64], index: 12, kind: input, shape index: {}]   ;;  %s1831_s13 = inlined_call_operand.vmem [shape: f32[2,1,64], index: 13, kind: input, shape index: {}]   ;;  %s1832_s14 = inlined_call_operand.vmem [shape: f32[2,64,32], index: 14, kind: input, shape index: {}]   ;;  %s1833_s15 = inlined_call_operand.vmem [shape: f32[2,1,32], index: 15, kind: input, shape index: {}]   ;;  %s1834_s16 = inlined_call_operand.vmem [shape: f32[2,10,32], index: 16, kind: output, shape index: {}]  }
   0x1   :  { %1841 = sst [smem:[#allocation10_spill]] %s1818_s0  ;;  %s1586_s23 = smov 0  }
   0x2   :  { %1842 = sst [smem:[#allocation11_spill]] %s1819_s1  ;;  %s1588_s24 = smov 0  }
   0x3   :  { %1843 = sst [smem:[#allocation12_spill]] %s1820_s2  ;;  %s1590_s25 = smov 0  }
   0x4   :  { %1844 = sst [smem:[#allocation13_spill]] %s1821_s3 }
   0x5   :  { %1845 = sst [smem:[#allocation14_spill]] %s1822_s4 }
   0x6   :  { %1846 = sst [smem:[#allocation15_spill]] %s1824_s6 }
   0x7   :  { %1847 = sst [smem:[#allocation16_spill]] %s1826_s8 }
   0x8   :  { %1848 = sst [smem:[#allocation17_spill]] %s1827_s9 }
   0x9   :  { %1849 = sst [smem:[#allocation18_spill]] %s1828_s10 }
   0xa   :  { %1850 = sst [smem:[#allocation19_spill]] %s1829_s11 }
   0xb   :  { %1851 = sst [smem:[#allocation20_spill]] %s1832_s14 }
   0xc   :  { %1852 = sst [smem:[#allocation21_spill]] %s1833_s15 }
   0xd   :  { %1853 = sst [smem:[#allocation22_spill]] %s1834_s16 }
   0xe LB: > { %1854 = sst [smem:[#allocation3_spill]] %s1478_s21  ;;  %s35_s26 = sadd.s32 1, %s1486_s23  ;;  %s1494_s25 = sphi %s1590_s25, %s26_s25   ;;  %s1490_s24 = sphi %s1588_s24, %s1890_s24   ;;  %s1486_s23 = sphi %s1586_s23, %s1889_s23   ;;  %s1482_s22 = sphi %s1584_s22, %s1888_s22   ;;  %s1478_s21 = sphi %s1582_s21, %s1887_s21  }
   0xf   : > { %1855 = sst [smem:[#allocation4_spill]] %s1486_s23  ;;  %s38_s27 = sadd.s32 1, %s1490_s24 }
  0x10   : > { %1856 = sst [smem:[#allocation5_spill]] %s1490_s24  ;;  %p36_p0 = scmp.ge.s32.totalorder %s35_s26, 2 }
  0x11   : > { %1857 = sst [smem:[#allocation6_spill]] %s1494_s25  ;;  %p1350_p1 = scmp.ge.s32.totalorder %s1494_s25, 1 }
  0x12   : > { %p600_p2 = scmp.lt.s32.totalorder %s1494_s25, 5  ;;  %s1892_s26 = smov (%p36_p0, %s35_s26), 0 }
  0x13   : > { %1858 = sst [smem:[#allocation7_spill]] %s1892_s26  ;;  %s1894_s27 = smov (!%p36_p0, %s38_s27), %s1490_s24 }
  0x14   : > { %p601_p3 = pnand %p1350_p1, %p600_p2  ;;  %p40_p4 = scmp.ge.s32.totalorder %s1894_s27, 2 }
  0x16   : > { %s1896_s27 = smov (%p40_p4, %s1894_s27), 0  ;;  %604 = sbr.rel (%p601_p3) target bundleno = 1136 (0x470), region = 84 }
  0x17   : > { %1859 = sst [smem:[#allocation8_spill]] %s1896_s27 }
  0x1b   : > { %p706_p5 = scmp.lt.s32.totalorder %s1482_s22, 1  ;;  %p719_p6 = scmp.lt.s32.totalorder %s1478_s21, 1 }
  0x1c   : > { %s1861_s1 = sld [smem:[#allocation11_spill]] }
  0x1d   : > { %s1898_s22 = smov (!%p706_p5, %s1482_s22), 1  ;;  %s1862_s2 = sld [smem:[#allocation12_spill]] }
  0x1e   : > { %s1618_s28 = scalar_select %p719_p6, %s1478_s21, 1 }
  0x1f   : > { %s1391_s29 = sshll.u32 %s1898_s22, 4  ;;  %s1863_s4 = sld [smem:[#allocation14_spill]] }
  0x20   : > { %s1393_s23 = sshll.u32 %s1618_s28, 5  ;;  %s1864_s6 = sld [smem:[#allocation15_spill]] }
  0x21   : > { %s1865_s8 = sld [smem:[#allocation16_spill]]  ;;  %s1675_s26 = scalar_lea.vmem %s1830_s12, %s1393_s23 }
  0x22   : > { %s1628_s20 = scalar_lea.vmem %s1861_s1, %s1391_s29  ;;  %s1867_s10 = sld [smem:[#allocation18_spill]] }
  0x23   : > { %s1633_s24 = scalar_lea.vmem %s1862_s2, %s1391_s29  ;;  %s1398_s21 = sshll.u32 %s1618_s28, 6 }
  0x24   : > { %s1870_s9 = sld [smem:[#allocation20_spill]] }
  0x25   : > { %s1643_s30 = scalar_lea.vmem %s1863_s4, %s1393_s23  ;;  %s1872_s11 = sld [smem:[#allocation22_spill]] }
  0x26   : > { %s1648_s19 = scalar_lea.vmem %s1864_s6, %s1393_s23 }
  0x27   : > { %s1657_s3 = scalar_lea.vmem %s1865_s8, %s1393_s23  ;;  %s758_s8 = scalar_lea.vmem %s1831_s13, %s1618_s28 }
  0x28   : > { %s1666_s4 = scalar_lea.vmem %s1867_s10, %s1393_s23  ;;  %s1873_s23 = sld [smem:[#allocation3_spill]] }
  0x29   : > { %1868 = sst [smem:[#allocation9_spill]] %s1666_s4 }
  0x2a   : > { %s1685_s16 = scalar_lea.vmem %s1870_s9, %s1398_s21  ;;  %s1871_s4 = sld [smem:[#allocation21_spill]] }
  0x2b   : > { %s1694_s1 = scalar_lea.vmem %s1872_s11, %s1391_s29 }
  0x2e   : > { %p1369_p7 = scmp.ne.s32.totalorder %s1873_s23, 0 }
  0x30   : > { %s766_s0 = scalar_lea.vmem %s1871_s4, %s1618_s28  ;;  %775 = sbr.rel (%p1369_p7) target bundleno = 56 (0x38), region = 88 }
  0x35   : > { %vm776_vm0 = vcmask 261120   ;;  %vm778_vm1 = vcmask 254976   ;;  %v1496_v0 = vmov 0.0  }
  0x36   : > { %777 = vst.msk [vmem:[#allocation2] sm:$0xff] %vm776_vm0, %v1496_v0 }
  0x37   : > { %779 = vst.msk [vmem:[#allocation2 + $0x8] sm:$0x3] %vm778_vm1, %v1496_v0 }
  0x38 PF: > { %v831_v1 = vld [vmem:[%s1648_s19 + $0x18] sm:$0xff]  ;;  %v830_v2 = vld [vmem:[%s1648_s19 + $0x10] sm:$0xff]  ;;  %v829_v4 = vld [vmem:[%s1648_s19 + $0x8] sm:$0xff]  ;;  %s1874_s9 = sld [smem:[#allocation10_spill]]  ;;  %vm798_vm2 = vcmask 261120   ;;  %s1876_s17 = scalar_lea.vmem %s1823_s5, %s1618_s28  ;;  %vm945_vm3 = vcmask 130048  }
  0x39   : > { %854 = vmatpush.msra.mxu1 %v831_v1  ;;  %v793_v3 = vld [vmem:[%s1643_s30 + $0x18] sm:$0xff]  ;;  %v792_v5 = vld [vmem:[%s1643_s30 + $0x10] sm:$0xff]  ;;  %v791_v6 = vld [vmem:[%s1643_s30 + $0x8] sm:$0xff]  ;;  %s1877_s21 = sld [smem:[#allocation13_spill]]  ;;  %vm949_vm4 = vcmask 123904   ;;  %vm1086_vm5 = vcmask 523264  }
  0x3a   : > { %817 = vmatpush.msra.mxu0 %v793_v3  ;;  %v828_v9 = vld [vmem:[%s1648_s19] sm:$0xff]  ;;  %v783_v15 = vld [vmem:[%s1628_s20 + $0x8] sm:$0xff]  ;;  %s1875_s19 = scalar_lea.vmem %s1825_s7, %s1618_s28  ;;  %v868_v27 = vld [vmem:[%s1657_s3 + $0x18] sm:$0xff]  ;;  %s1881_s18 = sld [smem:[#allocation9_spill]]  ;;  %vm1125_vm6 = vcmask 254976  }
  0x3b   : > { %855 = vmatpush.msra.mxu1 %v830_v2  ;;  %v782_v10 = vld [vmem:[%s1628_s20] sm:$0xff]  ;;  %v867_v28 = vld [vmem:[%s1657_s3 + $0x10] sm:$0xff]  ;;  %891 = vmatpush.msra.mxu2 %v868_v27  ;;  %v866_v29 = vld [vmem:[%s1657_s3 + $0x8] sm:$0xff]  ;;  %s1882_s6 = sld [smem:[#allocation19_spill]] }
  0x3c   : > { %818 = vmatpush.msra.mxu0 %v792_v5  ;;  %v790_v11 = vld [vmem:[%s1643_s30] sm:$0xff]  ;;  %v785_v32 = vld [vmem:[%s1633_s24 + $0x8] sm:$0xff]  ;;  %v1042_v3 = vld [vmem:[%s1675_s26 + $0x18] sm:$0xff] }
  0x3d   : > { %v1703_v7 = vld [vmem:[#allocation2] sm:$0xff]  ;;  %856 = vmatpush.msra.mxu1 %v829_v4  ;;  %892 = vmatpush.msra.mxu2 %v867_v28  ;;  %v1041_v4 = vld [vmem:[%s1675_s26 + $0x10] sm:$0xff]  ;;  %v1040_v5 = vld [vmem:[%s1675_s26 + $0x8] sm:$0xff] }
  0x3e   : > { %v786_v8 = vld [vmem:[%s1874_s9] sm:$0xff]  ;;  %819 = vmatpush.msra.mxu0 %v791_v6  ;;  %v1714_v13 = vld [vmem:[#allocation2 + $0x8] sm:$0x3] }
  0x3f   : > { %v788_v12 = vadd.f32 %v786_v8, %v1703_v7  ;;  %857 = vmatpush.msra.mxu1 %v828_v9  ;;  %v787_v14 = vld [vmem:[%s1874_s9 + $0x8] sm:$0x3]  ;;  %v1441_v18 = vld [vmem:[%s1875_s19] ss:$0 sm:$0xff]  ;;  %893 = vmatpush.msra.mxu2 %v866_v29  ;;  %s1878_s25 = scalar_lea.vmem %s1877_s21, %s1898_s22 }
  0x40   : > { %1372 = vmatmul.msk.f32.vlgmr.msra.gmra.mxu1 %vm798_vm2, %v782_v10  ;;  %820 = vmatpush.msra.mxu0 %v790_v11  ;;  %v789_v16 = vadd.f32 %v787_v14, %v1714_v13  ;;  %v1442_v22 = vld [vmem:[%s1876_s17] ss:$0 sm:$0xff]  ;;  %v1001_v57 = vld [vmem:[%s1881_s18 + $0x18] sm:$0xff]  ;;  %v1000_v58 = vld [vmem:[%s1881_s18 + $0x10] sm:$0xff] }
  0x41   : > { %1370 = vmatmul.msk.f32.vlgmr.msra.gmra.mxu0 %vm798_vm2, %v788_v12  ;;  %v865_v30 = vld [vmem:[%s1657_s3] sm:$0xff]  ;;  %1020 = vmatpush.msrb.mxu1 %v1001_v57  ;;  %v999_v59 = vld [vmem:[%s1881_s18 + $0x8] sm:$0xff]  ;;  %v1085_v10 = vld [vmem:[%s1685_s16 + $0x38] sm:$0xff] }
  0x42   : > { %v784_v31 = vld [vmem:[%s1633_s24] sm:$0xff]  ;;  %894 = vmatpush.msra.mxu2 %v865_v30  ;;  %s1879_s24 = sld [smem:[#allocation17_spill]]  ;;  %v1084_v11 = vld [vmem:[%s1685_s16 + $0x30] sm:$0xff]  ;;  %v1083_v12 = vld [vmem:[%s1685_s16 + $0x28] sm:$0xff] }
  0x43   : > { %1374 = vmatmul.msk.f32.vlgmr.msra.gmra.mxu2 %vm798_vm2, %v784_v31  ;;  %v1443_v33 = vld [vmem:[%s1878_s25] ss:$0 sm:$0xff]  ;;  %1021 = vmatpush.msrb.mxu1 %v1000_v58 }
  0x44   : > { %v998_v60 = vld [vmem:[%s1881_s18] sm:$0xff]  ;;  %1065 = vmatpush.msrb.mxu2 %v1042_v3 }
  0x45   : > { %1022 = vmatpush.msrb.mxu1 %v999_v59  ;;  %v1039_v9 = vld [vmem:[%s1675_s26] sm:$0xff]  ;;  %s1883_s26 = scalar_lea.vmem %s1882_s6, %s1618_s28 }
  0x46   : > { %1066 = vmatpush.msrb.mxu2 %v1041_v4  ;;  %v1082_v14 = vld [vmem:[%s1685_s16 + $0x20] sm:$0xff] }
  0x47   : > { %1023 = vmatpush.msrb.mxu1 %v998_v60  ;;  %v1447_v31 = vld [vmem:[%s766_s0] ss:$0 sm:$0xff] }
  0x48   : > { %1373 = vmatmul.msk.f32.gmra.mxu1 %vm798_vm2, %v783_v15  ;;  %s1880_s15 = scalar_lea.vmem %s1879_s24, %s1618_s28  ;;  %1067 = vmatpush.msrb.mxu2 %v1040_v5  ;;  %v1081_v15 = vld [vmem:[%s1685_s16 + $0x18] sm:$0xff] }
  0x49   : > { %1371 = vmatmul.msk.f32.gmra.mxu0 %vm798_vm2, %v789_v16  ;;  %v1444_v46 = vld [vmem:[%s1880_s15] ss:$0 sm:$0xff]  ;;  %v1080_v16 = vld [vmem:[%s1685_s16 + $0x10] sm:$0xff] }
  0x4a   : > { %1068 = vmatpush.msrb.mxu2 %v1039_v9 }
  0x4b   : > { %1375 = vmatmul.msk.f32.gmra.mxu2 %vm798_vm2, %v785_v32 }
  0xbd   : > { %v859_v17 = vpop.f32.mrf.mxu1 }
  0xbe   : > { %v822_v21 = vpop.f32.mrf.mxu0  ;;  %v860_v23 = vadd.f32 %v1441_v18, %v859_v17  ;;  %v1445_v17 = vld [vmem:[%s1883_s26] ss:$0 sm:$0xff] }
  0xbf   : > { %v823_v24 = vadd.f32 %v1442_v22, %v822_v21 }
  0xc5   : > { %v862_v19 = vpop.f32.mrf.mxu1 }
  0xc6   : > { %v863_v20 = vadd.f32 %v1441_v18, %v862_v19  ;;  %v825_v25 = vpop.f32.mrf.mxu0  ;;  %v896_v43 = vpop.f32.mrf.mxu2 }
  0xc7   : > { %v826_v26 = vadd.f32 %v1442_v22, %v825_v25  ;;  %v897_v50 = vadd.f32 %v1444_v46, %v896_v43  ;;  %v1078_v25 = vld [vmem:[%s1685_s16] sm:$0xff] }
  0xc8   : > { %1376 = vmatpush.xpose.msk.msra.mxu3 %vm798_vm2, %v863_v20 }
  0xcc   : > { %1377 = vmatpush.xpose.msk.msra.mxu3 %vm798_vm2, %v860_v23 }
  0xce   : > { %v899_v48 = vpop.f32.mrf.mxu2 }
  0xcf   : > { %1378 = vmatmul.msk.f32.vlgmr.msra.gmra.mxu3 %vm798_vm2, %v823_v24  ;;  %v900_v51 = vadd.f32 %v1444_v46, %v899_v48  ;;  %v1079_v24 = vld [vmem:[%s1685_s16 + $0x8] sm:$0xff] }
  0xd0   : > { %1101 = vmatpush.msrb.mxu3 %v1085_v10 }
  0xd1   : > { %989 = vmatpush.msrb.mxu0 %v900_v51 }
  0xd2   : > { %1102 = vmatpush.msrb.mxu3 %v1084_v11 }
  0xd3   : > { %990 = vmatpush.msrb.mxu0 %v897_v50 }
  0xd4   : > { %1103 = vmatpush.msrb.mxu3 %v1083_v12 }
  0xd6   : > { %1104 = vmatpush.msrb.mxu3 %v1082_v14 }
  0xd7   : > { %1379 = vmatmul.msk.f32.gmra.mxu3 %vm798_vm2, %v826_v26  ;;  %v1446_v26 = vld [vmem:[%s758_s8] ss:$0 sm:$0xff]  ;;  %s1885_s8 = sld [smem:[#allocation3_spill]] }
  0xd8   : > { %1105 = vmatpush.msrb.mxu3 %v1081_v15 }
  0xda   : > { %1106 = vmatpush.msrb.mxu3 %v1080_v16 }
  0xdc   : > { %1107 = vmatpush.msrb.mxu3 %v1079_v24 }
  0xdd   : > { %p1388_p8 = scmp.ne.s32.totalorder %s1885_s8, 1 }
  0xde   : > { %1108 = vmatpush.msrb.mxu3 %v1078_v25 }
 0x152   : > { %v931_v34 = vpop.f32.mrf.mxu3 }
 0x153   : > { %v937_v35 = vmul.f32 0.17677669, %v931_v34 }
 0x155   : > { %v943_v36 = vadd.f32 %v1443_v33, %v937_v35 }
 0x157   : > { %v946_v37 = vsel %vm945_vm3, %v943_v36, -inf }
 0x158   : > { %947 = vmax.xlane.f32.xlu0 %v946_v37 }
 0x15a   : > { %v934_v38 = vpop.f32.mrf.mxu3 }
 0x15b   : > { %v938_v39 = vmul.f32 0.17677669, %v934_v38 }
 0x15d   : > { %v944_v40 = vadd.f32 %v1443_v33, %v938_v39 }
 0x15f   : > { %v950_v41 = vsel %vm949_vm4, %v944_v40, -inf }
 0x160   : > { %951 = vmax.xlane.f32.xlu0 %v950_v41 }
 0x1cb   : > { %v948_v42 = vpop.xlane.xlu0 %947 }
 0x1cc   : > { %v953_v44 = vsub.f32 %v943_v36, %v948_v42 }
 0x1ce   : > { %v955_v45 = vmul.f32 1.442695, %v953_v44 }
 0x1d0   : > { %1448 = vpow2.f32 %v955_v45 }
 0x1d3   : > { %v952_v47 = vpop.xlane.xlu0 %951 }
 0x1d4   : > { %v954_v49 = vsub.f32 %v944_v40, %v952_v47 }
 0x1d6   : > { %v1449_v52 = vpop.eup %1448  ;;  %v957_v53 = vmul.f32 1.442695, %v954_v49 }
 0x1d7   : > { %v959_v54 = vsel %vm945_vm3, %v1449_v52, 0.0 }
 0x1d8   : > { %1450 = vpow2.f32 %v957_v53  ;;  %960 = vadd.xlane.f32.xlu1 %v959_v54 }
 0x1de   : > { %v1451_v55 = vpop.eup %1450 }
 0x1df   : > { %v962_v56 = vsel %vm949_vm4, %v1451_v55, 0.0 }
 0x1e0   : > { %963 = vadd.xlane.f32.xlu1 %v962_v56 }
 0x24b   : > { %v961_v61 = vpop.xlane.xlu1 %960 }
 0x24c   : > { %1452 = vrcp.f32 %v961_v61 }
 0x252   : > { %v1453_v62 = vpop.eup %1452 }
 0x253   : > { %v964_v63 = vpop.xlane.xlu1 %963  ;;  %v967_v0 = vmul.f32 %v1453_v62, %v1449_v52 }
 0x254   : > { %1454 = vrcp.f32 %v964_v63 }
 0x255   : > { %1380 = vmatmul.msk.f32.vlgmr.msrb.gmra.mxu0 %vm945_vm3, %v967_v0 }
 0x25a   : > { %v1455_v1 = vpop.eup %1454 }
 0x25b   : > { %v968_v2 = vmul.f32 %v1455_v1, %v1451_v55 }
 0x25d   : > { %1381 = vmatmul.msk.f32.gmra.mxu0 %vm945_vm3, %v968_v2 }
 0x2d2   : > { %v992_v6 = vpop.f32.mrf.mxu0 }
 0x2d3   : > { %1382 = vmatmul.msk.f32.vlgmr.msrb.gmra.mxu1 %vm798_vm2, %v992_v6 }
 0x2da   : > { %v995_v8 = vpop.f32.mrf.mxu0 }
 0x2db   : > { %1383 = vmatmul.msk.f32.gmra.mxu1 %vm798_vm2, %v995_v8 }
 0x350   : > { %v1025_v18 = vpop.f32.mrf.mxu1 }
 0x351   : > { %v1031_v19 = vadd.f32 %v1025_v18, %v1703_v7 }
 0x353   : > { %v1037_v20 = vadd.f32 %v1445_v17, %v1031_v19 }
 0x355   : > { %1384 = vmatmul.msk.f32.vlgmr.msrb.gmra.mxu2 %vm798_vm2, %v1037_v20 }
 0x358   : > { %v1028_v21 = vpop.f32.mrf.mxu1 }
 0x359   : > { %v1032_v22 = vadd.f32 %v1028_v21, %v1714_v13 }
 0x35b   : > { %v1038_v23 = vadd.f32 %v1445_v17, %v1032_v22 }
 0x35d   : > { %1385 = vmatmul.msk.f32.gmra.mxu2 %vm798_vm2, %v1038_v23 }
 0x3d8   : > { %v1070_v7 = vpop.f32.mrf.mxu2 }
 0x3d9   : > { %v1071_v27 = vadd.f32 %v1446_v26, %v1070_v7 }
 0x3db   : > { %v1076_v28 = vmax.f32 %v1071_v27, 0.0 }
 0x3dd   : > { %1386 = vmatmul.msk.f32.vlgmr.msrb.gmra.mxu3 %vm1086_vm5, %v1076_v28 }
 0x3e0   : > { %v1073_v29 = vpop.f32.mrf.mxu2 }
 0x3e1   : > { %v1074_v13 = vadd.f32 %v1446_v26, %v1073_v29 }
 0x3e3   : > { %v1077_v30 = vmax.f32 %v1074_v13, 0.0 }
 0x3e5   : > { %1387 = vmatmul.msk.f32.gmra.mxu3 %vm1086_vm5, %v1077_v30 }
 0x460   : > { %v1110_v32 = vpop.f32.mrf.mxu3 }
 0x461   : > { %v1116_v33 = vadd.f32 %v1110_v32, %v1037_v20 }
 0x463   : > { %v1122_v34 = vadd.f32 %v1447_v31, %v1116_v33 }
 0x465   : > { %1124 = vst.msk [vmem:[#allocation2] sm:$0xff] %vm798_vm2, %v1122_v34 }
 0x468   : > { %v1113_v35 = vpop.f32.mrf.mxu3 }
 0x469   : > { %v1117_v36 = vadd.f32 %v1113_v35, %v1038_v23  ;;  %1130 = sbr.rel (%p1388_p8) target bundleno = 1136 (0x470), region = 92 }
 0x46b   : > { %v1123_v37 = vadd.f32 %v1447_v31, %v1117_v36 }
 0x46d   : > { %1126 = vst.msk [vmem:[#allocation2 + $0x8] sm:$0x3] %vm1125_vm6, %v1123_v37 }
 0x46e   : > { %1131 = vst.msk [vmem:[%s1694_s1] sm:$0xff] %vm798_vm2, %v1122_v34 }
 0x46f   : > { %1132 = vst.msk [vmem:[%s1694_s1 + $0x8] sm:$0x3] %vm1125_vm6, %v1123_v37 }
 0x470 PF: > { %s1886_s28 = sld [smem:[#allocation6_spill]] }
 0x471   : > { %s1887_s21 = sld [smem:[#allocation4_spill]] }
 0x472   : > { %s1888_s22 = sld [smem:[#allocation5_spill]] }
 0x473   : > { %s1889_s23 = sld [smem:[#allocation7_spill]] }
 0x474   : > { %s1890_s24 = sld [smem:[#allocation8_spill]] }
 0x476   : > { %s26_s25 = sadd.s32 1, %s1886_s28  }
 0x477   : > { %p23_p9 = scmp.ge.s32.totalorder %s26_s25, 6  }
 0x479   :  { %25 = sbr.rel (!%p23_p9) target bundleno = 14 (0xe), region = 164 }

// kernel: hotr_forward.6
= control target key start
LH: loop header
LB: loop body
LE: loop exit
PB: predicated region body
PF: predicated region fallthrough
CT: control target
= control target key end

     0   :  { %s1503_s21 = smov 0   ;;  %s1505_s22 = smov 0   ;;  %s1719_s0 = inlined_call_operand.vmem [shape: f32[8,32], index: 0, kind: input, shape index: {}]   ;;  %s1720_s1 = inlined_call_operand.vmem [shape: f32[2,16,32], index: 1, kind: input, shape index: {}]   ;;  %s1721_s2 = inlined_call_operand.vmem [shape: f32[2,16,32], index: 2, kind: input, shape index: {}]   ;;  %s1722_s3 = inlined_call_operand.vmem [shape: f32[2,1,16], index: 3, kind: input, shape index: {}]   ;;  %s1723_s4 = inlined_call_operand.vmem [shape: f32[2,32,32], index: 4, kind: input, shape index: {}]   ;;  %s1724_s5 = inlined_call_operand.vmem [shape: f32[2,1,32], index: 5, kind: input, shape index: {}]   ;;  %s1725_s6 = inlined_call_operand.vmem [shape: f32[2,32,32], index: 6, kind: input, shape index: {}]   ;;  %s1726_s7 = inlined_call_operand.vmem [shape: f32[2,1,32], index: 7, kind: input, shape index: {}]   ;;  %s1727_s8 = inlined_call_operand.vmem [shape: f32[2,32,32], index: 8, kind: input, shape index: {}]   ;;  %s1728_s9 = inlined_call_operand.vmem [shape: f32[2,1,32], index: 9, kind: input, shape index: {}]   ;;  %s1729_s10 = inlined_call_operand.vmem [shape: f32[2,32,32], index: 10, kind: input, shape index: {}]   ;;  %s1730_s11 = inlined_call_operand.vmem [shape: f32[2,1,32], index: 11, kind: input, shape index: {}]   ;;  %s1731_s12 = inlined_call_operand.vmem [shape: f32[2,32,64], index: 12, kind: input, shape index: {}]   ;;  %s1732_s13 = inlined_call_operand.vmem [shape: f32[2,1,64], index: 13, kind: input, shape index: {}]   ;;  %s1733_s14 = inlined_call_operand.vmem [shape: f32[2,64,32], index: 14, kind: input, shape index: {}]   ;;  %s1734_s15 = inlined_call_operand.vmem [shape: f32[2,1,32], index: 15, kind: input, shape index: {}]   ;;  %s1735_s16 = inlined_call_operand.vmem [shape: f32[2,8,32], index: 16, kind: output, shape index: {}]  }
   0x1   :  { %1740 = sst [smem:[#allocation9_spill]] %s1719_s0  ;;  %s1507_s23 = smov 0  }
   0x2   :  { %1741 = sst [smem:[#allocation10_spill]] %s1720_s1  ;;  %s1509_s24 = smov 0  }
   0x3   :  { %1742 = sst [smem:[#allocation11_spill]] %s1721_s2  ;;  %s1511_s25 = smov 0  }
   0x4   :  { %1743 = sst [smem:[#allocation12_spill]] %s1722_s3 }
   0x5   :  { %1744 = sst [smem:[#allocation13_spill]] %s1723_s4 }
   0x6   :  { %1745 = sst [smem:[#allocation14_spill]] %s1725_s6 }
   0x7   :  { %1746 = sst [smem:[#allocation15_spill]] %s1727_s8 }
   0x8   :  { %1747 = sst [smem:[#allocation16_spill]] %s1728_s9 }
   0x9   :  { %1748 = sst [smem:[#allocation17_spill]] %s1729_s10 }
   0xa   :  { %1749 = sst [smem:[#allocation18_spill]] %s1730_s11 }
   0xb   :  { %1750 = sst [smem:[#allocation19_spill]] %s1734_s15 }
   0xc   :  { %1751 = sst [smem:[#allocation20_spill]] %s1735_s16 }
   0xd LB: > { %1752 = sst [smem:[#allocation3_spill]] %s1399_s21  ;;  %s35_s26 = sadd.s32 1, %s1407_s23  ;;  %s1415_s25 = sphi %s1511_s25, %s26_s25   ;;  %s1411_s24 = sphi %s1509_s24, %s1785_s24   ;;  %s1407_s23 = sphi %s1507_s23, %s1784_s23   ;;  %s1403_s22 = sphi %s1505_s22, %s1783_s22   ;;  %s1399_s21 = sphi %s1503_s21, %s1782_s21  }
   0xe   : > { %1753 = sst [smem:[#allocation4_spill]] %s1407_s23  ;;  %s38_s27 = sadd.s32 1, %s1411_s24 }
   0xf   : > { %1754 = sst [smem:[#allocation5_spill]] %s1411_s24  ;;  %p36_p0 = scmp.ge.s32.totalorder %s35_s26, 2 }
  0x10   : > { %1755 = sst [smem:[#allocation6_spill]] %s1415_s25  ;;  %p1283_p1 = scmp.ge.s32.totalorder %s1415_s25, 1 }
  0x11   : > { %p600_p2 = scmp.lt.s32.totalorder %s1415_s25, 5  ;;  %s1787_s26 = smov (%p36_p0, %s35_s26), 0 }
  0x12   : > { %1756 = sst [smem:[#allocation7_spill]] %s1787_s26  ;;  %s1789_s27 = smov (!%p36_p0, %s38_s27), %s1411_s24 }
  0x13   : > { %p601_p3 = pnand %p1283_p1, %p600_p2  ;;  %p40_p4 = scmp.ge.s32.totalorder %s1789_s27, 2 }
  0x14   : > { %p705_p5 = scmp.lt.s32.totalorder (!%p601_p3), %s1403_s22, 1  ;;  %p718_p6 = scmp.lt.s32.totalorder (!%p601_p3), %s1399_s21, 1 }
  0x15   : > { %s1791_s27 = smov (%p40_p4, %s1789_s27), 0  ;;  %604 = sbr.rel (%p601_p3) target bundleno = 1116 (0x45c), region = 84 }
  0x16   : > { %1757 = sst [smem:[#allocation8_spill]] %s1791_s27 }
  0x17   : > { %s1759_s1 = sld [smem:[#allocation10_spill]] (!%p601_p3) }
  0x18   : > { %s1760_s2 = sld [smem:[#allocation11_spill]] (!%p601_p3) }
  0x19   : > { %s1761_s4 = sld [smem:[#allocation13_spill]] (!%p601_p3) }
  0x1a   : > { %s1793_s22 = smov (!%p705_p5, %s1403_s22), 1  ;;  %s1762_s6 = sld [smem:[#allocation14_spill]] }
  0x1b   : > { %s1539_s28 = scalar_select %p718_p6, %s1399_s21, 1 }
  0x1c   : > { %s1317_s29 = sshll.u32 %s1793_s22, 4  ;;  %s1763_s8 = sld [smem:[#allocation15_spill]] }
  0x1d   : > { %s1549_s20 = scalar_lea.vmem %s1759_s1, %s1317_s29  ;;  %s1319_s23 = sshll.u32 %s1539_s28, 5 }
  0x1e   : > { %s1554_s24 = scalar_lea.vmem %s1760_s2, %s1317_s29  ;;  %s1765_s10 = sld [smem:[#allocation17_spill]] }
  0x1f   : > { %s1564_s0 = scalar_lea.vmem %s1761_s4, %s1319_s23  ;;  %s1594_s26 = scalar_lea.vmem %s1731_s12, %s1319_s23 }
  0x20   : > { %s730_s17 = scalar_lea.vmem %s1762_s6, %s1319_s23  ;;  %s1324_s21 = sshll.u32 %s1539_s28, 6 }
  0x21   : > { %s1604_s15 = scalar_lea.vmem %s1733_s14, %s1324_s21  ;;  %s1767_s9 = sld [smem:[#allocation19_spill]] }
  0x22   : > { %s1576_s2 = scalar_lea.vmem %s1763_s8, %s1319_s23  ;;  %s757_s8 = scalar_lea.vmem %s1732_s13, %s1539_s28 }
  0x23   : > { %s1300_s19 = sshll.u32 %s1793_s22, 3  ;;  %s1768_s1 = sld [smem:[#allocation20_spill]] }
  0x24   : > { %s1585_s4 = scalar_lea.vmem %s1765_s10, %s1319_s23  ;;  %s1769_s3 = sld [smem:[#allocation3_spill]] }
  0x27   : > { %s765_s18 = scalar_lea.vmem %s1767_s9, %s1539_s28 }
  0x29   : > { %s1614_s23 = scalar_lea.vmem %s1768_s1, %s1300_s19 }
  0x2a   : > { %p1301_p7 = scmp.ne.s32.totalorder %s1769_s3, 0 }
  0x2c   : > { %773 = sbr.rel (%p1301_p7) target bundleno = 51 (0x33), region = 88 }
  0x31   : > { %vm774_vm0 = vcmask 261120   ;;  %v1417_v0 = vmov 0.0  }
  0x32   : > { %775 = vst.msk [vmem:[#allocation2] sm:$0xff] %vm774_vm0, %v1417_v0 }
  0x33 PF: > { %v818_v1 = vld [vmem:[%s730_s17 + $0x18] sm:$0xff]  ;;  %v817_v2 = vld [vmem:[%s730_s17 + $0x10] sm:$0xff]  ;;  %v816_v4 = vld [vmem:[%s730_s17 + $0x8] sm:$0xff]  ;;  %s1770_s10 = sld [smem:[#allocation9_spill]]  ;;  %vm791_vm1 = vcmask 261120   ;;  %s1772_s29 = scalar_lea.vmem %s1724_s5, %s1539_s28  ;;  %vm924_vm2 = vcmask 130048  }
  0x34   : > { %841 = vmatpush.msra.mxu1 %v818_v1  ;;  %v786_v3 = vld [vmem:[%s1564_s0 + $0x18] sm:$0xff]  ;;  %v815_v5 = vld [vmem:[%s730_s17] sm:$0xff]  ;;  %v785_v6 = vld [vmem:[%s1564_s0 + $0x10] sm:$0xff]  ;;  %s1771_s17 = scalar_lea.vmem %s1726_s7, %s1539_s28  ;;  %s1773_s25 = sld [smem:[#allocation12_spill]]  ;;  %vm1032_vm3 = vcmask 523264  }
  0x35   : > { %807 = vmatpush.msra.mxu0 %v786_v3  ;;  %v777_v7 = vld [vmem:[%s1549_s20] sm:$0xff]  ;;  %v784_v8 = vld [vmem:[%s1564_s0 + $0x8] sm:$0xff]  ;;  %v855_v22 = vld [vmem:[%s1576_s2 + $0x18] sm:$0xff]  ;;  %s1777_s3 = sld [smem:[#allocation18_spill]] }
  0x36   : > { %842 = vmatpush.msra.mxu1 %v817_v2  ;;  %v783_v11 = vld [vmem:[%s1564_s0] sm:$0xff]  ;;  %v778_v13 = vld [vmem:[%s1549_s20 + $0x8] sm:$0xff]  ;;  %v854_v23 = vld [vmem:[%s1576_s2 + $0x10] sm:$0xff]  ;;  %878 = vmatpush.msra.mxu2 %v855_v22 }
  0x37   : > { %808 = vmatpush.msra.mxu0 %v785_v6  ;;  %v1366_v15 = vld [vmem:[%s1771_s17] ss:$0 sm:$0xff]  ;;  %v853_v24 = vld [vmem:[%s1576_s2 + $0x8] sm:$0xff]  ;;  %v962_v43 = vld [vmem:[%s1585_s4 + $0x18] sm:$0xff] }
  0x38   : > { %843 = vmatpush.msra.mxu1 %v816_v4  ;;  %v1367_v18 = vld [vmem:[%s1772_s29] ss:$0 sm:$0xff]  ;;  %879 = vmatpush.msra.mxu2 %v854_v23  ;;  %v780_v27 = vld [vmem:[%s1554_s24 + $0x8] sm:$0xff]  ;;  %v961_v44 = vld [vmem:[%s1585_s4 + $0x10] sm:$0xff] }
  0x39   : > { %v1621_v9 = vld [vmem:[#allocation2] sm:$0xff]  ;;  %809 = vmatpush.msra.mxu0 %v784_v8  ;;  %v960_v45 = vld [vmem:[%s1585_s4 + $0x8] sm:$0xff]  ;;  %v995_v50 = vld [vmem:[%s1594_s26 + $0x18] sm:$0xff] }
  0x3a   : > { %v781_v10 = vld [vmem:[%s1770_s10] sm:$0xff]  ;;  %844 = vmatpush.msra.mxu1 %v815_v5  ;;  %880 = vmatpush.msra.mxu2 %v853_v24  ;;  %s1774_s30 = scalar_lea.vmem %s1773_s25, %s1793_s22  ;;  %v994_v51 = vld [vmem:[%s1594_s26 + $0x10] sm:$0xff]  ;;  %v993_v53 = vld [vmem:[%s1594_s26 + $0x8] sm:$0xff] }
  0x3b   : > { %v782_v12 = vadd.f32 %v781_v10, %v1621_v9  ;;  %1303 = vmatmul.msk.f32.vlgmr.msra.gmra.mxu1 %vm791_vm1, %v777_v7  ;;  %810 = vmatpush.msra.mxu0 %v783_v11  ;;  %v852_v25 = vld [vmem:[%s1576_s2] sm:$0xff]  ;;  %v1031_v55 = vld [vmem:[%s1604_s15 + $0x38] sm:$0xff]  ;;  %v1030_v56 = vld [vmem:[%s1604_s15 + $0x30] sm:$0xff] }
  0x3c   : > { %v779_v26 = vld [vmem:[%s1554_s24] sm:$0xff]  ;;  %881 = vmatpush.msra.mxu2 %v852_v25  ;;  %s1775_s24 = sld [smem:[#allocation16_spill]]  ;;  %1044 = vmatpush.msrb.mxu1 %v1031_v55  ;;  %v1029_v57 = vld [vmem:[%s1604_s15 + $0x28] sm:$0xff]  ;;  %v1027_v59 = vld [vmem:[%s1604_s15 + $0x18] sm:$0xff] }
  0x3d   : > { %1302 = vmatmul.msk.f32.vlgmr.msra.gmra.mxu0 %vm791_vm1, %v782_v12  ;;  %1305 = vmatmul.msk.f32.vlgmr.msra.gmra.mxu2 %vm791_vm1, %v779_v26  ;;  %v1368_v28 = vld [vmem:[%s1774_s30] ss:$0 sm:$0xff]  ;;  %v1026_v60 = vld [vmem:[%s1604_s15 + $0x10] sm:$0xff]  ;;  %v1025_v1 = vld [vmem:[%s1604_s15 + $0x8] sm:$0xff] }
  0x3e   : > { %v959_v46 = vld [vmem:[%s1585_s4] sm:$0xff]  ;;  %1045 = vmatpush.msrb.mxu1 %v1030_v56 }
  0x3f   : > { %v992_v54 = vld [vmem:[%s1594_s26] sm:$0xff]  ;;  %s1778_s26 = scalar_lea.vmem %s1777_s3, %s1539_s28 }
  0x40   : > { %v1028_v58 = vld [vmem:[%s1604_s15 + $0x20] sm:$0xff]  ;;  %1046 = vmatpush.msrb.mxu1 %v1029_v57 }
  0x41   : > { %v1370_v61 = vld [vmem:[%s1778_s26] ss:$0 sm:$0xff] }
  0x42   : > { %s1776_s1 = scalar_lea.vmem %s1775_s24, %s1539_s28  ;;  %1047 = vmatpush.msrb.mxu1 %v1028_v58  ;;  %v1024_v2 = vld [vmem:[%s1604_s15] sm:$0xff]  ;;  %s1780_s15 = sld [smem:[#allocation3_spill]] }
  0x43   : > { %1304 = vmatmul.msk.f32.gmra.mxu1 %vm791_vm1, %v778_v13  ;;  %v1369_v34 = vld [vmem:[%s1776_s1] ss:$0 sm:$0xff] }
  0x44   : > { %1048 = vmatpush.msrb.mxu1 %v1027_v59  ;;  %v1371_v3 = vld [vmem:[%s757_s8] ss:$0 sm:$0xff] }
  0x45   : > { %1306 = vmatmul.msk.f32.gmra.mxu2 %vm791_vm1, %v780_v27  ;;  %v1372_v7 = vld [vmem:[%s765_s18] ss:$0 sm:$0xff] }
  0x46   : > { %1049 = vmatpush.msrb.mxu1 %v1026_v60 }
  0x48   : > { %1050 = vmatpush.msrb.mxu1 %v1025_v1  ;;  %p1314_p8 = scmp.ne.s32.totalorder %s1780_s15, 1 }
  0x4a   : > { %1051 = vmatpush.msrb.mxu1 %v1024_v2 }
  0xb8   : > { %v846_v14 = vpop.f32.mrf.mxu1 }
  0xb9   : > { %v847_v20 = vadd.f32 %v1366_v15, %v846_v14 }
  0xba   : > { %v812_v19 = vpop.f32.mrf.mxu0 }
  0xbb   : > { %v813_v21 = vadd.f32 %v1367_v18, %v812_v19 }
  0xc0   : > { %v849_v16 = vpop.f32.mrf.mxu1  ;;  %v883_v33 = vpop.f32.mrf.mxu2 }
  0xc1   : > { %v850_v17 = vadd.f32 %v1366_v15, %v849_v16  ;;  %v884_v38 = vadd.f32 %v1369_v34, %v883_v33 }
  0xc3   : > { %1307 = vmatpush.xpose.msk.msra.mxu3 %vm791_vm1, %v850_v17 }
  0xc7   : > { %1308 = vmatpush.xpose.msk.msra.mxu3 %vm791_vm1, %v847_v20 }
  0xc8   : > { %v886_v36 = vpop.f32.mrf.mxu2 }
  0xc9   : > { %v887_v39 = vadd.f32 %v1369_v34, %v886_v36 }
  0xca   : > { %1309 = vmatmul.msk.f32.vlgmr.msra.gmra.mxu3 %vm791_vm1, %v813_v21 }
  0xcb   : > { %953 = vmatpush.msrb.mxu0 %v887_v39  ;;  %978 = vmatpush.msrb.mxu3 %v962_v43 }
  0xcd   : > { %954 = vmatpush.msrb.mxu0 %v884_v38  ;;  %979 = vmatpush.msrb.mxu3 %v961_v44 }
  0xcf   : > { %980 = vmatpush.msrb.mxu3 %v960_v45  ;;  %1015 = vmatpush.msra.mxu0 %v995_v50 }
  0xd1   : > { %981 = vmatpush.msrb.mxu3 %v959_v46  ;;  %1016 = vmatpush.msra.mxu0 %v994_v51 }
  0xd3   : > { %1017 = vmatpush.msra.mxu0 %v993_v53 }
  0xd5   : > { %1018 = vmatpush.msra.mxu0 %v992_v54 }
 0x14d   : > { %v915_v29 = vpop.f32.mrf.mxu3 }
 0x14e   : > { %v918_v30 = vmul.f32 0.17677669, %v915_v29 }
 0x150   : > { %v923_v31 = vadd.f32 %v1368_v28, %v918_v30 }
 0x152   : > { %v925_v32 = vsel %vm924_vm2, %v923_v31, -inf }
 0x153   : > { %926 = vmax.xlane.f32.xlu0 %v925_v32 }
 0x1c6   : > { %v927_v35 = vpop.xlane.xlu0 %926 }
 0x1c7   : > { %v928_v37 = vsub.f32 %v923_v31, %v927_v35 }
 0x1c9   : > { %v929_v40 = vmul.f32 1.442695, %v928_v37 }
 0x1cb   : > { %1373 = vpow2.f32 %v929_v40 }
 0x1d1   : > { %v1374_v41 = vpop.eup %1373 }
 0x1d2   : > { %v931_v42 = vsel %vm924_vm2, %v1374_v41, 0.0 }
 0x1d3   : > { %932 = vadd.xlane.f32.xlu0 %v931_v42 }
 0x246   : > { %v933_v47 = vpop.xlane.xlu0 %932 }
 0x247   : > { %1375 = vrcp.f32 %v933_v47 }
 0x24d   : > { %v1376_v48 = vpop.eup %1375 }
 0x24e   : > { %v935_v49 = vmul.f32 %v1376_v48, %v1374_v41 }
 0x250   : > { %1310 = vmatmul.msk.f32.vlgmr.msrb.gmra.mxu0 %vm924_vm2, %v935_v49 }
 0x2cd   : > { %v956_v52 = vpop.f32.mrf.mxu0 }
 0x2ce   : > { %1311 = vmatmul.msk.f32.vlgmr.msrb.gmra.mxu3 %vm791_vm1, %v956_v52 }
 0x351   : > { %v983_v62 = vpop.f32.mrf.mxu3 }
 0x352   : > { %v986_v63 = vadd.f32 %v983_v62, %v1621_v9 }
 0x354   : > { %v991_v0 = vadd.f32 %v1370_v61, %v986_v63 }
 0x356   : > { %1312 = vmatmul.msk.f32.vlgmr.msra.gmra.mxu0 %vm791_vm1, %v991_v0 }
 0x3d3   : > { %v1020_v4 = vpop.f32.mrf.mxu0 }
 0x3d4   : > { %v1021_v5 = vadd.f32 %v1371_v3, %v1020_v4 }
 0x3d6   : > { %v1023_v6 = vmax.f32 %v1021_v5, 0.0 }
 0x3d8   : > { %1313 = vmatmul.msk.f32.vlgmr.msrb.gmra.mxu1 %vm1032_vm3, %v1023_v6 }
 0x455   : > { %v1053_v8 = vpop.f32.mrf.mxu1 }
 0x456   : > { %v1056_v9 = vadd.f32 %v1053_v8, %v991_v0  ;;  %1066 = sbr.rel (%p1314_p8) target bundleno = 1116 (0x45c), region = 92 }
 0x458   : > { %v1061_v10 = vadd.f32 %v1372_v7, %v1056_v9 }
 0x45a   : > { %1062 = vst.msk [vmem:[#allocation2] sm:$0xff] %vm791_vm1, %v1061_v10 }
 0x45b   : > { %1067 = vst.msk [vmem:[%s1614_s23] sm:$0xff] %vm791_vm1, %v1061_v10 }
 0x45c PF: > { %s1781_s8 = sld [smem:[#allocation6_spill]] }
 0x45d   : > { %s1782_s21 = sld [smem:[#allocation4_spill]] }
 0x45e   : > { %s1783_s22 = sld [smem:[#allocation5_spill]] }
 0x45f   : > { %s1784_s23 = sld [smem:[#allocation7_spill]] }
 0x460   : > { %s1785_s24 = sld [smem:[#allocation8_spill]] }
 0x462   : > { %s26_s25 = sadd.s32 1, %s1781_s8  }
 0x463   : > { %p23_p9 = scmp.ge.s32.totalorder %s26_s25, 6  }
 0x465   :  { %25 = sbr.rel (!%p23_p9) target bundleno = 13 (0xd), region = 164 }

// kernel: hotr_forward.7
= control target key start
LH: loop header
LB: loop body
LE: loop exit
PB: predicated region body
PF: predicated region fallthrough
CT: control target
= control target key end

     0   :  { %s1260_s0 = inlined_call_operand.vmem [shape: f32[20,32], index: 0, kind: input, shape index: {}]   ;;  %s1261_s1 = inlined_call_operand.vmem [shape: f32[16,32], index: 1, kind: input, shape index: {}]   ;;  %s1262_s2 = inlined_call_operand.vmem [shape: f32[32,43], index: 2, kind: input, shape index: {}]   ;;  %s1263_s3 = inlined_call_operand.vmem [shape: f32[1,43], index: 3, kind: input, shape index: {}]   ;;  %s1264_s4 = inlined_call_operand.vmem [shape: f32[32,32], index: 4, kind: input, shape index: {}]   ;;  %s1265_s5 = inlined_call_operand.vmem [shape: f32[1,32], index: 5, kind: input, shape index: {}]   ;;  %s1266_s6 = inlined_call_operand.vmem [shape: f32[32,4], index: 6, kind: input, shape index: {}]   ;;  %s1267_s7 = inlined_call_operand.vmem [shape: f32[1,4], index: 7, kind: input, shape index: {}]   ;;  %s1268_s8 = inlined_call_operand.vmem [shape: f32[32,71], index: 8, kind: input, shape index: {}]   ;;  %s1269_s9 = inlined_call_operand.vmem [shape: f32[1,71], index: 9, kind: input, shape index: {}]   ;;  %s1270_s10 = inlined_call_operand.vmem [shape: f32[32,32], index: 10, kind: input, shape index: {}]   ;;  %s1271_s11 = inlined_call_operand.vmem [shape: f32[1,32], index: 11, kind: input, shape index: {}]   ;;  %s1272_s12 = inlined_call_operand.vmem [shape: f32[32,32], index: 12, kind: input, shape index: {}]   ;;  %s1273_s13 = inlined_call_operand.vmem [shape: f32[1,32], index: 13, kind: input, shape index: {}]   ;;  %s1274_s14 = inlined_call_operand.vmem [shape: f32[32,32], index: 14, kind: input, shape index: {}]   ;;  %s1275_s15 = inlined_call_operand.vmem [shape: f32[1,32], index: 15, kind: input, shape index: {}]   ;;  %s1276_s16 = inlined_call_operand.vmem [shape: f32[32,32], index: 16, kind: input, shape index: {}]   ;;  %s1277_s17 = inlined_call_operand.vmem [shape: f32[1,32], index: 17, kind: input, shape index: {}]   ;;  %s1278_s18 = inlined_call_operand.vmem [shape: f32[20,11], index: 18, kind: output, shape index: {0}]   ;;  %s1279_s19 = inlined_call_operand.vmem [shape: f32[20,4], index: 19, kind: output, shape index: {1}]   ;;  %s1280_s20 = inlined_call_operand.hbm [shape: f32[2,8,10], index: 20, kind: output, shape index: {2}]   ;;  %s1281_s21 = inlined_call_operand.hbm [shape: f32[2,8,10], index: 21, kind: output, shape index: {3}]   ;;  %s1282_s22 = inlined_call_operand.vmem [shape: f32[16,7], index: 22, kind: output, shape index: {4}]  }
   0x1   :  { %1288 = sst [smem:[#allocation8_spill]] %s1260_s0 }
   0x2   :  { %1289 = sst [smem:[#allocation9_spill]] %s1261_s1 }
   0x3   :  { %1290 = sst [smem:[#allocation10_spill]] %s1262_s2 }
   0x4   :  { %1291 = sst [smem:[#allocation11_spill]] %s1263_s3 }
   0x5   :  { %1292 = sst [smem:[#allocation12_spill]] %s1264_s4 }
   0x6   :  { %1293 = sst [smem:[#allocation13_spill]] %s1265_s5 }
   0x7   :  { %1294 = sst [smem:[#allocation14_spill]] %s1266_s6 }
   0x8   :  { %28 = vsyncpa [#allocation3], 0  ;;  %s1295_s29 = sld [smem:[#allocation10_spill]]  ;;  %v332_v1 = vld [vmem:[%s1268_s8 + $0x18] sm:$0xff]  ;;  %v331_v3 = vld [vmem:[%s1268_s8 + $0x10] sm:$0xff]  ;;  %vm74_vm0 = vcmask 261120  }
   0x9   :  { %355 = vmatpush.msra.mxu3 %v332_v1  ;;  %v330_v5 = vld [vmem:[%s1268_s8 + $0x8] sm:$0xff]  ;;  %v329_v7 = vld [vmem:[%s1268_s8] sm:$0xff]  ;;  %s1296_s0 = sld [smem:[#allocation8_spill]] }
   0xa   :  { %s1297_s5 = sld [smem:[#allocation9_spill]] }
   0xb   :  { %356 = vmatpush.msra.mxu3 %v331_v3 }
   0xd   :  { %357 = vmatpush.msra.mxu3 %v330_v5 }
   0xe   :  { %v124_v0 = vld [vmem:[%s1295_s29 + $0x18] sm:$0xff]  ;;  %v123_v2 = vld [vmem:[%s1295_s29 + $0x10] sm:$0xff]  ;;  %v122_v4 = vld [vmem:[%s1295_s29 + $0x8] sm:$0xff] }
   0xf   :  { %150 = vmatpush.msra.mxu0 %v124_v0  ;;  %v121_v6 = vld [vmem:[%s1295_s29] sm:$0xff]  ;;  %358 = vmatpush.msra.mxu3 %v329_v7 }
  0x10   :  { %v1032_v8 = vld [vmem:[%s1296_s0] sm:$0xff] }
  0x11   :  { %151 = vmatpush.msra.mxu0 %v123_v2  ;;  %v69_v9 = vld [vmem:[%s1297_s5] sm:$0xff] }
  0x13   :  { %152 = vmatpush.msra.mxu0 %v122_v4 }
  0x15   :  { %153 = vmatpush.msra.mxu0 %v121_v6 }
  0x16   :  { %29 = vsyncpa [#allocation5], 0  ;;  %759 = vmatmul.msk.f32.vlgmr.msra.gmra.mxu0 %vm74_vm0, %v1032_v8  ;;  %768 = vmatmul.msk.f32.vlgmr.msra.gmra.mxu3 %vm74_vm0, %v69_v9  ;;  %v1043_v10 = vld [vmem:[%s1296_s0 + $0x8] sm:$0xff]  ;;  %v1054_v12 = vld [vmem:[%s1296_s0 + $0x10] sm:$0xf]  ;;  %s1298_s3 = sld [smem:[#allocation11_spill]] }
  0x17   :  { %v70_v11 = vld [vmem:[%s1297_s5 + $0x8] sm:$0xff]  ;;  %v374_v14 = vld [vmem:[%s1270_s10 + $0x18] sm:$0xff]  ;;  %v373_v15 = vld [vmem:[%s1270_s10 + $0x10] sm:$0xff]  ;;  %vm164_vm1 = vcmask 89088   ;;  %s883_s26 = smov 117   ;;  %vm366_vm2 = vcmask 56320   ;;  %v72_v5 = vmul.f32 %v1043_v10, %v1043_v10 }
  0x18   :  { %401 = vmatpush.msrb.mxu3 %v374_v14  ;;  %v372_v16 = vld [vmem:[%s1270_s10 + $0x8] sm:$0xff]  ;;  %v371_v19 = vld [vmem:[%s1270_s10] sm:$0xff]  ;;  %vm167_vm3 = vcmask 84992   ;;  %s885_s1 = smov 89   ;;  %s1299_s8 = sld [smem:[#allocation12_spill]]  ;;  %v486_v38 = vld [vmem:[%s1274_s14 + $0x18] sm:$0xff] }
  0x19   :  { %v798_v21 = vld [vmem:[%s1269_s9] ss:$0 sm:$0xff]  ;;  %s884_s9 = smov 121   ;;  %v485_v39 = vld [vmem:[%s1274_s14 + $0x10] sm:$0xff]  ;;  %v484_v40 = vld [vmem:[%s1274_s14 + $0x8] sm:$0xff]  ;;  %s1300_s6 = sld [smem:[#allocation14_spill]] }
  0x1a   :  { %402 = vmatpush.msrb.mxu3 %v373_v15  ;;  %v483_v42 = vld [vmem:[%s1274_s14] sm:$0xff]  ;;  %v417_v44 = vld [vmem:[%s1272_s12 + $0x18] sm:$0xff]  ;;  %v416_v50 = vld [vmem:[%s1272_s12 + $0x10] sm:$0xff]  ;;  %s1301_s29 = sld [smem:[#allocation13_spill]]  ;;  %v78_v6 = vsel %vm74_vm0, %v72_v5, 0.0  ;;  %vm81_vm4 = vcmask 257024  }
  0x1b   :  { %440 = vmatpush.msrb.mxu0 %v417_v44  ;;  %v415_v51 = vld [vmem:[%s1272_s12 + $0x8] sm:$0xff]  ;;  %v414_v52 = vld [vmem:[%s1272_s12] sm:$0xff]  ;;  %v527_v57 = vld [vmem:[%s1276_s16 + $0x18] sm:$0xff]  ;;  %vm324_vm6 = vcmask 31744   ;;  %s887_s28 = smov 128   ;;  %s888_s30 = smov 8  }
  0x1c   :  { %v797_v13 = vld [vmem:[%s1298_s3] ss:$0 sm:$0xff]  ;;  %403 = vmatpush.msrb.mxu3 %v372_v16  ;;  %v526_v58 = vld [vmem:[%s1276_s16 + $0x10] sm:$0xff]  ;;  %v525_v60 = vld [vmem:[%s1276_s16 + $0x8] sm:$0xff]  ;;  %s889_s4 = smov [#allocation4]   ;;  %s734_s5 = sshll.u32 %s1281_s21, 4  ;;  %s735_s5 = int_to_ptr.hbm [resolvable:$true] %s734_s5 }
  0x1d   :  { %441 = vmatpush.msrb.mxu0 %v416_v50  ;;  %v799_v59 = vld [vmem:[%s1271_s11] ss:$0 sm:$0xff]  ;;  %s732_s23 = sshll.u32 %s889_s4, 4  ;;  %s733_s23 = int_to_ptr.vmem [resolvable:$true] %s732_s23 }
  0x1e   :  { %760 = vmatmul.msk.f32.gmra.mxu0 %vm74_vm0, %v1043_v10  ;;  %769 = vmatmul.msk.f32.gmra.mxu3 %vm74_vm0, %v70_v11  ;;  %v175_v34 = vld [vmem:[%s1299_s8 + $0x18] sm:$0xff]  ;;  %v174_v35 = vld [vmem:[%s1299_s8 + $0x10] sm:$0xff]  ;;  %v173_v36 = vld [vmem:[%s1299_s8 + $0x8] sm:$0xff] }
  0x1f   :  { %404 = vmatpush.msrb.mxu3 %v371_v19  ;;  %207 = vmatpush.msra.mxu1 %v175_v34  ;;  %v172_v37 = vld [vmem:[%s1299_s8] sm:$0xff]  ;;  %v227_v53 = vld [vmem:[%s1300_s6 + $0x18] sm:$0xff]  ;;  %v226_v54 = vld [vmem:[%s1300_s6 + $0x10] sm:$0xff] }
  0x20   :  { %442 = vmatpush.msrb.mxu0 %v415_v51  ;;  %253 = vmatpush.msra.mxu2 %v227_v53  ;;  %v225_v55 = vld [vmem:[%s1300_s6 + $0x8] sm:$0xff]  ;;  %v224_v56 = vld [vmem:[%s1300_s6] sm:$0xff] }
  0x21   :  { %208 = vmatpush.msra.mxu1 %v174_v35  ;;  %v524_v0 = vld [vmem:[%s1276_s16] sm:$0xff] }
  0x22   :  { %443 = vmatpush.msrb.mxu0 %v414_v52  ;;  %254 = vmatpush.msra.mxu2 %v226_v54  ;;  %v800_v1 = vld [vmem:[%s1301_s29] ss:$0 sm:$0xff] }
  0x23   :  { %209 = vmatpush.msra.mxu1 %v173_v36  ;;  %v801_v16 = vld [vmem:[%s1275_s15] ss:$0 sm:$0xff] }
  0x24   :  { %255 = vmatpush.msra.mxu2 %v225_v55  ;;  %v803_v35 = vld [vmem:[%s1267_s7] ss:$0 sm:$0xff] }
  0x25   :  { %210 = vmatpush.msra.mxu1 %v172_v37 }
  0x26   :  { %761 = vmatmul.msk.f32.gmra.mxu0 %vm74_vm0, %v1054_v12  ;;  %256 = vmatpush.msra.mxu2 %v224_v56 }
  0x27   :  { %511 = vmatpush.msrb.mxu1 %v486_v38 }
  0x28   :  { %550 = vmatpush.msrb.mxu2 %v527_v57  ;;  %v804_v57 = vld [vmem:[%s1277_s17] ss:$0 sm:$0xff] }
  0x29   :  { %512 = vmatpush.msrb.mxu1 %v485_v39 }
  0x2a   :  { %551 = vmatpush.msrb.mxu2 %v526_v58 }
  0x2b   :  { %513 = vmatpush.msrb.mxu1 %v484_v40 }
  0x2c   :  { %552 = vmatpush.msrb.mxu2 %v525_v60 }
  0x2d   :  { %514 = vmatpush.msrb.mxu1 %v483_v42 }
  0x2e   :  { %553 = vmatpush.msrb.mxu2 %v524_v0 }
  0x93   :  { %v155_v17 = vpop.f32.mrf.mxu0 }
  0x94   :  { %v156_v18 = vadd.f32 %v797_v13, %v155_v17 }
  0x96   :  { %165 = vst.msk [vmem:[%s1278_s18] sm:$0xff] %vm164_vm1, %v156_v18  ;;  %v169_v20 = vmax.f32 %v156_v18, 0.0 }
  0x98   :  { %183 = vrot.lane.b32.xlu0 %v169_v20, %s883_s26 }
  0x99   :  { %v360_v22 = vpop.f32.mrf.mxu3 }
  0x9a   :  { %v361_v23 = vadd.f32 %v798_v21, %v360_v22 }
  0x9b   :  { %v158_v24 = vpop.f32.mrf.mxu0 }
  0x9c   :  { %367 = vst.msk [vmem:[%s1282_s22] sm:$0xff] %vm366_vm2, %v361_v23  ;;  %v159_v25 = vadd.f32 %v797_v13, %v158_v24  ;;  %v369_v26 = vmax.f32 %v361_v23, 0.0 }
  0x9e   :  { %166 = vst.msk [vmem:[%s1278_s18 + $0x8] sm:$0xff] %vm164_vm1, %v159_v25  ;;  %v170_v27 = vmax.f32 %v159_v25, 0.0  ;;  %381 = vrot.lane.b32.xlu2 %v369_v26, %s884_s9 }
  0xa0   :  { %185 = vrot.lane.b32.xlu0 %v170_v27, %s883_s26 }
  0xa1   :  { %v363_v28 = vpop.f32.mrf.mxu3 }
  0xa2   :  { %v364_v29 = vadd.f32 %v798_v21, %v363_v28  ;;  %v73_v28 = vmul.f32 %v1054_v12, %v1054_v12 }
  0xa3   :  { %v161_v30 = vpop.f32.mrf.mxu0 }
  0xa4   :  { %v162_v31 = vadd.f32 %v797_v13, %v161_v30  ;;  %368 = vst.msk [vmem:[%s1282_s22 + $0x8] sm:$0xff] %vm366_vm2, %v364_v29  ;;  %v370_v32 = vmax.f32 %v364_v29, 0.0  ;;  %v82_v29 = vsel %vm81_vm4, %v73_v28, 0.0  ;;  %v802_v30 = vld [vmem:[%s1273_s13] ss:$0 sm:$0xff] }
  0xa6   :  { %168 = vst.msk [vmem:[%s1278_s18 + $0x10] sm:$0xf] %vm167_vm3, %v162_v31  ;;  %v171_v33 = vmax.f32 %v162_v31, 0.0  ;;  %493 = vrot.lane.b32.xlu2 %v370_v32, %s885_s1 }
  0xa8   :  { %187 = vrot.lane.b32.xlu1 %v171_v33, %s883_s26  ;;  %383 = vrot.lane.b32.xlu0 %v370_v32, %s884_s9  ;;  %s721_s9 = sshll.u32 %s1280_s20, 4  ;;  %s722_s9 = int_to_ptr.hbm [resolvable:$true] %s721_s9 }
  0xb0   :  { %491 = vrot.lane.b32.xlu1 %v369_v26, %s885_s1  ;;  %v71_v26 = vmul.f32 %v1032_v8, %v1032_v8 }
  0xb2   :  { %v75_v27 = vsel %vm74_vm0, %v71_v26, 0.0 }
  0xcf   :  { %79 = vadd.xlane.f32.xlu2 %v78_v6 }
  0xd2   :  { %76 = vadd.xlane.f32.xlu0 %v75_v27 }
  0xda   :  { %83 = vadd.xlane.f32.xlu1 %v82_v29 }
  0xf8   :  { %v382_v41 = vpop.permute.xlu2 %381 }
  0xf9   :  { %770 = vmatmul.msk.f32.vlgmr.msrb.gmra.mxu3 %vm74_vm0, %v382_v41 }
 0x100   :  { %v494_v49 = vpop.permute.xlu2 %493 }
 0x10a   :  { %v184_v43 = vpop.permute.xlu0 %183 }
 0x10b   :  { %762 = vmatmul.msk.f32.vlgmr.msra.gmra.mxu1 %vm74_vm0, %v184_v43 }
 0x112   :  { %v186_v45 = vpop.permute.xlu0 %185 }
 0x113   :  { %763 = vmatmul.msk.f32.gmra.mxu1 %vm74_vm0, %v186_v45 }
 0x11a   :  { %v188_v46 = vpop.permute.xlu1 %187  ;;  %v384_v47 = vpop.permute.xlu0 %383 }
 0x11b   :  { %764 = vmatmul.msk.f32.gmra.mxu1 %vm74_vm0, %v188_v46  ;;  %771 = vmatmul.msk.f32.gmra.mxu3 %vm74_vm0, %v384_v47 }
 0x122   :  { %v492_v48 = vpop.permute.xlu1 %491 }
 0x123   :  { %774 = vmatmul.msk.f32.vlgmr.msrb.gmra.mxu1 %vm74_vm0, %v492_v48 }
 0x12b   :  { %775 = vmatmul.msk.f32.gmra.mxu1 %vm74_vm0, %v494_v49 }
 0x142   :  { %v80_v50 = vpop.xlane.xlu2 %79 }
 0x143   :  { %v86_v51 = vmax.f32 %v80_v50, 1e-24 }
 0x145   :  { %vm104_vm10 = vweird.f32 %v86_v51 }
 0x17c   :  { %v406_v61 = vpop.f32.mrf.mxu3 }
 0x17d   :  { %v407_v62 = vadd.f32 %v799_v59, %v406_v61 }
 0x17f   :  { %v412_v63 = vmax.f32 %v407_v62, 0.0 }
 0x181   :  { %772 = vmatmul.msk.f32.vlgmr.msrb.gmra.mxu0 %vm74_vm0, %v412_v63 }
 0x188   :  { %v212_v2 = vpop.f32.mrf.mxu1 }
 0x189   :  { %v213_v3 = vadd.f32 %v800_v1, %v212_v2 }
 0x18b   :  { %v221_v4 = vmax.f32 %v213_v3, 0.0 }
 0x18d   :  { %765 = vmatmul.msk.f32.vlgmr.msra.gmra.mxu2 %vm74_vm0, %v221_v4 }
 0x190   :  { %v215_v7 = vpop.f32.mrf.mxu1 }
 0x191   :  { %v216_v9 = vadd.f32 %v800_v1, %v215_v7 }
 0x193   :  { %v222_v11 = vmax.f32 %v216_v9, 0.0 }
 0x195   :  { %766 = vmatmul.msk.f32.gmra.mxu2 %vm74_vm0, %v222_v11 }
 0x198   :  { %v218_v13 = vpop.f32.mrf.mxu1 }
 0x199   :  { %v219_v14 = vadd.f32 %v800_v1, %v218_v13 }
 0x19b   :  { %v223_v15 = vmax.f32 %v219_v14, 0.0 }
 0x19d   :  { %767 = vmatmul.msk.f32.gmra.mxu2 %vm74_vm0, %v223_v15 }
 0x19e   :  { %v409_v17 = vpop.f32.mrf.mxu3 }
 0x19f   :  { %v410_v18 = vadd.f32 %v799_v59, %v409_v17 }
 0x1a0   :  { %v516_v19 = vpop.f32.mrf.mxu1 }
 0x1a1   :  { %v413_v20 = vmax.f32 %v410_v18, 0.0  ;;  %v517_v21 = vadd.f32 %v801_v16, %v516_v19 }
 0x1a3   :  { %v522_v22 = vmax.f32 %v517_v21, 0.0  ;;  %773 = vmatmul.msk.f32.gmra.mxu0 %vm74_vm0, %v413_v20 }
 0x1a5   :  { %776 = vmatmul.msk.f32.vlgmr.msrb.gmra.mxu2 %vm74_vm0, %v522_v22 }
 0x1a8   :  { %v519_v23 = vpop.f32.mrf.mxu1 }
 0x1a9   :  { %v520_v24 = vadd.f32 %v801_v16, %v519_v23 }
 0x1ab   :  { %v523_v25 = vmax.f32 %v520_v24, 0.0 }
 0x1ad   :  { %777 = vmatmul.msk.f32.gmra.mxu2 %vm74_vm0, %v523_v25 }
 0x1fe   :  { %v445_v31 = vpop.f32.mrf.mxu0 }
 0x1ff   :  { %v1189_v32 = vadd.f32 %v802_v30, %v445_v31 }
 0x201   :  { %v451_v33 = vmul.f32 %v1189_v32, %v1189_v32 }
 0x203   :  { %v453_v34 = vsel %vm74_vm0, %v451_v33, 0.0 }
 0x204   :  { %454 = vadd.xlane.f32.xlu2 %v453_v34 }
 0x210   :  { %v258_v36 = vpop.f32.mrf.mxu2 }
 0x211   :  { %v259_v37 = vadd.f32 %v803_v35, %v258_v36 }
 0x213   :  { %v267_v38 = vsub.f32 0.0, %v259_v37 }
 0x215   :  { %v270_v39 = vmul.f32 1.442695, %v267_v38 }
 0x217   :  { %805 = vpow2.f32 %v270_v39 }
 0x218   :  { %v261_v40 = vpop.f32.mrf.mxu2 }
 0x219   :  { %v262_v41 = vadd.f32 %v803_v35, %v261_v40 }
 0x21b   :  { %v268_v42 = vsub.f32 0.0, %v262_v41 }
 0x21d   :  { %v806_v43 = vpop.eup %805  ;;  %v272_v44 = vmul.f32 1.442695, %v268_v42 }
 0x21e   :  { %v276_v45 = vadd.f32 1.0, %v806_v43 }
 0x21f   :  { %807 = vpow2.f32 %v272_v44 }
 0x220   :  { %809 = vrcp.f32 %v276_v45  ;;  %v264_v46 = vpop.f32.mrf.mxu2  ;;  %v448_v47 = vpop.f32.mrf.mxu0  ;;  %v288_v1 = vand.u32 2147483647, %v276_v45  ;;  %v290_v2 = vand.u32 2147483648, %v276_v45  ;;  %vm284_vm7 = vweird.f32 %v276_v45 }
 0x221   :  { %v265_v48 = vadd.f32 %v803_v35, %v264_v46  ;;  %v1197_v49 = vadd.f32 %v802_v30, %v448_v47  ;;  %811 = vrsqrt.f32 %v86_v51  ;;  %v77_v46 = vpop.xlane.xlu0 %76 }
 0x222   :  { %vm289_vm9 = vcmp.eq.f32.partialorder %v288_v1, 8.507059e+37  ;;  %v291_v14 = vor.u32 1.1754944e-38, %v290_v2  ;;  %v85_v47 = vmax.f32 %v77_v46, 1e-24 }
 0x223   :  { %v269_v52 = vsub.f32 0.0, %v265_v48  ;;  %v452_v53 = vmul.f32 %v1197_v49, %v1197_v49 }
 0x225   :  { %v808_v54 = vpop.eup %807  ;;  %v274_v55 = vmul.f32 1.442695, %v269_v52  ;;  %v456_v56 = vsel %vm74_vm0, %v452_v53, 0.0 }
 0x226   :  { %v810_v58 = vpop.eup %809  ;;  %v277_v59 = vadd.f32 1.0, %v808_v54  ;;  %457 = vadd.xlane.f32.xlu2 %v456_v56 }
 0x227   :  { %v280_v60 = vmul.f32 %v810_v58, %v276_v45  ;;  %813 = vpow2.f32 %v274_v55  ;;  %v812_v0 = vpop.eup %811  ;;  %vm285_vm5 = vweird.f32 %v810_v58 }
 0x228   :  { %815 = vrcp.f32 %v277_v59  ;;  %v555_v61 = vpop.f32.mrf.mxu2  ;;  %v99_v5 = vmul.f32 %v812_v0, %v86_v51  ;;  %vm286_vm8 = vmor %vm284_vm7, %vm285_vm5  ;;  %vm105_vm11 = vweird.f32 %v812_v0  ;;  %v303_v24 = vand.u32 2147483647, %v277_v59 }
 0x229   :  { %v281_v62 = vsub.f32 1.0, %v280_v60  ;;  %v1205_v63 = vadd.f32 %v804_v57, %v555_v61  ;;  %v305_v25 = vand.u32 2147483648, %v277_v59  ;;  %vm106_vm12 = vmor %vm104_vm10, %vm105_vm11  ;;  %vm299_vm14 = vweird.f32 %v277_v59 }
 0x22a   :  { %v100_v11 = vmul.f32 %v812_v0, %v99_v5  ;;  %vm304_vm1 = vcmp.eq.f32.partialorder %v303_v24, 8.507059e+37  ;;  %vm327_vm5 = vcmask 27648  }
 0x22b   :  { %v282_v3 = vmul.f32 %v810_v58, %v281_v62  ;;  %v561_v4 = vmul.f32 %v1205_v63, %v1205_v63  ;;  %v306_v34 = vor.u32 1.1754944e-38, %v305_v25 }
 0x22c   :  { %v101_v18 = vmul.f32 0.5, %v100_v11 }
 0x22d   :  { %v814_v6 = vpop.eup %813  ;;  %v283_v7 = vadd.f32 %v810_v58, %v282_v3  ;;  %v563_v9 = vsel %vm74_vm0, %v561_v4, 0.0 }
 0x22e   :  { %v816_v13 = vpop.eup %815  ;;  %v278_v15 = vadd.f32 1.0, %v814_v6  ;;  %564 = vadd.xlane.f32.xlu0 %v563_v9  ;;  %v102_v23 = vsub.f32 1.5, %v101_v18 }
 0x22f   :  { %v287_v16 = vsel %vm286_vm8, %v810_v58, %v283_v7  ;;  %v295_v17 = vmul.f32 %v816_v13, %v277_v59  ;;  %vm300_vm13 = vweird.f32 %v816_v13 }
 0x230   :  { %v292_v19 = vsel %vm289_vm9, %v291_v14, %v287_v16  ;;  %817 = vrcp.f32 %v278_v15  ;;  %v558_v20 = vpop.f32.mrf.mxu2  ;;  %v103_v28 = vmul.f32 %v812_v0, %v102_v23  ;;  %vm301_vm15 = vmor %vm299_vm14, %vm300_vm13  ;;  %v320_v40 = vand.u32 2147483648, %v278_v15 }
 0x231   :  { %325 = vst.msk [vmem:[%s1279_s19] sm:$0xff] %vm324_vm6, %v292_v19  ;;  %v296_v21 = vsub.f32 1.0, %v295_v17  ;;  %v1214_v22 = vadd.f32 %v804_v57, %v558_v20  ;;  %vm314_vm3 = vweird.f32 %v278_v15  ;;  %819 = vrsqrt.f32 %v85_v47  ;;  %v84_v57 = vpop.xlane.xlu1 %83 }
 0x232   :  { %v107_v31 = vsel %vm106_vm12, %v812_v0, %v103_v28  ;;  %v321_v43 = vor.u32 1.1754944e-38, %v320_v40  ;;  %v87_v58 = vmax.f32 %v84_v57, 1e-24 }
 0x233   :  { %v297_v26 = vmul.f32 %v816_v13, %v296_v21  ;;  %v562_v27 = vmul.f32 %v1214_v22, %v1214_v22  ;;  %v1220_v35 = vmul.f32 %v107_v31, %v1043_v10  ;;  %v318_v10 = vand.u32 2147483647, %v278_v15 }
 0x234   :  { %821 = vrsqrt.f32 %v87_v58  ;;  %vm114_vm10 = vweird.f32 %v87_v58 }
 0x235   :  { %v298_v29 = vadd.f32 %v816_v13, %v297_v26  ;;  %v566_v30 = vsel %vm74_vm0, %v562_v27, 0.0  ;;  %778 = vmatpush.xpose.msk.msra.mxu3 %vm74_vm0, %v1220_v35  ;;  %781 = vmatpush.xpose.msk.msra.mxu0 %vm74_vm0, %v1220_v35  ;;  %vm319_vm7 = vcmp.eq.f32.partialorder %v318_v10, 8.507059e+37  ;;  %v652_v14 = vrot.slane %v1220_v35, 2 }
 0x236   :  { %v818_v33 = vpop.eup %817  ;;  %567 = vadd.xlane.f32.xlu1 %v566_v30 }
 0x237   :  { %v302_v36 = vsel %vm301_vm15, %v816_v13, %v298_v29  ;;  %v310_v37 = vmul.f32 %v818_v33, %v278_v15  ;;  %vm315_vm2 = vweird.f32 %v818_v33  ;;  %v820_v48 = vpop.eup %819 }
 0x238   :  { %v307_v38 = vsel %vm304_vm1, %v306_v34, %v302_v36  ;;  %vm316_vm4 = vmor %vm314_vm3, %vm315_vm2  ;;  %v89_v50 = vmul.f32 %v820_v48, %v85_v47  ;;  %vm95_vm8 = vweird.f32 %v820_v48  ;;  %vm651_vm1 = vcmask 1045504  }
 0x239   :  { %326 = vst.msk [vmem:[%s1279_s19 + $0x8] sm:$0xff] %vm324_vm6, %v307_v38  ;;  %v311_v39 = vsub.f32 1.0, %v310_v37  ;;  %vm94_vm6 = vweird.f32 %v85_v47 }
 0x23a   :  { %v90_v51 = vmul.f32 %v820_v48, %v89_v50  ;;  %vm96_vm9 = vmor %vm94_vm6, %vm95_vm8  ;;  %v822_v59 = vpop.eup %821 }
 0x23b   :  { %v312_v41 = vmul.f32 %v818_v33, %v311_v39  ;;  %v109_v61 = vmul.f32 %v822_v59, %v87_v58  ;;  %vm115_vm11 = vweird.f32 %v822_v59 }
 0x23c   :  { %v91_v52 = vmul.f32 0.5, %v90_v51  ;;  %vm116_vm12 = vmor %vm114_vm10, %vm115_vm11  ;;  %vm623_vm11 = vcmask 80896  }
 0x23d   :  { %v313_v42 = vadd.f32 %v818_v33, %v312_v41  ;;  %v110_v0 = vmul.f32 %v822_v59, %v109_v61 }
 0x23e   :  { %v92_v53 = vsub.f32 1.5, %v91_v52 }
 0x23f   :  { %v317_v44 = vsel %vm316_vm4, %v818_v33, %v313_v42  ;;  %v111_v1 = vmul.f32 0.5, %v110_v0 }
 0x240   :  { %v322_v45 = vsel %vm319_vm7, %v321_v43, %v317_v44  ;;  %v93_v54 = vmul.f32 %v820_v48, %v92_v53 }
 0x241   :  { %328 = vst.msk [vmem:[%s1279_s19 + $0x10] sm:$0xf] %vm327_vm5, %v322_v45  ;;  %v112_v2 = vsub.f32 1.5, %v111_v1  ;;  %s886_s19 = smov [#allocation2]  }
 0x242   :  { %v97_v55 = vsel %vm96_vm9, %v820_v48, %v93_v54  ;;  %s719_s27 = sshll.u32 %s886_s19, 4  ;;  %s720_s27 = int_to_ptr.vmem [resolvable:$true] %s719_s27 }
 0x243   :  { %v118_v56 = vmul.f32 %v97_v55, %v1032_v8  ;;  %v113_v3 = vmul.f32 %v822_v59, %v112_v2 }
 0x245   :  { %779 = vmatpush.xpose.msk.msra.mxu3 %vm74_vm0, %v118_v56  ;;  %782 = vmatpush.xpose.msk.msra.mxu0 %vm74_vm0, %v118_v56  ;;  %v117_v5 = vsel %vm116_vm12, %v822_v59, %v113_v3 }
 0x246   :  { %v120_v6 = vmul.f32 %v117_v5, %v1054_v12 }
 0x248   :  { %v653_v9 = vrot.slane %v120_v6, 2 }
 0x24a   :  { %784 = vmatpush.xpose.msk.msra.mxu1 %vm74_vm0, %v653_v9  ;;  %787 = vmatpush.xpose.msk.msra.mxu2 %vm74_vm0, %v653_v9  ;;  %v654_v16 = vsel %vm651_vm1, %v652_v14, %v653_v9 }
 0x24e   :  { %785 = vmatpush.xpose.msk.msra.mxu1 %vm74_vm0, %v654_v16  ;;  %788 = vmatpush.xpose.msk.msra.mxu2 %vm74_vm0, %v654_v16 }
 0x277   :  { %v455_v60 = vpop.xlane.xlu2 %454 }
 0x278   :  { %v459_v62 = vmax.f32 %v455_v60, 1e-24 }
 0x27a   :  { %823 = vrsqrt.f32 %v459_v62  ;;  %vm467_vm13 = vweird.f32 %v459_v62 }
 0x280   :  { %v824_v8 = vpop.eup %823 }
 0x281   :  { %v462_v4 = vmul.f32 %v824_v8, %v459_v62  ;;  %vm468_vm14 = vweird.f32 %v824_v8 }
 0x282   :  { %vm469_vm15 = vmor %vm467_vm13, %vm468_vm14 }
 0x283   :  { %v463_v7 = vmul.f32 %v824_v8, %v462_v4 }
 0x285   :  { %v464_v11 = vmul.f32 0.5, %v463_v7 }
 0x287   :  { %v465_v13 = vsub.f32 1.5, %v464_v11 }
 0x289   :  { %v466_v15 = vmul.f32 %v824_v8, %v465_v13 }
 0x28b   :  { %v470_v17 = vsel %vm469_vm15, %v824_v8, %v466_v15 }
 0x28c   :  { %v481_v12 = vmul.f32 %v470_v17, %v1189_v32 }
 0x28e   :  { %780 = vmatmul.msk.f32.vlgmr.msra.gmra.mxu3 %vm74_vm0, %v481_v12 }
 0x299   :  { %v458_v18 = vpop.xlane.xlu2 %457 }
 0x29a   :  { %v460_v19 = vmax.f32 %v458_v18, 1e-24 }
 0x29c   :  { %825 = vrsqrt.f32 %v460_v19  ;;  %vm477_vm2 = vweird.f32 %v460_v19 }
 0x2a1   :  { %v565_v20 = vpop.xlane.xlu0 %564 }
 0x2a2   :  { %v826_v21 = vpop.eup %825  ;;  %v569_v23 = vmax.f32 %v565_v20, 1e-24 }
 0x2a3   :  { %v472_v24 = vmul.f32 %v826_v21, %v460_v19  ;;  %vm478_vm3 = vweird.f32 %v826_v21 }
 0x2a4   :  { %827 = vrsqrt.f32 %v569_v23  ;;  %vm479_vm4 = vmor %vm477_vm2, %vm478_vm3  ;;  %vm577_vm7 = vweird.f32 %v569_v23 }
 0x2a5   :  { %v473_v25 = vmul.f32 %v826_v21, %v472_v24 }
 0x2a7   :  { %v474_v26 = vmul.f32 0.5, %v473_v25 }
 0x2a9   :  { %v475_v27 = vsub.f32 1.5, %v474_v26  ;;  %v568_v28 = vpop.xlane.xlu1 %567 }
 0x2aa   :  { %v828_v29 = vpop.eup %827  ;;  %v570_v30 = vmax.f32 %v568_v28, 1e-24 }
 0x2ab   :  { %v476_v32 = vmul.f32 %v826_v21, %v475_v27  ;;  %v572_v31 = vmul.f32 %v828_v29, %v569_v23  ;;  %vm578_vm5 = vweird.f32 %v828_v29 }
 0x2ac   :  { %829 = vrsqrt.f32 %v570_v30  ;;  %vm579_vm6 = vmor %vm577_vm7, %vm578_vm5  ;;  %vm587_vm9 = vweird.f32 %v570_v30 }
 0x2ad   :  { %v480_v33 = vsel %vm479_vm4, %v826_v21, %v476_v32  ;;  %v573_v34 = vmul.f32 %v828_v29, %v572_v31 }
 0x2ae   :  { %v482_v35 = vmul.f32 %v480_v33, %v1197_v49 }
 0x2af   :  { %v574_v36 = vmul.f32 0.5, %v573_v34 }
 0x2b0   :  { %786 = vmatmul.msk.f32.vlgmr.msra.gmra.mxu1 %vm74_vm0, %v482_v35 }
 0x2b1   :  { %v575_v37 = vsub.f32 1.5, %v574_v36 }
 0x2b2   :  { %v830_v38 = vpop.eup %829 }
 0x2b3   :  { %v576_v39 = vmul.f32 %v828_v29, %v575_v37  ;;  %v582_v40 = vmul.f32 %v830_v38, %v570_v30  ;;  %vm588_vm8 = vweird.f32 %v830_v38 }
 0x2b4   :  { %vm589_vm10 = vmor %vm587_vm9, %vm588_vm8 }
 0x2b5   :  { %v580_v41 = vsel %vm579_vm6, %v828_v29, %v576_v39  ;;  %v583_v10 = vmul.f32 %v830_v38, %v582_v40 }
 0x2b6   :  { %v591_v42 = vmul.f32 %v580_v41, %v1205_v63 }
 0x2b7   :  { %v584_v43 = vmul.f32 0.5, %v583_v10 }
 0x2b8   :  { %783 = vmatmul.msk.f32.vlgmr.msra.gmra.mxu0 %vm74_vm0, %v591_v42 }
 0x2b9   :  { %v585_v44 = vsub.f32 1.5, %v584_v43 }
 0x2bb   :  { %v586_v49 = vmul.f32 %v830_v38, %v585_v44 }
 0x2bd   :  { %v590_v45 = vsel %vm589_vm10, %v830_v38, %v586_v49 }
 0x2be   :  { %v592_v46 = vmul.f32 %v590_v45, %v1214_v22 }
 0x2c0   :  { %789 = vmatmul.msk.f32.vlgmr.msra.gmra.mxu2 %vm74_vm0, %v592_v46 }
 0x311   :  { %v619_v47 = vpop.f32.mrf.mxu3 }
 0x312   :  { %v622_v48 = vmul.f32 20.0, %v619_v47 }
 0x314   :  { %624 = vst.msk [vmem:[#allocation2] sm:$0xff] %vm623_vm11, %v622_v48 }
 0x32d   :  { %v679_v63 = vpop.f32.mrf.mxu1 }
 0x32e   :  { %v682_v50 = vmul.f32 20.0, %v679_v63 }
 0x330   :  { %684 = vst.msk [vmem:[#allocation2 + $0x8] sm:$0xff] %vm623_vm11, %v682_v50 }
 0x331   :  { %727 = dma.vmem_to_hbm [thread:$0]  %s720_s27, 256, %s722_s9, [#allocation3], %s887_s28, %s887_s28, %s888_s30  }
 0x335   :  { %v645_v22 = vpop.f32.mrf.mxu0 }
 0x336   :  { %v648_v51 = vmul.f32 20.0, %v645_v22 }
 0x338   :  { %649 = vst.msk [vmem:[#allocation4] sm:$0xff] %vm623_vm11, %v648_v51 }
 0x343   :  { %v705_v52 = vpop.f32.mrf.mxu2 }
 0x344   :  { %v708_v53 = vmul.f32 20.0, %v705_v52 }
 0x346   :  { %710 = vst.msk [vmem:[#allocation4 + $0x8] sm:$0xff] %vm623_vm11, %v708_v53 }
 0x347   :  { %740 = dma.vmem_to_hbm [thread:$0]  %s733_s23, 256, %s735_s5, [#allocation5], %s887_s28, %s887_s28, %s888_s30  }
 0x348   :  { %879 = dma.done.wait [#allocation3], 256  }
 0x349   :  { %880 = vsyncadd [#allocation3], 4294967040 }
 0x34a   :  { %881 = dma.done.wait [#allocation5], 256  }
 0x34b   :  { %882 = vsyncadd [#allocation5], 4294967040 }
 0x34c   :  { %757 = vsyncpa [#allocation3], 1 }
 0x34d   :  { %758 = vsyncpa [#allocation5], 1 }

</bundles_post_ra>
